<compile_context>
chip_gen: v7x
topology: tpu7x:2x2x1
jax: 0.10.0
libtpu: 0.0.40
codegen_flags: <defaults>
</compile_context>

<pallas_src>
import jax
import jax.numpy as jnp
from jax.experimental import pallas as pl
from jax.experimental.pallas import tpu as pltpu

IN_FEATURES = 10 * 9 * 9        # 810
IN_PAD = 896                    # 810 padded to a multiple of 128 lanes
HIDDEN = 2 ** 10                # 1024
OUT_FEATURES = 9 ** 3           # 729
GROUP = 9 * 9                   # 81 columns per softmax group
GROUP_PAD = 128                 # group padded to one full lane width
N_GROUPS = 9
OUT_PAD = N_GROUPS * GROUP_PAD  # 1152
BN_EPS = 1e-5
TB_MAX = 256                    # max batch tile (fills 256-row MXU on v6e/v7x)


def fc_shallow_kernel(x_ref, w1_ref, b1_ref, w3_ref, b3_ref, o_ref):
    # ---- fc1 (BN eval-stats + fc1 bias folded into w1/b1 on host) + ReLU ----
    # x arrives as bf16 from the host; MXU accumulates in f32.
    h = jnp.dot(x_ref[...], w1_ref[...], preferred_element_type=jnp.float32)  # (tb, 1024)
    h = jnp.maximum(h + b1_ref[...], 0.0)                                     # bias + ReLU
    # TODO(synk): Dropout(p=0.4) is identity in eval mode; training-mode PRNG mask not emitted.

    # ---- fc3 (group-padded to 9 x 128 lane-aligned columns) ----
    y = jnp.dot(h.astype(jnp.bfloat16), w3_ref[...],
                preferred_element_type=jnp.float32)                           # (tb, 1152)
    y = y + b3_ref[...]

    # ---- softmax over the 9 groups (dim=1 of (B,9,9,9)), streamed epilogue ----
    # pass 1: running per-lane max across groups
    m = y[:, 0:GROUP_PAD]
    for g in range(1, N_GROUPS):
        m = jnp.maximum(m, y[:, g * GROUP_PAD:(g + 1) * GROUP_PAD])
    # pass 2: write unnormalized exp(s - m) per group into o_ref, accumulate the denominator
    denom = jnp.zeros_like(m)
    for g in range(N_GROUPS):
        e = jnp.exp(y[:, g * GROUP_PAD:(g + 1) * GROUP_PAD] - m)
        denom = denom + e
        o_ref[:, g * GROUP_PAD:(g + 1) * GROUP_PAD] = e
    # pass 3: exact reciprocal (NOT approx) so per-row sums hit 1.0 within ~1e-6
    inv = 1.0 / denom
    for g in range(N_GROUPS):
        o_ref[:, g * GROUP_PAD:(g + 1) * GROUP_PAD] = (
            o_ref[:, g * GROUP_PAD:(g + 1) * GROUP_PAD] * inv
        )


def _round_up(n, m):
    return ((n + m - 1) // m) * m


def fc_shallow_forward(x, params):
    """x: (B, 10, 9, 9) float-like. Returns (B, 9, 9, 9) float32 softmax(dim=1)."""
    w1, b1, w3, b3 = params
    B = x.shape[0]

    # host-side: flatten, cast to bf16 (halves per-tile input DMA), lane-pad features
    x_flat = x.reshape(B, IN_FEATURES).astype(jnp.bfloat16)
    x_flat = jnp.pad(x_flat, ((0, 0), (0, IN_PAD - IN_FEATURES)))

    # batch tile: multiple of 16 (bf16 sublane packing); for B > 16 guarantee >= 2 grid
    # programs so dimension_semantics=("parallel",) can shard across v7x's 2 TensorCores.
    if B <= 16:
        tb = 16                                            # can't split 16 bf16-packed rows
    else:
        tb = min(TB_MAX, _round_up((B + 1) // 2, 16))
    B_pad = _round_up(B, tb)
    if B_pad != B:
        x_flat = jnp.pad(x_flat, ((0, B_pad - B), (0, 0)))
    grid = (B_pad // tb,)

    out_padded = pl.pallas_call(
        fc_shallow_kernel,
        out_shape=jax.ShapeDtypeStruct((B_pad, OUT_PAD), jnp.float32),
        grid=grid,
        in_specs=[
            pl.BlockSpec((tb, IN_PAD), lambda i: (i, 0)),        # x: tiled over batch (bf16)
            pl.BlockSpec((IN_PAD, HIDDEN), lambda i: (0, 0)),    # w1: resident (bf16)
            pl.BlockSpec((1, HIDDEN), lambda i: (0, 0)),         # folded BN+bias (f32)
            pl.BlockSpec((HIDDEN, OUT_PAD), lambda i: (0, 0)),   # w3: resident (bf16)
            pl.BlockSpec((1, OUT_PAD), lambda i: (0, 0)),        # b3 (f32)
        ],
        out_specs=pl.BlockSpec((tb, OUT_PAD), lambda i: (i, 0)),
        compiler_params=pltpu.CompilerParams(
            dimension_semantics=("parallel",),   # megacore sharding of the batch axis
            vmem_limit_bytes=32 << 20,           # ~4 MiB weights x2 + tiles, ample headroom
        ),
    )(x_flat, w1, b1, w3, b3)

    out = out_padded[:B].reshape(B, N_GROUPS, GROUP_PAD)[:, :, :GROUP]
    return out.reshape(B, N_GROUPS, 9, 9)


def init_params(key):
    """Returns (kernel_params, ref_params) with PyTorch-default-style init."""
    k1, k2, k3, k4 = jax.random.split(key, 4)

    # fc1: Linear(810, 1024), stored as (in, out)
    bound1 = 1.0 / (IN_FEATURES ** 0.5)
    w1 = jax.random.uniform(k1, (IN_FEATURES, HIDDEN), jnp.float32, -bound1, bound1)
    b1 = jax.random.uniform(k2, (HIDDEN,), jnp.float32, -bound1, bound1)

    # bn1: BatchNorm1d(1024) default init, eval-mode running stats
    gamma = jnp.ones((HIDDEN,), jnp.float32)
    beta = jnp.zeros((HIDDEN,), jnp.float32)
    running_mean = jnp.zeros((HIDDEN,), jnp.float32)
    running_var = jnp.ones((HIDDEN,), jnp.float32)
    scale = gamma / jnp.sqrt(running_var + BN_EPS)
    shift = beta - running_mean * scale

    # fc3: Linear(1024, 729), stored as (in, out)
    bound3 = 1.0 / (HIDDEN ** 0.5)
    w3 = jax.random.uniform(k3, (HIDDEN, OUT_FEATURES), jnp.float32, -bound3, bound3)
    b3 = jax.random.uniform(k4, (OUT_FEATURES,), jnp.float32, -bound3, bound3)

    # ---- kernel-ready params ----
    # fold BN (eval) + fc1 bias: (x@w1 + b1)*scale + shift == x@(w1*scale) + (b1*scale + shift)
    w1_folded = w1 * scale[None, :]
    b1_folded = b1 * scale + shift
    w1_k = jnp.pad(w1_folded, ((0, IN_PAD - IN_FEATURES), (0, 0))).astype(jnp.bfloat16)
    b1_k = b1_folded.reshape(1, HIDDEN)                      # keep f32 for accuracy

    # pad each softmax group 81 -> 128 columns with zero weights / zero bias; the softmax
    # runs across groups per lane, so the pad lanes are independent and sliced off afterwards.
    w3_g = w3.reshape(HIDDEN, N_GROUPS, GROUP)
    w3_k = jnp.pad(w3_g, ((0, 0), (0, 0), (0, GROUP_PAD - GROUP)))
    w3_k = w3_k.reshape(HIDDEN, OUT_PAD).astype(jnp.bfloat16)
    b3_g = b3.reshape(N_GROUPS, GROUP)
    b3_k = jnp.pad(b3_g, ((0, 0), (0, GROUP_PAD - GROUP))).reshape(1, OUT_PAD)  # f32

    kernel_params = (w1_k, b1_k, w3_k, b3_k)
    ref_params = (w1, b1, scale, shift, w3, b3)
    return kernel_params, ref_params


def reference_forward(x, ref_params):
    """Pure-JAX f32 reference matching the PyTorch module in eval mode."""
    w1, b1, scale, shift, w3, b3 = ref_params
    xf = x.reshape(-1, IN_FEATURES)
    h = xf @ w1 + b1
    h = h * scale + shift
    h = jnp.maximum(h, 0.0)
    y = h @ w3 + b3
    y = y.reshape(-1, N_GROUPS, 9, 9)
    return jax.nn.softmax(y, axis=1)


if __name__ == "__main__":
    key = jax.random.PRNGKey(0)
    k_x, k_p = jax.random.split(key)

    B = 4
    x = jax.random.normal(k_x, (B, 10, 9, 9), jnp.float32)
    kernel_params, ref_params = init_params(k_p)

    out = jax.block_until_ready(fc_shallow_forward(x, kernel_params))

    assert out.shape == (B, 9, 9, 9), out.shape
    # softmax over dim=1 must sum to 1 (exact-divide normalization -> ~1e-6 deviation)
    sums = jnp.sum(out, axis=1)
    assert jnp.allclose(sums, jnp.ones_like(sums), atol=1e-4), "softmax normalization failed"
    # match f32 reference within bf16-weight/activation tolerance
    ref = reference_forward(x, ref_params)
    max_err = float(jnp.max(jnp.abs(out - ref)))
    assert max_err < 2e-2, f"mismatch vs reference: {max_err}"

    print("KERNEL_OK")
</pallas_src>

<mosaic_0001>
module attributes {stable_mosaic.version = 11 : i64} {
  func.func @fc_shallow_kernel(%arg0: i32, %arg1: memref<16x896xbf16, #tpu.memory_space<vmem>>, %arg2: memref<896x1024xbf16, #tpu.memory_space<vmem>>, %arg3: memref<1x1024xf32, #tpu.memory_space<vmem>>, %arg4: memref<1024x1152xbf16, #tpu.memory_space<vmem>>, %arg5: memref<1x1152xf32, #tpu.memory_space<vmem>>, %arg6: memref<16x1152xf32, #tpu.memory_space<vmem>>) attributes {dimension_semantics = [#tpu.dimension_semantics<parallel>], iteration_bounds = array<i64: 1>, scalar_prefetch = 0 : i64, scratch_operands = 0 : i64, tpu.core_type = #tpu.core_type<tc>, window_params = [{transform_indices = @transform_0, window_bounds = array<i64: 16, 896>}, {pipeline_mode = #tpu.pipeline_mode<synchronous>, transform_indices = @transform_1, window_bounds = array<i64: 896, 1024>}, {pipeline_mode = #tpu.pipeline_mode<synchronous>, transform_indices = @transform_2, window_bounds = array<i64: 1, 1024>}, {pipeline_mode = #tpu.pipeline_mode<synchronous>, transform_indices = @transform_3, window_bounds = array<i64: 1024, 1152>}, {pipeline_mode = #tpu.pipeline_mode<synchronous>, transform_indices = @transform_4, window_bounds = array<i64: 1, 1152>}, {transform_indices = @transform_5, window_bounds = array<i64: 16, 1152>}]} {
    %c0 = arith.constant 0 : index
    %c0_0 = arith.constant 0 : index
    %0 = vector.load %arg1[%c0, %c0_0] : memref<16x896xbf16, #tpu.memory_space<vmem>>, vector<16x896xbf16>
    %c0_1 = arith.constant 0 : index
    %c0_2 = arith.constant 0 : index
    %1 = vector.load %arg2[%c0_1, %c0_2] : memref<896x1024xbf16, #tpu.memory_space<vmem>>, vector<896x1024xbf16>
    %cst = arith.constant dense<0.000000e+00> : vector<16x1024xf32>
    %2 = tpu.matmul %0, %1, %cst {dimension_numbers = #tpu.dot_dimension_numbers<[1], [0], [0], [1], [0, 0, 1, 1], [], []>} : vector<16x896xbf16>, vector<896x1024xbf16>, vector<16x1024xf32> -> vector<16x1024xf32>
    %c0_3 = arith.constant 0 : index
    %c0_4 = arith.constant 0 : index
    %3 = vector.load %arg3[%c0_3, %c0_4] : memref<1x1024xf32, #tpu.memory_space<vmem>>, vector<1x1024xf32>
    %4 = vector.broadcast %3 : vector<1x1024xf32> to vector<16x1024xf32>
    %5 = arith.addf %2, %4 : vector<16x1024xf32>
    %cst_5 = arith.constant 0.000000e+00 : f32
    %6 = vector.broadcast %cst_5 : f32 to vector<16x1024xf32>
    %7 = arith.maximumf %5, %6 : vector<16x1024xf32>
    %8 = arith.truncf %7 : vector<16x1024xf32> to vector<16x1024xbf16>
    %c0_6 = arith.constant 0 : index
    %c0_7 = arith.constant 0 : index
    %9 = vector.load %arg4[%c0_6, %c0_7] : memref<1024x1152xbf16, #tpu.memory_space<vmem>>, vector<1024x1152xbf16>
    %cst_8 = arith.constant dense<0.000000e+00> : vector<16x1152xf32>
    %10 = tpu.matmul %8, %9, %cst_8 {dimension_numbers = #tpu.dot_dimension_numbers<[1], [0], [0], [1], [0, 0, 1, 1], [], []>} : vector<16x1024xbf16>, vector<1024x1152xbf16>, vector<16x1152xf32> -> vector<16x1152xf32>
    %c0_9 = arith.constant 0 : index
    %c0_10 = arith.constant 0 : index
    %11 = vector.load %arg5[%c0_9, %c0_10] : memref<1x1152xf32, #tpu.memory_space<vmem>>, vector<1x1152xf32>
    %12 = vector.broadcast %11 : vector<1x1152xf32> to vector<16x1152xf32>
    %13 = arith.addf %10, %12 : vector<16x1152xf32>
    %14 = vector.extract_strided_slice %13 {offsets = [0, 0], sizes = [16, 128], strides = [1, 1]} : vector<16x1152xf32> to vector<16x128xf32>
    %15 = vector.extract_strided_slice %13 {offsets = [0, 128], sizes = [16, 128], strides = [1, 1]} : vector<16x1152xf32> to vector<16x128xf32>
    %16 = arith.maximumf %14, %15 : vector<16x128xf32>
    %17 = vector.extract_strided_slice %13 {offsets = [0, 256], sizes = [16, 128], strides = [1, 1]} : vector<16x1152xf32> to vector<16x128xf32>
    %18 = arith.maximumf %16, %17 : vector<16x128xf32>
    %19 = vector.extract_strided_slice %13 {offsets = [0, 384], sizes = [16, 128], strides = [1, 1]} : vector<16x1152xf32> to vector<16x128xf32>
    %20 = arith.maximumf %18, %19 : vector<16x128xf32>
    %21 = vector.extract_strided_slice %13 {offsets = [0, 512], sizes = [16, 128], strides = [1, 1]} : vector<16x1152xf32> to vector<16x128xf32>
    %22 = arith.maximumf %20, %21 : vector<16x128xf32>
    %23 = vector.extract_strided_slice %13 {offsets = [0, 640], sizes = [16, 128], strides = [1, 1]} : vector<16x1152xf32> to vector<16x128xf32>
    %24 = arith.maximumf %22, %23 : vector<16x128xf32>
    %25 = vector.extract_strided_slice %13 {offsets = [0, 768], sizes = [16, 128], strides = [1, 1]} : vector<16x1152xf32> to vector<16x128xf32>
    %26 = arith.maximumf %24, %25 : vector<16x128xf32>
    %27 = vector.extract_strided_slice %13 {offsets = [0, 896], sizes = [16, 128], strides = [1, 1]} : vector<16x1152xf32> to vector<16x128xf32>
    %28 = arith.maximumf %26, %27 : vector<16x128xf32>
    %29 = vector.extract_strided_slice %13 {offsets = [0, 1024], sizes = [16, 128], strides = [1, 1]} : vector<16x1152xf32> to vector<16x128xf32>
    %30 = arith.maximumf %28, %29 : vector<16x128xf32>
    %cst_11 = arith.constant 0.000000e+00 : f32
    %31 = vector.broadcast %cst_11 : f32 to vector<16x128xf32>
    %32 = vector.extract_strided_slice %13 {offsets = [0, 0], sizes = [16, 128], strides = [1, 1]} : vector<16x1152xf32> to vector<16x128xf32>
    %33 = arith.subf %32, %30 : vector<16x128xf32>
    %34 = math.exp %33 : vector<16x128xf32>
    %35 = arith.addf %31, %34 : vector<16x128xf32>
    %c0_12 = arith.constant 0 : index
    %c0_13 = arith.constant 0 : index
    %36 = vector.load %arg6[%c0_12, %c0_13] : memref<16x1152xf32, #tpu.memory_space<vmem>>, vector<16x128xf32>
    tpu.vector_store %arg6[%c0_12, %c0_13], %34 {strides = array<i32>} : memref<16x1152xf32, #tpu.memory_space<vmem>>, vector<16x128xf32>,
    %37 = vector.extract_strided_slice %13 {offsets = [0, 128], sizes = [16, 128], strides = [1, 1]} : vector<16x1152xf32> to vector<16x128xf32>
    %38 = arith.subf %37, %30 : vector<16x128xf32>
    %39 = math.exp %38 : vector<16x128xf32>
    %40 = arith.addf %35, %39 : vector<16x128xf32>
    %c0_14 = arith.constant 0 : index
    %c128 = arith.constant 128 : index
    %41 = vector.load %arg6[%c0_14, %c128] : memref<16x1152xf32, #tpu.memory_space<vmem>>, vector<16x128xf32>
    tpu.vector_store %arg6[%c0_14, %c128], %39 {strides = array<i32>} : memref<16x1152xf32, #tpu.memory_space<vmem>>, vector<16x128xf32>,
    %42 = vector.extract_strided_slice %13 {offsets = [0, 256], sizes = [16, 128], strides = [1, 1]} : vector<16x1152xf32> to vector<16x128xf32>
    %43 = arith.subf %42, %30 : vector<16x128xf32>
    %44 = math.exp %43 : vector<16x128xf32>
    %45 = arith.addf %40, %44 : vector<16x128xf32>
    %c0_15 = arith.constant 0 : index
    %c256 = arith.constant 256 : index
    %46 = vector.load %arg6[%c0_15, %c256] : memref<16x1152xf32, #tpu.memory_space<vmem>>, vector<16x128xf32>
    tpu.vector_store %arg6[%c0_15, %c256], %44 {strides = array<i32>} : memref<16x1152xf32, #tpu.memory_space<vmem>>, vector<16x128xf32>,
    %47 = vector.extract_strided_slice %13 {offsets = [0, 384], sizes = [16, 128], strides = [1, 1]} : vector<16x1152xf32> to vector<16x128xf32>
    %48 = arith.subf %47, %30 : vector<16x128xf32>
    %49 = math.exp %48 : vector<16x128xf32>
    %50 = arith.addf %45, %49 : vector<16x128xf32>
    %c0_16 = arith.constant 0 : index
    %c384 = arith.constant 384 : index
    %51 = vector.load %arg6[%c0_16, %c384] : memref<16x1152xf32, #tpu.memory_space<vmem>>, vector<16x128xf32>
    tpu.vector_store %arg6[%c0_16, %c384], %49 {strides = array<i32>} : memref<16x1152xf32, #tpu.memory_space<vmem>>, vector<16x128xf32>,
    %52 = vector.extract_strided_slice %13 {offsets = [0, 512], sizes = [16, 128], strides = [1, 1]} : vector<16x1152xf32> to vector<16x128xf32>
    %53 = arith.subf %52, %30 : vector<16x128xf32>
    %54 = math.exp %53 : vector<16x128xf32>
    %55 = arith.addf %50, %54 : vector<16x128xf32>
    %c0_17 = arith.constant 0 : index
    %c512 = arith.constant 512 : index
    %56 = vector.load %arg6[%c0_17, %c512] : memref<16x1152xf32, #tpu.memory_space<vmem>>, vector<16x128xf32>
    tpu.vector_store %arg6[%c0_17, %c512], %54 {strides = array<i32>} : memref<16x1152xf32, #tpu.memory_space<vmem>>, vector<16x128xf32>,
    %57 = vector.extract_strided_slice %13 {offsets = [0, 640], sizes = [16, 128], strides = [1, 1]} : vector<16x1152xf32> to vector<16x128xf32>
    %58 = arith.subf %57, %30 : vector<16x128xf32>
    %59 = math.exp %58 : vector<16x128xf32>
    %60 = arith.addf %55, %59 : vector<16x128xf32>
    %c0_18 = arith.constant 0 : index
    %c640 = arith.constant 640 : index
    %61 = vector.load %arg6[%c0_18, %c640] : memref<16x1152xf32, #tpu.memory_space<vmem>>, vector<16x128xf32>
    tpu.vector_store %arg6[%c0_18, %c640], %59 {strides = array<i32>} : memref<16x1152xf32, #tpu.memory_space<vmem>>, vector<16x128xf32>,
    %62 = vector.extract_strided_slice %13 {offsets = [0, 768], sizes = [16, 128], strides = [1, 1]} : vector<16x1152xf32> to vector<16x128xf32>
    %63 = arith.subf %62, %30 : vector<16x128xf32>
    %64 = math.exp %63 : vector<16x128xf32>
    %65 = arith.addf %60, %64 : vector<16x128xf32>
    %c0_19 = arith.constant 0 : index
    %c768 = arith.constant 768 : index
    %66 = vector.load %arg6[%c0_19, %c768] : memref<16x1152xf32, #tpu.memory_space<vmem>>, vector<16x128xf32>
    tpu.vector_store %arg6[%c0_19, %c768], %64 {strides = array<i32>} : memref<16x1152xf32, #tpu.memory_space<vmem>>, vector<16x128xf32>,
    %67 = vector.extract_strided_slice %13 {offsets = [0, 896], sizes = [16, 128], strides = [1, 1]} : vector<16x1152xf32> to vector<16x128xf32>
    %68 = arith.subf %67, %30 : vector<16x128xf32>
    %69 = math.exp %68 : vector<16x128xf32>
    %70 = arith.addf %65, %69 : vector<16x128xf32>
    %c0_20 = arith.constant 0 : index
    %c896 = arith.constant 896 : index
    %71 = vector.load %arg6[%c0_20, %c896] : memref<16x1152xf32, #tpu.memory_space<vmem>>, vector<16x128xf32>
    tpu.vector_store %arg6[%c0_20, %c896], %69 {strides = array<i32>} : memref<16x1152xf32, #tpu.memory_space<vmem>>, vector<16x128xf32>,
    %72 = vector.extract_strided_slice %13 {offsets = [0, 1024], sizes = [16, 128], strides = [1, 1]} : vector<16x1152xf32> to vector<16x128xf32>
    %73 = arith.subf %72, %30 : vector<16x128xf32>
    %74 = math.exp %73 : vector<16x128xf32>
    %75 = arith.addf %70, %74 : vector<16x128xf32>
    %c0_21 = arith.constant 0 : index
    %c1024 = arith.constant 1024 : index
    %76 = vector.load %arg6[%c0_21, %c1024] : memref<16x1152xf32, #tpu.memory_space<vmem>>, vector<16x128xf32>
    tpu.vector_store %arg6[%c0_21, %c1024], %74 {strides = array<i32>} : memref<16x1152xf32, #tpu.memory_space<vmem>>, vector<16x128xf32>,
    %cst_22 = arith.constant 1.000000e+00 : f32
    %77 = vector.broadcast %cst_22 : f32 to vector<16x128xf32>
    %78 = arith.divf %77, %75 : vector<16x128xf32>
    %c0_23 = arith.constant 0 : index
    %c0_24 = arith.constant 0 : index
    %79 = vector.load %arg6[%c0_23, %c0_24] : memref<16x1152xf32, #tpu.memory_space<vmem>>, vector<16x128xf32>
    %80 = arith.mulf %79, %78 : vector<16x128xf32>
    %c0_25 = arith.constant 0 : index
    %c0_26 = arith.constant 0 : index
    %81 = vector.load %arg6[%c0_25, %c0_26] : memref<16x1152xf32, #tpu.memory_space<vmem>>, vector<16x128xf32>
    tpu.vector_store %arg6[%c0_25, %c0_26], %80 {strides = array<i32>} : memref<16x1152xf32, #tpu.memory_space<vmem>>, vector<16x128xf32>,
    %c0_27 = arith.constant 0 : index
    %c128_28 = arith.constant 128 : index
    %82 = vector.load %arg6[%c0_27, %c128_28] : memref<16x1152xf32, #tpu.memory_space<vmem>>, vector<16x128xf32>
    %83 = arith.mulf %82, %78 : vector<16x128xf32>
    %c0_29 = arith.constant 0 : index
    %c128_30 = arith.constant 128 : index
    %84 = vector.load %arg6[%c0_29, %c128_30] : memref<16x1152xf32, #tpu.memory_space<vmem>>, vector<16x128xf32>
    tpu.vector_store %arg6[%c0_29, %c128_30], %83 {strides = array<i32>} : memref<16x1152xf32, #tpu.memory_space<vmem>>, vector<16x128xf32>,
    %c0_31 = arith.constant 0 : index
    %c256_32 = arith.constant 256 : index
    %85 = vector.load %arg6[%c0_31, %c256_32] : memref<16x1152xf32, #tpu.memory_space<vmem>>, vector<16x128xf32>
    %86 = arith.mulf %85, %78 : vector<16x128xf32>
    %c0_33 = arith.constant 0 : index
    %c256_34 = arith.constant 256 : index
    %87 = vector.load %arg6[%c0_33, %c256_34] : memref<16x1152xf32, #tpu.memory_space<vmem>>, vector<16x128xf32>
    tpu.vector_store %arg6[%c0_33, %c256_34], %86 {strides = array<i32>} : memref<16x1152xf32, #tpu.memory_space<vmem>>, vector<16x128xf32>,
    %c0_35 = arith.constant 0 : index
    %c384_36 = arith.constant 384 : index
    %88 = vector.load %arg6[%c0_35, %c384_36] : memref<16x1152xf32, #tpu.memory_space<vmem>>, vector<16x128xf32>
    %89 = arith.mulf %88, %78 : vector<16x128xf32>
    %c0_37 = arith.constant 0 : index
    %c384_38 = arith.constant 384 : index
    %90 = vector.load %arg6[%c0_37, %c384_38] : memref<16x1152xf32, #tpu.memory_space<vmem>>, vector<16x128xf32>
    tpu.vector_store %arg6[%c0_37, %c384_38], %89 {strides = array<i32>} : memref<16x1152xf32, #tpu.memory_space<vmem>>, vector<16x128xf32>,
    %c0_39 = arith.constant 0 : index
    %c512_40 = arith.constant 512 : index
    %91 = vector.load %arg6[%c0_39, %c512_40] : memref<16x1152xf32, #tpu.memory_space<vmem>>, vector<16x128xf32>
    %92 = arith.mulf %91, %78 : vector<16x128xf32>
    %c0_41 = arith.constant 0 : index
    %c512_42 = arith.constant 512 : index
    %93 = vector.load %arg6[%c0_41, %c512_42] : memref<16x1152xf32, #tpu.memory_space<vmem>>, vector<16x128xf32>
    tpu.vector_store %arg6[%c0_41, %c512_42], %92 {strides = array<i32>} : memref<16x1152xf32, #tpu.memory_space<vmem>>, vector<16x128xf32>,
    %c0_43 = arith.constant 0 : index
    %c640_44 = arith.constant 640 : index
    %94 = vector.load %arg6[%c0_43, %c640_44] : memref<16x1152xf32, #tpu.memory_space<vmem>>, vector<16x128xf32>
    %95 = arith.mulf %94, %78 : vector<16x128xf32>
    %c0_45 = arith.constant 0 : index
    %c640_46 = arith.constant 640 : index
    %96 = vector.load %arg6[%c0_45, %c640_46] : memref<16x1152xf32, #tpu.memory_space<vmem>>, vector<16x128xf32>
    tpu.vector_store %arg6[%c0_45, %c640_46], %95 {strides = array<i32>} : memref<16x1152xf32, #tpu.memory_space<vmem>>, vector<16x128xf32>,
    %c0_47 = arith.constant 0 : index
    %c768_48 = arith.constant 768 : index
    %97 = vector.load %arg6[%c0_47, %c768_48] : memref<16x1152xf32, #tpu.memory_space<vmem>>, vector<16x128xf32>
    %98 = arith.mulf %97, %78 : vector<16x128xf32>
    %c0_49 = arith.constant 0 : index
    %c768_50 = arith.constant 768 : index
    %99 = vector.load %arg6[%c0_49, %c768_50] : memref<16x1152xf32, #tpu.memory_space<vmem>>, vector<16x128xf32>
    tpu.vector_store %arg6[%c0_49, %c768_50], %98 {strides = array<i32>} : memref<16x1152xf32, #tpu.memory_space<vmem>>, vector<16x128xf32>,
    %c0_51 = arith.constant 0 : index
    %c896_52 = arith.constant 896 : index
    %100 = vector.load %arg6[%c0_51, %c896_52] : memref<16x1152xf32, #tpu.memory_space<vmem>>, vector<16x128xf32>
    %101 = arith.mulf %100, %78 : vector<16x128xf32>
    %c0_53 = arith.constant 0 : index
    %c896_54 = arith.constant 896 : index
    %102 = vector.load %arg6[%c0_53, %c896_54] : memref<16x1152xf32, #tpu.memory_space<vmem>>, vector<16x128xf32>
    tpu.vector_store %arg6[%c0_53, %c896_54], %101 {strides = array<i32>} : memref<16x1152xf32, #tpu.memory_space<vmem>>, vector<16x128xf32>,
    %c0_55 = arith.constant 0 : index
    %c1024_56 = arith.constant 1024 : index
    %103 = vector.load %arg6[%c0_55, %c1024_56] : memref<16x1152xf32, #tpu.memory_space<vmem>>, vector<16x128xf32>
    %104 = arith.mulf %103, %78 : vector<16x128xf32>
    %c0_57 = arith.constant 0 : index
    %c1024_58 = arith.constant 1024 : index
    %105 = vector.load %arg6[%c0_57, %c1024_58] : memref<16x1152xf32, #tpu.memory_space<vmem>>, vector<16x128xf32>
    tpu.vector_store %arg6[%c0_57, %c1024_58], %104 {strides = array<i32>} : memref<16x1152xf32, #tpu.memory_space<vmem>>, vector<16x128xf32>,
    return
  }
  func.func @transform_0(%arg0: i32) -> (i32, i32) {
    %c0_i32 = arith.constant 0 : i32
    %c0_i32_0 = arith.constant 0 : i32
    return %arg0, %c0_i32 : i32, i32
  }
  func.func @transform_1(%arg0: i32) -> (i32, i32) {
    %c0_i32 = arith.constant 0 : i32
    %c0_i32_0 = arith.constant 0 : i32
    %c0_i32_1 = arith.constant 0 : i32
    return %c0_i32, %c0_i32_0 : i32, i32
  }
  func.func @transform_2(%arg0: i32) -> (i32, i32) {
    %c0_i32 = arith.constant 0 : i32
    %c0_i32_0 = arith.constant 0 : i32
    %c0_i32_1 = arith.constant 0 : i32
    return %c0_i32, %c0_i32_0 : i32, i32
  }
  func.func @transform_3(%arg0: i32) -> (i32, i32) {
    %c0_i32 = arith.constant 0 : i32
    %c0_i32_0 = arith.constant 0 : i32
    %c0_i32_1 = arith.constant 0 : i32
    return %c0_i32, %c0_i32_0 : i32, i32
  }
  func.func @transform_4(%arg0: i32) -> (i32, i32) {
    %c0_i32 = arith.constant 0 : i32
    %c0_i32_0 = arith.constant 0 : i32
    %c0_i32_1 = arith.constant 0 : i32
    return %c0_i32, %c0_i32_0 : i32, i32
  }
  func.func @transform_5(%arg0: i32) -> (i32, i32) {
    %c0_i32 = arith.constant 0 : i32
    %c0_i32_0 = arith.constant 0 : i32
    return %arg0, %c0_i32 : i32, i32
  }
}

</mosaic_0001>

<bundles_post_ra>
// kernel: tpu_custom_call.1
= control target key start
LH: loop header
LB: loop body
LE: loop exit
PB: predicated region body
PF: predicated region fallthrough
CT: control target
= control target key end

     0   :  { %10 = vsyncpa [#allocation3], 0  ;;  %s10851_s0 = inlined_call_operand.hbm [shape: bf16[16,896], index: 0, kind: input, shape index: {}]   ;;  %s10852_s1 = inlined_call_operand.hbm [shape: bf16[896,1024], index: 1, kind: input, shape index: {}]   ;;  %s10853_s2 = inlined_call_operand.hbm [shape: f32[1,1024], index: 2, kind: input, shape index: {}]   ;;  %s10854_s3 = inlined_call_operand.hbm [shape: bf16[1024,1152], index: 3, kind: input, shape index: {}]   ;;  %s10855_s4 = inlined_call_operand.hbm [shape: f32[1,1152], index: 4, kind: input, shape index: {}]   ;;  %s10856_s5 = inlined_call_operand.hbm [shape: f32[16,1152], index: 5, kind: output, shape index: {}]  }
   0x1   :  { %11 = vsyncpa [#allocation6], 0 }
   0x2   :  { %12 = vsyncpa [#allocation9], 0 }
   0x3   :  { %13 = vsyncpa [#allocation4], 0  ;;  %s10532_s18 = smov [#allocation5]   ;;  %s10392_s22 = scalar_lea.hbm %s10852_s1, 57344 }
   0x4   :  { %s31_s19 = sshll.u32 %s10532_s18, 4  ;;  %p10393_p0 = scmp.ne.s32.totalorder %s10852_s1, %s10392_s22  ;;  %s32_s19 = int_to_ptr.vmem [resolvable:$true] %s31_s19 }
   0x5   :  { %p10396_p1 = scmp.lt.u32.totalorder %s10392_s22, %s10852_s1 }
   0x7   :  { %p10398_p2 = pnand %p10396_p1, %p10393_p0 }
   0x9   :  { %10401 = shalt.err (!%p10398_p2)
}
   0xa   :  { %s10402_s27 = scalar_lea.vmem %s32_s19, 57344  ;;  %p10407_p4 = scmp.lt.s32.totalorder %s32_s19, %s32_s19 }
   0xb   :  { %p10403_p3 = scmp.ne.s32.totalorder %s32_s19, %s10402_s27  ;;  %p10408_p5 = scmp.lt.s32.totalorder %s10402_s27, %s10402_s27 }
   0xd   :  { %p10409_p6 = por %p10408_p5, %p10407_p4 }
   0xf   :  { %p10410_p7 = pnand %p10409_p6, %p10403_p3 }
  0x11   :  { %10413 = shalt.err (!%p10410_p7)
}
  0x12   :  { %s10533_s28 = smov 512   ;;  %s10534_s29 = smov 32  }
  0x13   :  { %37 = dma.hbm_to_vmem [thread:$0]  %s10852_s1, 57344, %s32_s19, [#allocation6], %s10533_s28, %s10533_s28, %s10534_s29  }
  0x14   :  { %s10535_s7 = smov [#allocation8]   ;;  %s10414_s11 = scalar_lea.hbm %s10854_s3, 73728 }
  0x15   :  { %s53_s8 = sshll.u32 %s10535_s7, 4  ;;  %p10415_p8 = scmp.ne.s32.totalorder %s10854_s3, %s10414_s11  ;;  %s54_s8 = int_to_ptr.vmem [resolvable:$true] %s53_s8 }
  0x16   :  { %p10418_p9 = scmp.lt.u32.totalorder %s10414_s11, %s10854_s3 }
  0x18   :  { %p10420_p10 = pnand %p10418_p9, %p10415_p8 }
  0x1a   :  { %10423 = shalt.err (!%p10420_p10)
}
  0x1b   :  { %s10424_s16 = scalar_lea.vmem %s54_s8, 73728  ;;  %p10429_p12 = scmp.lt.s32.totalorder %s54_s8, %s54_s8 }
  0x1c   :  { %p10425_p11 = scmp.ne.s32.totalorder %s54_s8, %s10424_s16  ;;  %p10430_p13 = scmp.lt.s32.totalorder %s10424_s16, %s10424_s16 }
  0x1e   :  { %p10431_p0 = por %p10430_p13, %p10429_p12 }
  0x20   :  { %p10432_p1 = pnand %p10431_p0, %p10425_p11 }
  0x22   :  { %10435 = shalt.err (!%p10432_p1)
}
  0x23   :  { %s10536_s1 = smov 576   ;;  %s10537_s17 = smov 36  }
  0x24   :  { %59 = dma.hbm_to_vmem [thread:$0]  %s10854_s3, 73728, %s54_s8, [#allocation9], %s10536_s1, %s10536_s1, %s10537_s17  }
  0x25   :  { %s10538_s20 = smov [#allocation2]   ;;  %s10436_s24 = scalar_lea.hbm %s10851_s0, 896 }
  0x26   :  { %s19_s21 = sshll.u32 %s10538_s20, 4  ;;  %p10437_p2 = scmp.ne.s32.totalorder %s10851_s0, %s10436_s24  ;;  %s20_s21 = int_to_ptr.vmem [resolvable:$true] %s19_s21 }
  0x27   :  { %p10440_p3 = scmp.lt.u32.totalorder %s10436_s24, %s10851_s0 }
  0x29   :  { %p10442_p4 = pnand %p10440_p3, %p10437_p2 }
  0x2b   :  { %10445 = shalt.err (!%p10442_p4)
}
  0x2c   :  { %s10446_s29 = scalar_lea.vmem %s20_s21, 896  ;;  %p10451_p6 = scmp.lt.s32.totalorder %s20_s21, %s20_s21 }
  0x2d   :  { %p10447_p5 = scmp.ne.s32.totalorder %s20_s21, %s10446_s29  ;;  %p10452_p7 = scmp.lt.s32.totalorder %s10446_s29, %s10446_s29 }
  0x2f   :  { %p10453_p8 = por %p10452_p7, %p10451_p6 }
  0x31   :  { %p10454_p9 = pnand %p10453_p8, %p10447_p5 }
  0x33   :  { %10457 = shalt.err (!%p10454_p9)
}
  0x34   :  { %s10539_s3 = smov 448   ;;  %s10540_s30 = smov 28  }
  0x35   :  { %25 = dma.hbm_to_vmem [thread:$0]  %s10851_s0, 896, %s20_s21, [#allocation3], %s10539_s3, %s10539_s3, %s10540_s30  }
  0x36   :  { %s10541_s8 = smov [#allocation7]   ;;  %s10542_s10 = smov [#allocation10]  }
  0x37   :  { %s44_s9 = sshll.u32 %s10541_s8, 4  ;;  %s66_s11 = sshll.u32 %s10542_s10, 4  ;;  %s45_s9 = int_to_ptr.vmem [resolvable:$true] %s44_s9  ;;  %s67_s11 = int_to_ptr.vmem [resolvable:$true] %s66_s11 }
  0x38   :  { %s10458_s14 = scalar_lea.hbm %s10853_s2, 128 }
  0x39   :  { %p10459_p10 = scmp.ne.s32.totalorder %s10853_s2, %s10458_s14  ;;  %p10462_p11 = scmp.lt.u32.totalorder %s10458_s14, %s10853_s2 }
  0x3b   :  { %p10464_p12 = pnand %p10462_p11, %p10459_p10 }
  0x3d   :  { %10467 = shalt.err (!%p10464_p12)
}
  0x3e   :  { %s10468_s0 = scalar_lea.vmem %s45_s9, 128  ;;  %p10473_p0 = scmp.lt.s32.totalorder %s45_s9, %s45_s9 }
  0x3f   :  { %p10469_p13 = scmp.ne.s32.totalorder %s45_s9, %s10468_s0  ;;  %p10474_p1 = scmp.lt.s32.totalorder %s10468_s0, %s10468_s0 }
  0x41   :  { %p10475_p2 = por %p10474_p1, %p10473_p0 }
  0x43   :  { %p10476_p3 = pnand %p10475_p2, %p10469_p13 }
  0x45   :  { %10479 = shalt.err (!%p10476_p3)
}
  0x46   :  { %47 = dma.hbm_to_vmem [thread:$0]  %s10853_s2, 128, %s45_s9, [#allocation6]  }
  0x47   :  { %s10480_s22 = scalar_lea.hbm %s10855_s4, 144 }
  0x48   :  { %p10481_p4 = scmp.ne.s32.totalorder %s10855_s4, %s10480_s22  ;;  %p10484_p5 = scmp.lt.u32.totalorder %s10480_s22, %s10855_s4 }
  0x4a   :  { %p10486_p6 = pnand %p10484_p5, %p10481_p4 }
  0x4c   :  { %10489 = shalt.err (!%p10486_p6)
}
  0x4d   :  { %s10490_s27 = scalar_lea.vmem %s67_s11, 144  ;;  %s10494_s28 = scalar_lea.vmem %s67_s11, 160 }
  0x4e   :  { %p10491_p7 = scmp.ne.s32.totalorder %s67_s11, %s10490_s27  ;;  %p10495_p8 = scmp.lt.s32.totalorder %s67_s11, %s67_s11 }
  0x4f   :  { %p10496_p9 = scmp.lt.s32.totalorder %s10494_s28, %s10490_s27 }
  0x51   :  { %p10497_p10 = por %p10496_p9, %p10495_p8 }
  0x53   :  { %p10498_p11 = pnand %p10497_p10, %p10491_p7 }
  0x55   :  { %10501 = shalt.err (!%p10498_p11)
}
  0x56   :  { %69 = dma.hbm_to_vmem [thread:$0]  %s10855_s4, 144, %s67_s11, [#allocation9]  }
  0x57   :  { %10524 = dma.done.wait [#allocation3], 896  }
  0x58   :  { %10525 = vsyncadd [#allocation3], 4294966400 }
  0x59   :  { %10526 = dma.done.wait [#allocation6], 57472  }
  0x5a   :  { %10527 = vsyncadd [#allocation6], 4294909824 }
  0x5b   :  { %10528 = dma.done.wait [#allocation9], 73872  }
  0x5c   :  { %10529 = vsyncadd [#allocation9], 4294893424  ;;  %v94_v0 = vld [vmem:[#allocation5] sm:$0xff]  ;;  %v95_v2 = vld [vmem:[#allocation5 + $0x8] sm:$0xff]  ;;  %s10544_s4 = smov [#allocation11]  }
  0x5d   :  { %v98_v1 = vld [vmem:[#allocation5 + $0x20] sm:$0xff]  ;;  %v99_v4 = vld [vmem:[#allocation5 + $0x28] sm:$0xff]  ;;  %s8226_s3 = sshll.u32 %s10544_s4, 4  ;;  %s8227_s3 = int_to_ptr.vmem [resolvable:$true] %s8226_s3 }
  0x5e   :  { %v8248_v3 = vcombine.high %v94_v0, %v98_v1  ;;  %v8247_v5 = vcombine.low %v94_v0, %v98_v1  ;;  %v102_v6 = vld [vmem:[#allocation5 + $0x40] sm:$0xff]  ;;  %v8250_v8 = vcombine.high %v95_v2, %v99_v4  ;;  %v8249_v9 = vcombine.low %v95_v2, %v99_v4  ;;  %v103_v11 = vld [vmem:[#allocation5 + $0x48] sm:$0xff]  ;;  %s10502_s30 = scalar_lea.vmem %s8227_s3, 2304  ;;  %p10507_p13 = scmp.lt.s32.totalorder %s8227_s3, %s8227_s3 }
  0x5f   :  { %v106_v7 = vld [vmem:[#allocation5 + $0x60] sm:$0xff]  ;;  %v107_v12 = vld [vmem:[#allocation5 + $0x68] sm:$0xff]  ;;  %p10503_p12 = scmp.ne.s32.totalorder %s8227_s3, %s10502_s30  ;;  %p10508_p0 = scmp.lt.s32.totalorder %s10502_s30, %s10502_s30 }
  0x60   :  { %v8256_v10 = vcombine.high %v102_v6, %v106_v7  ;;  %v110_v13 = vld [vmem:[#allocation5 + $0x80] sm:$0xff]  ;;  %2860 = vmatprep.subr.bf16.mxu0 %v8248_v3  ;;  %v8258_v14 = vcombine.high %v103_v11, %v107_v12  ;;  %v111_v16 = vld [vmem:[#allocation5 + $0x88] sm:$0xff]  ;;  %3032 = vmatprep.subr.bf16.mxu1 %v8250_v8  ;;  %v8255_v18 = vcombine.low %v102_v6, %v106_v7 }
  0x61   :  { %v114_v15 = vld [vmem:[#allocation5 + $0xa0] sm:$0xff]  ;;  %v115_v17 = vld [vmem:[#allocation5 + $0xa8] sm:$0xff]  ;;  %2861 = vmatpush1.bf16.msra.mxu0 %v8247_v5  ;;  %3033 = vmatpush1.bf16.msra.mxu1 %v8249_v9  ;;  %v8257_v19 = vcombine.low %v103_v11, %v107_v12  ;;  %p10509_p1 = por %p10508_p0, %p10507_p13 }
  0x62   :  { %2862 = vmatprep.subr.bf16.mxu0 %v8256_v10  ;;  %v8264_v20 = vcombine.high %v110_v13, %v114_v15  ;;  %3034 = vmatprep.subr.bf16.mxu1 %v8258_v14  ;;  %v8266_v21 = vcombine.high %v111_v16, %v115_v17  ;;  %v118_v22 = vld [vmem:[#allocation5 + $0xc0] sm:$0xff]  ;;  %v119_v24 = vld [vmem:[#allocation5 + $0xc8] sm:$0xff]  ;;  %v8263_v26 = vcombine.low %v110_v13, %v114_v15 }
  0x63   :  { %v122_v23 = vld [vmem:[#allocation5 + $0xe0] sm:$0xff]  ;;  %v123_v25 = vld [vmem:[#allocation5 + $0xe8] sm:$0xff]  ;;  %v8265_v27 = vcombine.low %v111_v16, %v115_v17  ;;  %p10510_p2 = pnand %p10509_p1, %p10503_p12 }
  0x64   :  { %v8272_v28 = vcombine.high %v118_v22, %v122_v23  ;;  %v8274_v29 = vcombine.high %v119_v24, %v123_v25  ;;  %v126_v30 = vld [vmem:[#allocation5 + $0x100] sm:$0xff]  ;;  %v127_v32 = vld [vmem:[#allocation5 + $0x108] sm:$0xff]  ;;  %v8271_v34 = vcombine.low %v118_v22, %v122_v23  ;;  %v8273_v35 = vcombine.low %v119_v24, %v123_v25 }
  0x65   :  { %2863 = vmatpush1.bf16.msra.mxu0 %v8255_v18  ;;  %3035 = vmatpush1.bf16.msra.mxu1 %v8257_v19  ;;  %v130_v31 = vld [vmem:[#allocation5 + $0x120] sm:$0xff]  ;;  %v131_v33 = vld [vmem:[#allocation5 + $0x128] sm:$0xff] }
  0x66   :  { %2864 = vmatprep.subr.bf16.mxu0 %v8264_v20  ;;  %3036 = vmatprep.subr.bf16.mxu1 %v8266_v21  ;;  %v8280_v36 = vcombine.high %v126_v30, %v130_v31  ;;  %v8282_v37 = vcombine.high %v127_v32, %v131_v33  ;;  %v134_v38 = vld [vmem:[#allocation5 + $0x140] sm:$0xff]  ;;  %v135_v40 = vld [vmem:[#allocation5 + $0x148] sm:$0xff]  ;;  %v8279_v42 = vcombine.low %v126_v30, %v130_v31 }
  0x67   :  { %v138_v39 = vld [vmem:[#allocation5 + $0x160] sm:$0xff]  ;;  %v139_v41 = vld [vmem:[#allocation5 + $0x168] sm:$0xff]  ;;  %v8281_v43 = vcombine.low %v127_v32, %v131_v33 }
  0x68   :  { %v8288_v44 = vcombine.high %v134_v38, %v138_v39  ;;  %v8290_v45 = vcombine.high %v135_v40, %v139_v41  ;;  %v142_v46 = vld [vmem:[#allocation5 + $0x180] sm:$0xff]  ;;  %v143_v48 = vld [vmem:[#allocation5 + $0x188] sm:$0xff]  ;;  %v8287_v50 = vcombine.low %v134_v38, %v138_v39  ;;  %v8289_v51 = vcombine.low %v135_v40, %v139_v41 }
  0x69   :  { %2865 = vmatpush1.bf16.msra.mxu0 %v8263_v26  ;;  %3037 = vmatpush1.bf16.msra.mxu1 %v8265_v27  ;;  %v146_v47 = vld [vmem:[#allocation5 + $0x1a0] sm:$0xff]  ;;  %v147_v49 = vld [vmem:[#allocation5 + $0x1a8] sm:$0xff] }
  0x6a   :  { %2866 = vmatprep.subr.bf16.mxu0 %v8272_v28  ;;  %3038 = vmatprep.subr.bf16.mxu1 %v8274_v29  ;;  %v8296_v52 = vcombine.high %v142_v46, %v146_v47  ;;  %v8298_v53 = vcombine.high %v143_v48, %v147_v49  ;;  %v150_v54 = vld [vmem:[#allocation5 + $0x1c0] sm:$0xff]  ;;  %v9503_v56 = vld [vmem:[#allocation2 + $0x4] ss:$28 sps:$4 sm:$0xff]   ;;  %v8295_v59 = vcombine.low %v142_v46, %v146_v47 }
  0x6b   :  { %v154_v55 = vld [vmem:[#allocation5 + $0x1e0] sm:$0xff]  ;;  %v151_v57 = vld [vmem:[#allocation5 + $0x1c8] sm:$0xff]  ;;  %2892 = vmatprep.mubr.bf16.mxu0 %v9503_v56  ;;  %v8297_v60 = vcombine.low %v143_v48, %v147_v49  ;;  %3064 = vmatprep.mubr.bf16.mxu1 %v9503_v56 }
  0x6c   :  { %v155_v58 = vld [vmem:[#allocation5 + $0x1e8] sm:$0xff]  ;;  %v8304_v61 = vcombine.high %v150_v54, %v154_v55  ;;  %v158_v63 = vld [vmem:[#allocation5 + $0x200] sm:$0xff]  ;;  %v8303_v3 = vcombine.low %v150_v54, %v154_v55 }
  0x6d   :  { %2867 = vmatpush1.bf16.msra.mxu0 %v8271_v34  ;;  %3039 = vmatpush1.bf16.msra.mxu1 %v8273_v35  ;;  %v8306_v62 = vcombine.high %v151_v57, %v155_v58  ;;  %v162_v0 = vld [vmem:[#allocation5 + $0x220] sm:$0xff]  ;;  %v159_v1 = vld [vmem:[#allocation5 + $0x208] sm:$0xff]  ;;  %v8305_v4 = vcombine.low %v151_v57, %v155_v58 }
  0x6e   :  { %2868 = vmatprep.subr.bf16.mxu0 %v8280_v36  ;;  %3040 = vmatprep.subr.bf16.mxu1 %v8282_v37  ;;  %v163_v2 = vld [vmem:[#allocation5 + $0x228] sm:$0xff]  ;;  %v8312_v5 = vcombine.high %v158_v63, %v162_v0  ;;  %v166_v7 = vld [vmem:[#allocation5 + $0x240] sm:$0xff]  ;;  %v8311_v11 = vcombine.low %v158_v63, %v162_v0 }
  0x6f   :  { %v8314_v6 = vcombine.high %v159_v1, %v163_v2  ;;  %v170_v8 = vld [vmem:[#allocation5 + $0x260] sm:$0xff]  ;;  %v167_v9 = vld [vmem:[#allocation5 + $0x248] sm:$0xff]  ;;  %v8313_v12 = vcombine.low %v159_v1, %v163_v2 }
  0x70   :  { %v171_v10 = vld [vmem:[#allocation5 + $0x268] sm:$0xff]  ;;  %v8320_v13 = vcombine.high %v166_v7, %v170_v8  ;;  %v174_v15 = vld [vmem:[#allocation5 + $0x280] sm:$0xff]  ;;  %v8319_v19 = vcombine.low %v166_v7, %v170_v8 }
  0x71   :  { %2869 = vmatpush1.bf16.msra.mxu0 %v8279_v42  ;;  %3041 = vmatpush1.bf16.msra.mxu1 %v8281_v43  ;;  %v8322_v14 = vcombine.high %v167_v9, %v171_v10  ;;  %v178_v16 = vld [vmem:[#allocation5 + $0x2a0] sm:$0xff]  ;;  %v175_v17 = vld [vmem:[#allocation5 + $0x288] sm:$0xff]  ;;  %v8321_v20 = vcombine.low %v167_v9, %v171_v10 }
  0x72   :  { %2870 = vmatprep.subr.bf16.mxu0 %v8288_v44  ;;  %3042 = vmatprep.subr.bf16.mxu1 %v8290_v45  ;;  %v179_v18 = vld [vmem:[#allocation5 + $0x2a8] sm:$0xff]  ;;  %v8328_v21 = vcombine.high %v174_v15, %v178_v16  ;;  %v182_v23 = vld [vmem:[#allocation5 + $0x2c0] sm:$0xff]  ;;  %v8327_v27 = vcombine.low %v174_v15, %v178_v16 }
  0x73   :  { %v8330_v22 = vcombine.high %v175_v17, %v179_v18  ;;  %v186_v24 = vld [vmem:[#allocation5 + $0x2e0] sm:$0xff]  ;;  %v183_v25 = vld [vmem:[#allocation5 + $0x2c8] sm:$0xff]  ;;  %v8329_v28 = vcombine.low %v175_v17, %v179_v18  ;;  %v9506_v18 = vld [vmem:[#allocation2 + $0xc] ss:$28 sps:$4 sm:$0xff]  }
  0x74   :  { %v187_v26 = vld [vmem:[#allocation5 + $0x2e8] sm:$0xff]  ;;  %v8336_v29 = vcombine.high %v182_v23, %v186_v24  ;;  %v190_v31 = vld [vmem:[#allocation5 + $0x300] sm:$0xff]  ;;  %v8335_v35 = vcombine.low %v182_v23, %v186_v24 }
  0x75   :  { %2871 = vmatpush1.bf16.msra.mxu0 %v8287_v50  ;;  %3043 = vmatpush1.bf16.msra.mxu1 %v8289_v51  ;;  %v8338_v30 = vcombine.high %v183_v25, %v187_v26  ;;  %v194_v32 = vld [vmem:[#allocation5 + $0x320] sm:$0xff]  ;;  %v191_v33 = vld [vmem:[#allocation5 + $0x308] sm:$0xff]  ;;  %v8337_v36 = vcombine.low %v183_v25, %v187_v26 }
  0x76   :  { %2872 = vmatprep.subr.bf16.mxu0 %v8296_v52  ;;  %3044 = vmatprep.subr.bf16.mxu1 %v8298_v53  ;;  %v195_v34 = vld [vmem:[#allocation5 + $0x328] sm:$0xff]  ;;  %v8344_v37 = vcombine.high %v190_v31, %v194_v32  ;;  %v198_v39 = vld [vmem:[#allocation5 + $0x340] sm:$0xff]  ;;  %v8343_v43 = vcombine.low %v190_v31, %v194_v32 }
  0x77   :  { %v8346_v38 = vcombine.high %v191_v33, %v195_v34  ;;  %v202_v40 = vld [vmem:[#allocation5 + $0x360] sm:$0xff]  ;;  %v199_v41 = vld [vmem:[#allocation5 + $0x348] sm:$0xff]  ;;  %v8345_v44 = vcombine.low %v191_v33, %v195_v34 }
  0x78   :  { %v203_v42 = vld [vmem:[#allocation5 + $0x368] sm:$0xff]  ;;  %v8352_v45 = vcombine.high %v198_v39, %v202_v40  ;;  %v206_v47 = vld [vmem:[#allocation5 + $0x380] sm:$0xff]  ;;  %v8351_v51 = vcombine.low %v198_v39, %v202_v40 }
  0x79   :  { %2873 = vmatpush1.bf16.msra.mxu0 %v8295_v59  ;;  %3045 = vmatpush1.bf16.msra.mxu1 %v8297_v60  ;;  %v8354_v46 = vcombine.high %v199_v41, %v203_v42  ;;  %v210_v48 = vld [vmem:[#allocation5 + $0x3a0] sm:$0xff]  ;;  %v207_v49 = vld [vmem:[#allocation5 + $0x388] sm:$0xff]  ;;  %v8353_v52 = vcombine.low %v199_v41, %v203_v42 }
  0x7a   :  { %2874 = vmatprep.subr.bf16.mxu0 %v8304_v61  ;;  %3046 = vmatprep.subr.bf16.mxu1 %v8306_v62  ;;  %v211_v50 = vld [vmem:[#allocation5 + $0x3a8] sm:$0xff]  ;;  %v8360_v53 = vcombine.high %v206_v47, %v210_v48  ;;  %v214_v55 = vld [vmem:[#allocation5 + $0x3c0] sm:$0xff]  ;;  %v8359_v59 = vcombine.low %v206_v47, %v210_v48 }
  0x7b   :  { %v8362_v54 = vcombine.high %v207_v49, %v211_v50  ;;  %v218_v56 = vld [vmem:[#allocation5 + $0x3e0] sm:$0xff]  ;;  %v215_v57 = vld [vmem:[#allocation5 + $0x3c8] sm:$0xff]  ;;  %v8361_v60 = vcombine.low %v207_v49, %v211_v50 }
  0x7c   :  { %v219_v58 = vld [vmem:[#allocation5 + $0x3e8] sm:$0xff]  ;;  %v8368_v61 = vcombine.high %v214_v55, %v218_v56  ;;  %v222_v63 = vld [vmem:[#allocation5 + $0x400] sm:$0xff] }
  0x7d   :  { %2875 = vmatpush1.bf16.msra.mxu0 %v8303_v3  ;;  %3047 = vmatpush1.bf16.msra.mxu1 %v8305_v4  ;;  %v8370_v62 = vcombine.high %v215_v57, %v219_v58  ;;  %v226_v0 = vld [vmem:[#allocation5 + $0x420] sm:$0xff]  ;;  %v223_v1 = vld [vmem:[#allocation5 + $0x408] sm:$0xff]  ;;  %v8367_v3 = vcombine.low %v214_v55, %v218_v56  ;;  %v8369_v4 = vcombine.low %v215_v57, %v219_v58 }
  0x7e   :  { %2876 = vmatprep.subr.bf16.mxu0 %v8312_v5  ;;  %3048 = vmatprep.subr.bf16.mxu1 %v8314_v6  ;;  %v227_v2 = vld [vmem:[#allocation5 + $0x428] sm:$0xff]  ;;  %v8376_v5 = vcombine.high %v222_v63, %v226_v0  ;;  %v230_v7 = vld [vmem:[#allocation5 + $0x440] sm:$0xff] }
  0x7f   :  { %v8378_v6 = vcombine.high %v223_v1, %v227_v2  ;;  %v234_v8 = vld [vmem:[#allocation5 + $0x460] sm:$0xff]  ;;  %v231_v10 = vld [vmem:[#allocation5 + $0x448] sm:$0xff] }
  0x80   :  { %v9505_v9 = vld [vmem:[#allocation2] ss:$28 sps:$4 sm:$0xff]  }
  0x81   :  { %2877 = vmatpush1.bf16.msra.mxu0 %v8311_v11  ;;  %3049 = vmatpush1.bf16.msra.mxu1 %v8313_v12  ;;  %v235_v11 = vld [vmem:[#allocation5 + $0x468] sm:$0xff]  ;;  %v8375_v12 = vcombine.low %v222_v63, %v226_v0  ;;  %v238_v15 = vld [vmem:[#allocation5 + $0x480] sm:$0xff] }
  0x82   :  { %2878 = vmatprep.subr.bf16.mxu0 %v8320_v13  ;;  %3050 = vmatprep.subr.bf16.mxu1 %v8322_v14  ;;  %v8377_v13 = vcombine.low %v223_v1, %v227_v2  ;;  %v8384_v14 = vcombine.high %v230_v7, %v234_v8  ;;  %v8386_v16 = vcombine.high %v231_v10, %v235_v11  ;;  %v242_v17 = vld [vmem:[#allocation5 + $0x4a0] sm:$0xff]  ;;  %v255_v34 = vld [vmem:[#allocation5 + $0x508] sm:$0xff] }
  0x83   :  { %v8392_v23 = vcombine.high %v238_v15, %v242_v17  ;;  %v246_v24 = vld [vmem:[#allocation5 + $0x4c0] sm:$0xff]  ;;  %v263_v42 = vld [vmem:[#allocation5 + $0x548] sm:$0xff] }
  0x84   :  { %v250_v25 = vld [vmem:[#allocation5 + $0x4e0] sm:$0xff]  ;;  %v271_v50 = vld [vmem:[#allocation5 + $0x588] sm:$0xff] }
  0x85   :  { %2879 = vmatpush1.bf16.msra.mxu0 %v8319_v19  ;;  %3051 = vmatpush1.bf16.msra.mxu1 %v8321_v20  ;;  %v239_v19 = vld [vmem:[#allocation5 + $0x488] sm:$0xff]  ;;  %v8400_v31 = vcombine.high %v246_v24, %v250_v25  ;;  %v254_v32 = vld [vmem:[#allocation5 + $0x500] sm:$0xff] }
  0x86   :  { %2880 = vmatprep.subr.bf16.mxu0 %v8328_v21  ;;  %3052 = vmatprep.subr.bf16.mxu1 %v8330_v22  ;;  %v243_v20 = vld [vmem:[#allocation5 + $0x4a8] sm:$0xff]  ;;  %v8383_v21 = vcombine.low %v230_v7, %v234_v8  ;;  %v8385_v22 = vcombine.low %v231_v10, %v235_v11  ;;  %v258_v33 = vld [vmem:[#allocation5 + $0x520] sm:$0xff] }
  0x87   :  { %v8394_v26 = vcombine.high %v239_v19, %v243_v20  ;;  %v8408_v39 = vcombine.high %v254_v32, %v258_v33  ;;  %v262_v40 = vld [vmem:[#allocation5 + $0x540] sm:$0xff]  ;;  %v279_v58 = vld [vmem:[#allocation5 + $0x5c8] sm:$0xff] }
  0x88   :  { %v266_v41 = vld [vmem:[#allocation5 + $0x560] sm:$0xff]  ;;  %v287_v2 = vld [vmem:[#allocation5 + $0x608] sm:$0xff] }
  0x89   :  { %2881 = vmatpush1.bf16.msra.mxu0 %v8327_v27  ;;  %3053 = vmatpush1.bf16.msra.mxu1 %v8329_v28  ;;  %v247_v27 = vld [vmem:[#allocation5 + $0x4c8] sm:$0xff]  ;;  %v8416_v47 = vcombine.high %v262_v40, %v266_v41  ;;  %v270_v48 = vld [vmem:[#allocation5 + $0x580] sm:$0xff] }
  0x8a   :  { %2882 = vmatprep.subr.bf16.mxu0 %v8336_v29  ;;  %3054 = vmatprep.subr.bf16.mxu1 %v8338_v30  ;;  %v251_v28 = vld [vmem:[#allocation5 + $0x4e8] sm:$0xff]  ;;  %v8391_v29 = vcombine.low %v238_v15, %v242_v17  ;;  %v8393_v30 = vcombine.low %v239_v19, %v243_v20  ;;  %v274_v49 = vld [vmem:[#allocation5 + $0x5a0] sm:$0xff] }
  0x8b   :  { %v8424_v55 = vcombine.high %v270_v48, %v274_v49  ;;  %v278_v56 = vld [vmem:[#allocation5 + $0x5c0] sm:$0xff]  ;;  %v295_v10 = vld [vmem:[#allocation5 + $0x648] sm:$0xff] }
  0x8c   :  { %v282_v57 = vld [vmem:[#allocation5 + $0x5e0] sm:$0xff]  ;;  %v303_v19 = vld [vmem:[#allocation5 + $0x688] sm:$0xff] }
  0x8d   :  { %2883 = vmatpush1.bf16.msra.mxu0 %v8335_v35  ;;  %3055 = vmatpush1.bf16.msra.mxu1 %v8337_v36  ;;  %v8402_v35 = vcombine.high %v247_v27, %v251_v28  ;;  %v259_v36 = vld [vmem:[#allocation5 + $0x528] sm:$0xff]  ;;  %v8432_v63 = vcombine.high %v278_v56, %v282_v57  ;;  %v286_v0 = vld [vmem:[#allocation5 + $0x600] sm:$0xff] }
  0x8e   :  { %2884 = vmatprep.subr.bf16.mxu0 %v8344_v37  ;;  %3056 = vmatprep.subr.bf16.mxu1 %v8346_v38  ;;  %v8399_v37 = vcombine.low %v246_v24, %v250_v25  ;;  %v8401_v38 = vcombine.low %v247_v27, %v251_v28  ;;  %v290_v1 = vld [vmem:[#allocation5 + $0x620] sm:$0xff]  ;;  %v307_v20 = vld [vmem:[#allocation5 + $0x6a8] sm:$0xff] }
  0x8f   :  { %v8440_v7 = vcombine.high %v286_v0, %v290_v1  ;;  %v294_v8 = vld [vmem:[#allocation5 + $0x640] sm:$0xff]  ;;  %v8458_v27 = vcombine.high %v303_v19, %v307_v20  ;;  %v315_v28 = vld [vmem:[#allocation5 + $0x6e8] sm:$0xff] }
  0x90   :  { %v306_v17 = vld [vmem:[#allocation5 + $0x6a0] sm:$0xff] }
  0x91   :  { %2885 = vmatpush1.bf16.msra.mxu0 %v8343_v43  ;;  %3057 = vmatpush1.bf16.msra.mxu1 %v8345_v44  ;;  %v8410_v43 = vcombine.high %v255_v34, %v259_v36  ;;  %v267_v44 = vld [vmem:[#allocation5 + $0x568] sm:$0xff]  ;;  %v310_v24 = vld [vmem:[#allocation5 + $0x6c0] sm:$0xff] }
  0x92   :  { %2886 = vmatprep.subr.bf16.mxu0 %v8352_v45  ;;  %3058 = vmatprep.subr.bf16.mxu1 %v8354_v46  ;;  %v8407_v45 = vcombine.low %v254_v32, %v258_v33  ;;  %v8409_v46 = vcombine.low %v255_v34, %v259_v36  ;;  %v314_v25 = vld [vmem:[#allocation5 + $0x6e0] sm:$0xff]  ;;  %v319_v34 = vld [vmem:[#allocation5 + $0x708] sm:$0xff] }
  0x93   :  { %v318_v32 = vld [vmem:[#allocation5 + $0x700] sm:$0xff]  ;;  %v323_v36 = vld [vmem:[#allocation5 + $0x728] sm:$0xff] }
  0x94   :  { %v322_v33 = vld [vmem:[#allocation5 + $0x720] sm:$0xff] }
  0x95   :  { %2887 = vmatpush1.bf16.msra.mxu0 %v8351_v51  ;;  %3059 = vmatpush1.bf16.msra.mxu1 %v8353_v52  ;;  %v8418_v51 = vcombine.high %v263_v42, %v267_v44  ;;  %v275_v52 = vld [vmem:[#allocation5 + $0x5a8] sm:$0xff] }
  0x96   :  { %2888 = vmatprep.subr.bf16.mxu0 %v8360_v53  ;;  %3060 = vmatprep.subr.bf16.mxu1 %v8362_v54  ;;  %v8415_v53 = vcombine.low %v262_v40, %v266_v41  ;;  %v8417_v54 = vcombine.low %v263_v42, %v267_v44  ;;  %v326_v40 = vld [vmem:[#allocation5 + $0x740] sm:$0xff]  ;;  %v327_v42 = vld [vmem:[#allocation5 + $0x748] sm:$0xff] }
  0x97   :  { %v330_v41 = vld [vmem:[#allocation5 + $0x760] sm:$0xff]  ;;  %v331_v44 = vld [vmem:[#allocation5 + $0x768] sm:$0xff] }
  0x99   :  { %2889 = vmatpush1.bf16.msra.mxu0 %v8359_v59  ;;  %3061 = vmatpush1.bf16.msra.mxu1 %v8361_v60  ;;  %v8426_v59 = vcombine.high %v271_v50, %v275_v52  ;;  %v283_v60 = vld [vmem:[#allocation5 + $0x5e8] sm:$0xff] }
  0x9a   :  { %2890 = vmatprep.subr.bf16.mxu0 %v8368_v61  ;;  %3062 = vmatprep.subr.bf16.mxu1 %v8370_v62  ;;  %v8423_v61 = vcombine.low %v270_v48, %v274_v49  ;;  %v8425_v62 = vcombine.low %v271_v50, %v275_v52  ;;  %v334_v48 = vld [vmem:[#allocation5 + $0x780] sm:$0xff]  ;;  %v335_v50 = vld [vmem:[#allocation5 + $0x788] sm:$0xff] }
  0x9b   :  { %v338_v49 = vld [vmem:[#allocation5 + $0x7a0] sm:$0xff]  ;;  %v339_v52 = vld [vmem:[#allocation5 + $0x7a8] sm:$0xff] }
  0x9d   :  { %2891 = vmatpush1.bf16.msra.mxu0 %v8367_v3  ;;  %3063 = vmatpush1.bf16.msra.mxu1 %v8369_v4  ;;  %v8434_v3 = vcombine.high %v279_v58, %v283_v60  ;;  %v291_v4 = vld [vmem:[#allocation5 + $0x628] sm:$0xff] }
  0x9e   :  { %2903 = vmatprep.subr.bf16.mxu0 %v8376_v5  ;;  %3075 = vmatprep.subr.bf16.mxu1 %v8378_v6  ;;  %v8431_v5 = vcombine.low %v278_v56, %v282_v57  ;;  %v8433_v6 = vcombine.low %v279_v58, %v283_v60  ;;  %v8442_v11 = vcombine.high %v287_v2, %v291_v4  ;;  %v342_v56 = vld [vmem:[#allocation5 + $0x7c0] sm:$0xff]  ;;  %v343_v58 = vld [vmem:[#allocation5 + $0x7c8] sm:$0xff] }
  0x9f   :  { %v346_v57 = vld [vmem:[#allocation5 + $0x7e0] sm:$0xff]  ;;  %v347_v60 = vld [vmem:[#allocation5 + $0x7e8] sm:$0xff] }
  0xa0   :  { %2893 = vmatmul.mubr.bf16.vlgmr.msra.gmra.mrb[0].mxu0 %v9505_v9  ;;  %3065 = vmatmul.mubr.bf16.vlgmr.msra.gmra.mrb[0].mxu1 %v9505_v9  ;;  %v298_v9 = vld [vmem:[#allocation5 + $0x660] sm:$0xff] }
  0xa1   :  { %2904 = vmatpush1.bf16.msra.mxu0 %v8375_v12  ;;  %3076 = vmatpush1.bf16.msra.mxu1 %v8377_v13  ;;  %v299_v12 = vld [vmem:[#allocation5 + $0x668] sm:$0xff]  ;;  %v8439_v13 = vcombine.low %v286_v0, %v290_v1  ;;  %v8448_v15 = vcombine.high %v294_v8, %v298_v9  ;;  %v350_v0 = vld [vmem:[#allocation5 + $0x800] sm:$0xff] }
  0xa2   :  { %2905 = vmatprep.subr.bf16.mxu0 %v8384_v14  ;;  %3077 = vmatprep.subr.bf16.mxu1 %v8386_v16  ;;  %v8441_v14 = vcombine.low %v287_v2, %v291_v4  ;;  %v302_v16 = vld [vmem:[#allocation5 + $0x680] sm:$0xff]  ;;  %v351_v2 = vld [vmem:[#allocation5 + $0x808] sm:$0xff] }
  0xa3   :  { %2935 = vmatprep.mubr.bf16.mxu0 %v9506_v18  ;;  %3107 = vmatprep.mubr.bf16.mxu1 %v9506_v18  ;;  %v8450_v18 = vcombine.high %v295_v10, %v299_v12  ;;  %v354_v1 = vld [vmem:[#allocation5 + $0x820] sm:$0xff]  ;;  %v355_v4 = vld [vmem:[#allocation5 + $0x828] sm:$0xff] }
  0xa5   :  { %2906 = vmatpush1.bf16.msra.mxu0 %v8383_v21  ;;  %3078 = vmatpush1.bf16.msra.mxu1 %v8385_v22  ;;  %v8447_v21 = vcombine.low %v294_v8, %v298_v9  ;;  %v8449_v22 = vcombine.low %v295_v10, %v299_v12  ;;  %v9508_v8 = vld [vmem:[#allocation2 + $0x8] ss:$28 sps:$4 sm:$0xff]   ;;  %v358_v9 = vld [vmem:[#allocation5 + $0x840] sm:$0xff]  ;;  %v8506_v12 = vcombine.high %v351_v2, %v355_v4 }
  0xa6   :  { %2907 = vmatprep.subr.bf16.mxu0 %v8392_v23  ;;  %3079 = vmatprep.subr.bf16.mxu1 %v8394_v26  ;;  %v8456_v23 = vcombine.high %v302_v16, %v306_v17  ;;  %v311_v26 = vld [vmem:[#allocation5 + $0x6c8] sm:$0xff]  ;;  %v362_v10 = vld [vmem:[#allocation5 + $0x860] sm:$0xff] }
  0xa9   :  { %2908 = vmatpush1.bf16.msra.mxu0 %v8391_v29  ;;  %3080 = vmatpush1.bf16.msra.mxu1 %v8393_v30  ;;  %v8455_v29 = vcombine.low %v302_v16, %v306_v17  ;;  %v8457_v30 = vcombine.low %v303_v19, %v307_v20  ;;  %v8505_v16 = vcombine.low %v351_v2, %v355_v4  ;;  %v367_v19 = vld [vmem:[#allocation5 + $0x888] sm:$0xff]  ;;  %v414_v2 = vld [vmem:[#allocation5 + $0xa00] sm:$0xff] }
  0xaa   :  { %2909 = vmatprep.subr.bf16.mxu0 %v8400_v31  ;;  %3081 = vmatprep.subr.bf16.mxu1 %v8402_v35  ;;  %v8464_v31 = vcombine.high %v310_v24, %v314_v25  ;;  %v8466_v35 = vcombine.high %v311_v26, %v315_v28  ;;  %v8512_v17 = vcombine.high %v358_v9, %v362_v10  ;;  %v371_v20 = vld [vmem:[#allocation5 + $0x8a8] sm:$0xff] }
  0xab   :  { %v415_v4 = vld [vmem:[#allocation5 + $0xa08] sm:$0xff] }
  0xad   :  { %2910 = vmatpush1.bf16.msra.mxu0 %v8399_v37  ;;  %3082 = vmatpush1.bf16.msra.mxu1 %v8401_v38  ;;  %v8463_v37 = vcombine.low %v310_v24, %v314_v25  ;;  %v8465_v38 = vcombine.low %v311_v26, %v315_v28  ;;  %v374_v26 = vld [vmem:[#allocation5 + $0x8c0] sm:$0xff]  ;;  %v375_v28 = vld [vmem:[#allocation5 + $0x8c8] sm:$0xff] }
  0xae   :  { %2911 = vmatprep.subr.bf16.mxu0 %v8408_v39  ;;  %3083 = vmatprep.subr.bf16.mxu1 %v8410_v43  ;;  %v8472_v39 = vcombine.high %v318_v32, %v322_v33  ;;  %v8474_v43 = vcombine.high %v319_v34, %v323_v36 }
  0xb1   :  { %2912 = vmatpush1.bf16.msra.mxu0 %v8407_v45  ;;  %3084 = vmatpush1.bf16.msra.mxu1 %v8409_v46  ;;  %v8471_v45 = vcombine.low %v318_v32, %v322_v33  ;;  %v8473_v46 = vcombine.low %v319_v34, %v323_v36  ;;  %v8521_v32 = vcombine.low %v367_v19, %v371_v20  ;;  %v382_v34 = vld [vmem:[#allocation5 + $0x900] sm:$0xff]  ;;  %v383_v36 = vld [vmem:[#allocation5 + $0x908] sm:$0xff] }
  0xb2   :  { %2913 = vmatprep.subr.bf16.mxu0 %v8416_v47  ;;  %3085 = vmatprep.subr.bf16.mxu1 %v8418_v51  ;;  %v8480_v47 = vcombine.high %v326_v40, %v330_v41  ;;  %v8482_v51 = vcombine.high %v327_v42, %v331_v44 }
  0xb5   :  { %2914 = vmatpush1.bf16.msra.mxu0 %v8415_v53  ;;  %3086 = vmatpush1.bf16.msra.mxu1 %v8417_v54  ;;  %v8479_v53 = vcombine.low %v326_v40, %v330_v41  ;;  %v8481_v54 = vcombine.low %v327_v42, %v331_v44  ;;  %v390_v42 = vld [vmem:[#allocation5 + $0x940] sm:$0xff]  ;;  %v391_v44 = vld [vmem:[#allocation5 + $0x948] sm:$0xff] }
  0xb6   :  { %2915 = vmatprep.subr.bf16.mxu0 %v8424_v55  ;;  %3087 = vmatprep.subr.bf16.mxu1 %v8426_v59  ;;  %v8488_v55 = vcombine.high %v334_v48, %v338_v49  ;;  %v8490_v59 = vcombine.high %v335_v50, %v339_v52 }
  0xb9   :  { %2916 = vmatpush1.bf16.msra.mxu0 %v8423_v61  ;;  %3088 = vmatpush1.bf16.msra.mxu1 %v8425_v62  ;;  %v8487_v61 = vcombine.low %v334_v48, %v338_v49  ;;  %v8489_v62 = vcombine.low %v335_v50, %v339_v52  ;;  %v398_v50 = vld [vmem:[#allocation5 + $0x980] sm:$0xff]  ;;  %v399_v52 = vld [vmem:[#allocation5 + $0x988] sm:$0xff] }
  0xba   :  { %2917 = vmatprep.subr.bf16.mxu0 %v8432_v63  ;;  %3089 = vmatprep.subr.bf16.mxu1 %v8434_v3  ;;  %v8496_v63 = vcombine.high %v342_v56, %v346_v57  ;;  %v8498_v3 = vcombine.high %v343_v58, %v347_v60 }
  0xbd   :  { %2918 = vmatpush1.bf16.msra.mxu0 %v8431_v5  ;;  %3090 = vmatpush1.bf16.msra.mxu1 %v8433_v6  ;;  %v8495_v5 = vcombine.low %v342_v56, %v346_v57  ;;  %v8497_v6 = vcombine.low %v343_v58, %v347_v60  ;;  %v406_v58 = vld [vmem:[#allocation5 + $0x9c0] sm:$0xff]  ;;  %v407_v60 = vld [vmem:[#allocation5 + $0x9c8] sm:$0xff] }
  0xbe   :  { %2919 = vmatprep.subr.bf16.mxu0 %v8440_v7  ;;  %3091 = vmatprep.subr.bf16.mxu1 %v8442_v11  ;;  %v8504_v7 = vcombine.high %v350_v0, %v354_v1  ;;  %v359_v11 = vld [vmem:[#allocation5 + $0x848] sm:$0xff] }
  0xc1   :  { %2920 = vmatpush1.bf16.msra.mxu0 %v8439_v13  ;;  %3092 = vmatpush1.bf16.msra.mxu1 %v8441_v14  ;;  %v363_v13 = vld [vmem:[#allocation5 + $0x868] sm:$0xff]  ;;  %v8503_v14 = vcombine.low %v350_v0, %v354_v1 }
  0xc2   :  { %2921 = vmatprep.subr.bf16.mxu0 %v8448_v15  ;;  %3093 = vmatprep.subr.bf16.mxu1 %v8450_v18  ;;  %v366_v15 = vld [vmem:[#allocation5 + $0x880] sm:$0xff]  ;;  %v8513_v24 = vcombine.low %v359_v11, %v363_v13 }
  0xc3   :  { %v370_v18 = vld [vmem:[#allocation5 + $0x8a0] sm:$0xff] }
  0xc4   :  { %v8520_v25 = vcombine.high %v366_v15, %v370_v18 }
  0xc5   :  { %2922 = vmatpush1.bf16.msra.mxu0 %v8447_v21  ;;  %3094 = vmatpush1.bf16.msra.mxu1 %v8449_v22  ;;  %v8514_v21 = vcombine.high %v359_v11, %v363_v13  ;;  %v9509_v22 = vld [vmem:[#allocation2 + $0x14] ss:$28 sps:$4 sm:$0xff]   ;;  %v426_v11 = vld [vmem:[#allocation5 + $0xa60] sm:$0xff] }
  0xc6   :  { %2923 = vmatprep.subr.bf16.mxu0 %v8456_v23  ;;  %3095 = vmatprep.subr.bf16.mxu1 %v8458_v27  ;;  %v8511_v23 = vcombine.low %v358_v9, %v362_v10  ;;  %v378_v27 = vld [vmem:[#allocation5 + $0x8e0] sm:$0xff] }
  0xc7   :  { %v8528_v33 = vcombine.high %v374_v26, %v378_v27  ;;  %v422_v10 = vld [vmem:[#allocation5 + $0xa40] sm:$0xff] }
  0xc9   :  { %2924 = vmatpush1.bf16.msra.mxu0 %v8455_v29  ;;  %3096 = vmatpush1.bf16.msra.mxu1 %v8457_v30  ;;  %v8522_v29 = vcombine.high %v367_v19, %v371_v20  ;;  %v379_v30 = vld [vmem:[#allocation5 + $0x8e8] sm:$0xff]  ;;  %v434_v19 = vld [vmem:[#allocation5 + $0xaa0] sm:$0xff] }
  0xca   :  { %2925 = vmatprep.subr.bf16.mxu0 %v8464_v31  ;;  %3097 = vmatprep.subr.bf16.mxu1 %v8466_v35  ;;  %v8519_v31 = vcombine.low %v366_v15, %v370_v18  ;;  %v386_v35 = vld [vmem:[#allocation5 + $0x920] sm:$0xff]  ;;  %v8529_v40 = vcombine.low %v375_v28, %v379_v30  ;;  %v431_v20 = vld [vmem:[#allocation5 + $0xa88] sm:$0xff] }
  0xcb   :  { %v8536_v41 = vcombine.high %v382_v34, %v386_v35  ;;  %v430_v18 = vld [vmem:[#allocation5 + $0xa80] sm:$0xff] }
  0xcd   :  { %2926 = vmatpush1.bf16.msra.mxu0 %v8463_v37  ;;  %3098 = vmatpush1.bf16.msra.mxu1 %v8465_v38  ;;  %v8530_v37 = vcombine.high %v375_v28, %v379_v30  ;;  %v387_v38 = vld [vmem:[#allocation5 + $0x928] sm:$0xff] }
  0xce   :  { %2927 = vmatprep.subr.bf16.mxu0 %v8472_v39  ;;  %3099 = vmatprep.subr.bf16.mxu1 %v8474_v43  ;;  %v8527_v39 = vcombine.low %v374_v26, %v378_v27  ;;  %v394_v43 = vld [vmem:[#allocation5 + $0x960] sm:$0xff]  ;;  %v8537_v48 = vcombine.low %v383_v36, %v387_v38  ;;  %v439_v28 = vld [vmem:[#allocation5 + $0xac8] sm:$0xff] }
  0xcf   :  { %v8544_v49 = vcombine.high %v390_v42, %v394_v43  ;;  %v438_v26 = vld [vmem:[#allocation5 + $0xac0] sm:$0xff]  ;;  %v443_v30 = vld [vmem:[#allocation5 + $0xae8] sm:$0xff] }
  0xd0   :  { %v442_v27 = vld [vmem:[#allocation5 + $0xae0] sm:$0xff] }
  0xd1   :  { %2928 = vmatpush1.bf16.msra.mxu0 %v8471_v45  ;;  %3100 = vmatpush1.bf16.msra.mxu1 %v8473_v46  ;;  %v8538_v45 = vcombine.high %v383_v36, %v387_v38  ;;  %v395_v46 = vld [vmem:[#allocation5 + $0x968] sm:$0xff] }
  0xd2   :  { %2929 = vmatprep.subr.bf16.mxu0 %v8480_v47  ;;  %3101 = vmatprep.subr.bf16.mxu1 %v8482_v51  ;;  %v8535_v47 = vcombine.low %v382_v34, %v386_v35  ;;  %v402_v51 = vld [vmem:[#allocation5 + $0x9a0] sm:$0xff]  ;;  %v8545_v56 = vcombine.low %v391_v44, %v395_v46  ;;  %v447_v36 = vld [vmem:[#allocation5 + $0xb08] sm:$0xff] }
  0xd3   :  { %v8552_v57 = vcombine.high %v398_v50, %v402_v51  ;;  %v446_v34 = vld [vmem:[#allocation5 + $0xb00] sm:$0xff]  ;;  %v451_v38 = vld [vmem:[#allocation5 + $0xb28] sm:$0xff] }
  0xd4   :  { %v450_v35 = vld [vmem:[#allocation5 + $0xb20] sm:$0xff] }
  0xd5   :  { %2930 = vmatpush1.bf16.msra.mxu0 %v8479_v53  ;;  %3102 = vmatpush1.bf16.msra.mxu1 %v8481_v54  ;;  %v8546_v53 = vcombine.high %v391_v44, %v395_v46  ;;  %v403_v54 = vld [vmem:[#allocation5 + $0x9a8] sm:$0xff] }
  0xd6   :  { %2931 = vmatprep.subr.bf16.mxu0 %v8488_v55  ;;  %3103 = vmatprep.subr.bf16.mxu1 %v8490_v59  ;;  %v8543_v55 = vcombine.low %v390_v42, %v394_v43  ;;  %v410_v59 = vld [vmem:[#allocation5 + $0x9e0] sm:$0xff]  ;;  %v8553_v0 = vcombine.low %v399_v52, %v403_v54  ;;  %v455_v44 = vld [vmem:[#allocation5 + $0xb48] sm:$0xff] }
  0xd7   :  { %v8560_v1 = vcombine.high %v406_v58, %v410_v59  ;;  %v454_v42 = vld [vmem:[#allocation5 + $0xb40] sm:$0xff]  ;;  %v459_v46 = vld [vmem:[#allocation5 + $0xb68] sm:$0xff] }
  0xd8   :  { %v458_v43 = vld [vmem:[#allocation5 + $0xb60] sm:$0xff] }
  0xd9   :  { %2932 = vmatpush1.bf16.msra.mxu0 %v8487_v61  ;;  %3104 = vmatpush1.bf16.msra.mxu1 %v8489_v62  ;;  %v8554_v61 = vcombine.high %v399_v52, %v403_v54  ;;  %v411_v62 = vld [vmem:[#allocation5 + $0x9e8] sm:$0xff] }
  0xda   :  { %2933 = vmatprep.subr.bf16.mxu0 %v8496_v63  ;;  %3105 = vmatprep.subr.bf16.mxu1 %v8498_v3  ;;  %v8551_v63 = vcombine.low %v398_v50, %v402_v51  ;;  %v418_v3 = vld [vmem:[#allocation5 + $0xa20] sm:$0xff]  ;;  %v463_v52 = vld [vmem:[#allocation5 + $0xb88] sm:$0xff] }
  0xdb   :  { %v8568_v9 = vcombine.high %v414_v2, %v418_v3  ;;  %v8567_v15 = vcombine.low %v414_v2, %v418_v3  ;;  %v462_v50 = vld [vmem:[#allocation5 + $0xb80] sm:$0xff]  ;;  %v467_v54 = vld [vmem:[#allocation5 + $0xba8] sm:$0xff] }
  0xdc   :  { %v466_v51 = vld [vmem:[#allocation5 + $0xba0] sm:$0xff] }
  0xdd   :  { %2934 = vmatpush1.bf16.msra.mxu0 %v8495_v5  ;;  %3106 = vmatpush1.bf16.msra.mxu1 %v8497_v6  ;;  %v8562_v5 = vcombine.high %v407_v60, %v411_v62  ;;  %v419_v6 = vld [vmem:[#allocation5 + $0xa28] sm:$0xff]  ;;  %v478_v2 = vld [vmem:[#allocation5 + $0xc00] sm:$0xff] }
  0xde   :  { %2946 = vmatprep.subr.bf16.mxu0 %v8504_v7  ;;  %3118 = vmatprep.subr.bf16.mxu1 %v8506_v12  ;;  %v8559_v7 = vcombine.low %v406_v58, %v410_v59  ;;  %v423_v12 = vld [vmem:[#allocation5 + $0xa48] sm:$0xff]  ;;  %v8570_v13 = vcombine.high %v415_v4, %v419_v6  ;;  %v470_v58 = vld [vmem:[#allocation5 + $0xbc0] sm:$0xff] }
  0xdf   :  { %v474_v59 = vld [vmem:[#allocation5 + $0xbe0] sm:$0xff] }
  0xe0   :  { %2936 = vmatmul.mubr.bf16.vlgmr.msra.gmra.mrb[0].mxu0 %v9508_v8  ;;  %3108 = vmatmul.mubr.bf16.vlgmr.msra.gmra.mrb[0].mxu1 %v9508_v8  ;;  %v8561_v8 = vcombine.low %v407_v60, %v411_v62  ;;  %v471_v60 = vld [vmem:[#allocation5 + $0xbc8] sm:$0xff]  ;;  %v482_v3 = vld [vmem:[#allocation5 + $0xc20] sm:$0xff] }
  0xe1   :  { %2947 = vmatpush1.bf16.msra.mxu0 %v8503_v14  ;;  %3119 = vmatpush1.bf16.msra.mxu1 %v8505_v16  ;;  %v427_v14 = vld [vmem:[#allocation5 + $0xa68] sm:$0xff]  ;;  %v8569_v16 = vcombine.low %v415_v4, %v419_v6 }
  0xe2   :  { %2948 = vmatprep.subr.bf16.mxu0 %v8512_v17  ;;  %3120 = vmatprep.subr.bf16.mxu1 %v8514_v21  ;;  %v8576_v17 = vcombine.high %v422_v10, %v426_v11  ;;  %v8578_v21 = vcombine.high %v423_v12, %v427_v14  ;;  %v475_v62 = vld [vmem:[#allocation5 + $0xbe8] sm:$0xff] }
  0xe3   :  { %2978 = vmatprep.mubr.bf16.mxu0 %v9509_v22  ;;  %3150 = vmatprep.mubr.bf16.mxu1 %v9509_v22  ;;  %v435_v22 = vld [vmem:[#allocation5 + $0xaa8] sm:$0xff] }
  0xe4   :  { %v479_v4 = vld [vmem:[#allocation5 + $0xc08] sm:$0xff] }
  0xe5   :  { %2949 = vmatpush1.bf16.msra.mxu0 %v8511_v23  ;;  %3121 = vmatpush1.bf16.msra.mxu1 %v8513_v24  ;;  %v8575_v23 = vcombine.low %v422_v10, %v426_v11  ;;  %v8577_v24 = vcombine.low %v423_v12, %v427_v14  ;;  %v483_v6 = vld [vmem:[#allocation5 + $0xc28] sm:$0xff]  ;;  %v9511_v10 = vld [vmem:[#allocation2 + $0x10] ss:$28 sps:$4 sm:$0xff]   ;;  %v486_v11 = vld [vmem:[#allocation5 + $0xc40] sm:$0xff] }
  0xe6   :  { %2950 = vmatprep.subr.bf16.mxu0 %v8520_v25  ;;  %3122 = vmatprep.subr.bf16.mxu1 %v8522_v29  ;;  %v8584_v25 = vcombine.high %v430_v18, %v434_v19  ;;  %v8586_v29 = vcombine.high %v431_v20, %v435_v22  ;;  %v490_v12 = vld [vmem:[#allocation5 + $0xc60] sm:$0xff]  ;;  %v8634_v14 = vcombine.high %v479_v4, %v483_v6 }
  0xe9   :  { %2951 = vmatpush1.bf16.msra.mxu0 %v8519_v31  ;;  %3123 = vmatpush1.bf16.msra.mxu1 %v8521_v32  ;;  %v8583_v31 = vcombine.low %v430_v18, %v434_v19  ;;  %v8585_v32 = vcombine.low %v431_v20, %v435_v22  ;;  %v8640_v18 = vcombine.high %v486_v11, %v490_v12  ;;  %v494_v19 = vld [vmem:[#allocation5 + $0xc80] sm:$0xff] }
  0xea   :  { %2952 = vmatprep.subr.bf16.mxu0 %v8528_v33  ;;  %3124 = vmatprep.subr.bf16.mxu1 %v8530_v37  ;;  %v8592_v33 = vcombine.high %v438_v26, %v442_v27  ;;  %v8594_v37 = vcombine.high %v439_v28, %v443_v30  ;;  %v498_v20 = vld [vmem:[#allocation5 + $0xca0] sm:$0xff] }
  0xed   :  { %2953 = vmatpush1.bf16.msra.mxu0 %v8527_v39  ;;  %3125 = vmatpush1.bf16.msra.mxu1 %v8529_v40  ;;  %v8591_v39 = vcombine.low %v438_v26, %v442_v27  ;;  %v8593_v40 = vcombine.low %v439_v28, %v443_v30  ;;  %v8648_v26 = vcombine.high %v494_v19, %v498_v20  ;;  %v502_v27 = vld [vmem:[#allocation5 + $0xcc0] sm:$0xff] }
  0xee   :  { %2954 = vmatprep.subr.bf16.mxu0 %v8536_v41  ;;  %3126 = vmatprep.subr.bf16.mxu1 %v8538_v45  ;;  %v8600_v41 = vcombine.high %v446_v34, %v450_v35  ;;  %v8602_v45 = vcombine.high %v447_v36, %v451_v38  ;;  %v506_v28 = vld [vmem:[#allocation5 + $0xce0] sm:$0xff] }
  0xf1   :  { %2955 = vmatpush1.bf16.msra.mxu0 %v8535_v47  ;;  %3127 = vmatpush1.bf16.msra.mxu1 %v8537_v48  ;;  %v8599_v47 = vcombine.low %v446_v34, %v450_v35  ;;  %v8601_v48 = vcombine.low %v447_v36, %v451_v38  ;;  %v8656_v35 = vcombine.high %v502_v27, %v506_v28  ;;  %v510_v36 = vld [vmem:[#allocation5 + $0xd00] sm:$0xff]  ;;  %v511_v38 = vld [vmem:[#allocation5 + $0xd08] sm:$0xff] }
  0xf2   :  { %2956 = vmatprep.subr.bf16.mxu0 %v8544_v49  ;;  %3128 = vmatprep.subr.bf16.mxu1 %v8546_v53  ;;  %v8608_v49 = vcombine.high %v454_v42, %v458_v43  ;;  %v8610_v53 = vcombine.high %v455_v44, %v459_v46 }
  0xf5   :  { %2957 = vmatpush1.bf16.msra.mxu0 %v8543_v55  ;;  %3129 = vmatpush1.bf16.msra.mxu1 %v8545_v56  ;;  %v8607_v55 = vcombine.low %v454_v42, %v458_v43  ;;  %v8609_v56 = vcombine.low %v455_v44, %v459_v46  ;;  %v518_v44 = vld [vmem:[#allocation5 + $0xd40] sm:$0xff]  ;;  %v519_v46 = vld [vmem:[#allocation5 + $0xd48] sm:$0xff] }
  0xf6   :  { %2958 = vmatprep.subr.bf16.mxu0 %v8552_v57  ;;  %3130 = vmatprep.subr.bf16.mxu1 %v8554_v61  ;;  %v8616_v57 = vcombine.high %v462_v50, %v466_v51  ;;  %v8618_v61 = vcombine.high %v463_v52, %v467_v54 }
  0xf9   :  { %2959 = vmatpush1.bf16.msra.mxu0 %v8551_v63  ;;  %3131 = vmatpush1.bf16.msra.mxu1 %v8553_v0  ;;  %v8615_v63 = vcombine.low %v462_v50, %v466_v51  ;;  %v8617_v0 = vcombine.low %v463_v52, %v467_v54  ;;  %v526_v52 = vld [vmem:[#allocation5 + $0xd80] sm:$0xff]  ;;  %v527_v54 = vld [vmem:[#allocation5 + $0xd88] sm:$0xff] }
  0xfa   :  { %2960 = vmatprep.subr.bf16.mxu0 %v8560_v1  ;;  %3132 = vmatprep.subr.bf16.mxu1 %v8562_v5  ;;  %v8624_v1 = vcombine.high %v470_v58, %v474_v59  ;;  %v8626_v5 = vcombine.high %v471_v60, %v475_v62 }
  0xfd   :  { %2961 = vmatpush1.bf16.msra.mxu0 %v8559_v7  ;;  %3133 = vmatpush1.bf16.msra.mxu1 %v8561_v8  ;;  %v8623_v7 = vcombine.low %v470_v58, %v474_v59  ;;  %v8625_v8 = vcombine.low %v471_v60, %v475_v62  ;;  %v534_v60 = vld [vmem:[#allocation5 + $0xdc0] sm:$0xff]  ;;  %v535_v62 = vld [vmem:[#allocation5 + $0xdc8] sm:$0xff] }
  0xfe   :  { %2962 = vmatprep.subr.bf16.mxu0 %v8568_v9  ;;  %3134 = vmatprep.subr.bf16.mxu1 %v8570_v13  ;;  %v8632_v9 = vcombine.high %v478_v2, %v482_v3  ;;  %v487_v13 = vld [vmem:[#allocation5 + $0xc48] sm:$0xff] }
 0x101   :  { %2963 = vmatpush1.bf16.msra.mxu0 %v8567_v15  ;;  %3135 = vmatpush1.bf16.msra.mxu1 %v8569_v16  ;;  %v491_v15 = vld [vmem:[#allocation5 + $0xc68] sm:$0xff]  ;;  %v8631_v16 = vcombine.low %v478_v2, %v482_v3 }
 0x102   :  { %2964 = vmatprep.subr.bf16.mxu0 %v8576_v17  ;;  %3136 = vmatprep.subr.bf16.mxu1 %v8578_v21  ;;  %v8633_v17 = vcombine.low %v479_v4, %v483_v6  ;;  %v495_v21 = vld [vmem:[#allocation5 + $0xc88] sm:$0xff]  ;;  %v8642_v22 = vcombine.high %v487_v13, %v491_v15  ;;  %v96_v4 = vld [vmem:[#allocation5 + $0x10] sm:$0xff]  ;;  %v97_v6 = vld [vmem:[#allocation5 + $0x18] sm:$0xff] }
 0x105   :  { %2965 = vmatpush1.bf16.msra.mxu0 %v8575_v23  ;;  %3137 = vmatpush1.bf16.msra.mxu1 %v8577_v24  ;;  %v499_v23 = vld [vmem:[#allocation5 + $0xca8] sm:$0xff]  ;;  %v8639_v24 = vcombine.low %v486_v11, %v490_v12  ;;  %v9512_v11 = vld [vmem:[#allocation2 + $0x18] ss:$28 sps:$4 sm:$0xff]  }
 0x106   :  { %2966 = vmatprep.subr.bf16.mxu0 %v8584_v25  ;;  %3138 = vmatprep.subr.bf16.mxu1 %v8586_v29  ;;  %v8641_v25 = vcombine.low %v487_v13, %v491_v15  ;;  %v503_v29 = vld [vmem:[#allocation5 + $0xcc8] sm:$0xff]  ;;  %v8650_v30 = vcombine.high %v495_v21, %v499_v23  ;;  %v8649_v34 = vcombine.low %v495_v21, %v499_v23  ;;  %v104_v13 = vld [vmem:[#allocation5 + $0x50] sm:$0xff]  ;;  %v105_v15 = vld [vmem:[#allocation5 + $0x58] sm:$0xff] }
 0x107   :  { %v112_v21 = vld [vmem:[#allocation5 + $0x90] sm:$0xff]  ;;  %v113_v23 = vld [vmem:[#allocation5 + $0x98] sm:$0xff] }
 0x109   :  { %2967 = vmatpush1.bf16.msra.mxu0 %v8583_v31  ;;  %3139 = vmatpush1.bf16.msra.mxu1 %v8585_v32  ;;  %v507_v31 = vld [vmem:[#allocation5 + $0xce8] sm:$0xff]  ;;  %v10543_v32 = vmov 0  }
 0x10a   :  { %2968 = vmatprep.subr.bf16.mxu0 %v8592_v33  ;;  %3140 = vmatprep.subr.bf16.mxu1 %v8594_v37  ;;  %v8647_v33 = vcombine.low %v494_v19, %v498_v20  ;;  %v514_v37 = vld [vmem:[#allocation5 + $0xd20] sm:$0xff]  ;;  %v8657_v42 = vcombine.low %v503_v29, %v507_v31 }
 0x10b   :  { %v8664_v43 = vcombine.high %v510_v36, %v514_v37 }
 0x10d   :  { %2969 = vmatpush1.bf16.msra.mxu0 %v8591_v39  ;;  %3141 = vmatpush1.bf16.msra.mxu1 %v8593_v40  ;;  %v8658_v39 = vcombine.high %v503_v29, %v507_v31  ;;  %v515_v40 = vld [vmem:[#allocation5 + $0xd28] sm:$0xff]  ;;  %v120_v29 = vld [vmem:[#allocation5 + $0xd0] sm:$0xff]  ;;  %v121_v31 = vld [vmem:[#allocation5 + $0xd8] sm:$0xff] }
 0x10e   :  { %2970 = vmatprep.subr.bf16.mxu0 %v8600_v41  ;;  %3142 = vmatprep.subr.bf16.mxu1 %v8602_v45  ;;  %v8655_v41 = vcombine.low %v502_v27, %v506_v28  ;;  %v522_v45 = vld [vmem:[#allocation5 + $0xd60] sm:$0xff]  ;;  %v8665_v50 = vcombine.low %v511_v38, %v515_v40 }
 0x10f   :  { %v8672_v51 = vcombine.high %v518_v44, %v522_v45 }
 0x111   :  { %2971 = vmatpush1.bf16.msra.mxu0 %v8599_v47  ;;  %3143 = vmatpush1.bf16.msra.mxu1 %v8601_v48  ;;  %v8666_v47 = vcombine.high %v511_v38, %v515_v40  ;;  %v523_v48 = vld [vmem:[#allocation5 + $0xd68] sm:$0xff]  ;;  %v132_v40 = vld [vmem:[#allocation5 + $0x130] sm:$0xff] }
 0x112   :  { %2972 = vmatprep.subr.bf16.mxu0 %v8608_v49  ;;  %3144 = vmatprep.subr.bf16.mxu1 %v8610_v53  ;;  %v8663_v49 = vcombine.low %v510_v36, %v514_v37  ;;  %v530_v53 = vld [vmem:[#allocation5 + $0xda0] sm:$0xff]  ;;  %v8673_v58 = vcombine.low %v519_v46, %v523_v48 }
 0x113   :  { %v8680_v59 = vcombine.high %v526_v52, %v530_v53 }
 0x115   :  { %2973 = vmatpush1.bf16.msra.mxu0 %v8607_v55  ;;  %3145 = vmatpush1.bf16.msra.mxu1 %v8609_v56  ;;  %v8674_v55 = vcombine.high %v519_v46, %v523_v48  ;;  %v531_v56 = vld [vmem:[#allocation5 + $0xda8] sm:$0xff]  ;;  %v140_v48 = vld [vmem:[#allocation5 + $0x170] sm:$0xff] }
 0x116   :  { %2974 = vmatprep.subr.bf16.mxu0 %v8616_v57  ;;  %3146 = vmatprep.subr.bf16.mxu1 %v8618_v61  ;;  %v8671_v57 = vcombine.low %v518_v44, %v522_v45  ;;  %v538_v61 = vld [vmem:[#allocation5 + $0xde0] sm:$0xff]  ;;  %v8681_v2 = vcombine.low %v527_v54, %v531_v56 }
 0x117   :  { %v8688_v3 = vcombine.high %v534_v60, %v538_v61 }
 0x119   :  { %2975 = vmatpush1.bf16.msra.mxu0 %v8615_v63  ;;  %3147 = vmatpush1.bf16.msra.mxu1 %v8617_v0  ;;  %v8682_v63 = vcombine.high %v527_v54, %v531_v56  ;;  %v539_v0 = vld [vmem:[#allocation5 + $0xde8] sm:$0xff]  ;;  %v148_v56 = vld [vmem:[#allocation5 + $0x1b0] sm:$0xff] }
 0x11a   :  { %2976 = vmatprep.subr.bf16.mxu0 %v8624_v1  ;;  %3148 = vmatprep.subr.bf16.mxu1 %v8626_v5  ;;  %v8679_v1 = vcombine.low %v526_v52, %v530_v53  ;;  %v100_v5 = vld [vmem:[#allocation5 + $0x30] sm:$0xff] }
 0x11b   :  { %v8252_v12 = vcombine.high %v96_v4, %v100_v5 }
 0x11d   :  { %2977 = vmatpush1.bf16.msra.mxu0 %v8623_v7  ;;  %3149 = vmatpush1.bf16.msra.mxu1 %v8625_v8  ;;  %v8690_v7 = vcombine.high %v535_v62, %v539_v0  ;;  %v101_v8 = vld [vmem:[#allocation5 + $0x38] sm:$0xff] }
 0x11e   :  { %2989 = vmatprep.subr.bf16.mxu0 %v8632_v9  ;;  %3161 = vmatprep.subr.bf16.mxu1 %v8634_v14  ;;  %v8687_v9 = vcombine.low %v534_v60, %v538_v61  ;;  %v108_v14 = vld [vmem:[#allocation5 + $0x70] sm:$0xff]  ;;  %v8253_v19 = vcombine.low %v97_v6, %v101_v8 }
 0x11f   :  { %v8260_v20 = vcombine.high %v104_v13, %v108_v14 }
 0x120   :  { %2979 = vmatmul.mubr.bf16.vlgmr.msra.gmra.mrb[0].mxu0 %v9511_v10  ;;  %3151 = vmatmul.mubr.bf16.vlgmr.msra.gmra.mrb[0].mxu1 %v9511_v10  ;;  %v8689_v10 = vcombine.low %v535_v62, %v539_v0  ;;  %v156_v0 = vld [vmem:[#allocation5 + $0x1f0] sm:$0xff] }
 0x121   :  { %2990 = vmatpush1.bf16.msra.mxu0 %v8631_v16  ;;  %3162 = vmatpush1.bf16.msra.mxu1 %v8633_v17  ;;  %v8254_v16 = vcombine.high %v97_v6, %v101_v8  ;;  %v109_v17 = vld [vmem:[#allocation5 + $0x78] sm:$0xff]  ;;  %v164_v8 = vld [vmem:[#allocation5 + $0x230] sm:$0xff] }
 0x122   :  { %2991 = vmatprep.subr.bf16.mxu0 %v8640_v18  ;;  %3163 = vmatprep.subr.bf16.mxu1 %v8642_v22  ;;  %v8251_v18 = vcombine.low %v96_v4, %v100_v5  ;;  %v116_v22 = vld [vmem:[#allocation5 + $0xb0] sm:$0xff]  ;;  %v8261_v27 = vcombine.low %v105_v15, %v109_v17 }
 0x123   :  { %3021 = vmatprep.mubr.bf16.mxu0 %v10543_v32  ;;  %3193 = vmatprep.mubr.bf16.mxu1 %v10543_v32  ;;  %v8268_v28 = vcombine.high %v112_v21, %v116_v22  ;;  %v8267_v36 = vcombine.low %v112_v21, %v116_v22 }
 0x125   :  { %2992 = vmatpush1.bf16.msra.mxu0 %v8639_v24  ;;  %3164 = vmatpush1.bf16.msra.mxu1 %v8641_v25  ;;  %v8262_v24 = vcombine.high %v105_v15, %v109_v17  ;;  %v117_v25 = vld [vmem:[#allocation5 + $0xb8] sm:$0xff]  ;;  %v168_v15 = vld [vmem:[#allocation5 + $0x250] sm:$0xff] }
 0x126   :  { %2993 = vmatprep.subr.bf16.mxu0 %v8648_v26  ;;  %3165 = vmatprep.subr.bf16.mxu1 %v8650_v30  ;;  %v8259_v26 = vcombine.low %v104_v13, %v108_v14  ;;  %v124_v30 = vld [vmem:[#allocation5 + $0xf0] sm:$0xff]  ;;  %v8269_v37 = vcombine.low %v113_v23, %v117_v25  ;;  %v169_v17 = vld [vmem:[#allocation5 + $0x258] sm:$0xff] }
 0x127   :  { %v8276_v38 = vcombine.high %v120_v29, %v124_v30  ;;  %v8275_v44 = vcombine.low %v120_v29, %v124_v30 }
 0x129   :  { %2994 = vmatpush1.bf16.msra.mxu0 %v8647_v33  ;;  %3166 = vmatpush1.bf16.msra.mxu1 %v8649_v34  ;;  %v8270_v33 = vcombine.high %v113_v23, %v117_v25  ;;  %v125_v34 = vld [vmem:[#allocation5 + $0xf8] sm:$0xff]  ;;  %v176_v23 = vld [vmem:[#allocation5 + $0x290] sm:$0xff] }
 0x12a   :  { %2995 = vmatprep.subr.bf16.mxu0 %v8656_v35  ;;  %3167 = vmatprep.subr.bf16.mxu1 %v8658_v39  ;;  %v10385_v35 = vld [vmem:[#allocation2 + $0x4] ss:$28 sps:$4 sm:$0xff]   ;;  %v128_v39 = vld [vmem:[#allocation5 + $0x110] sm:$0xff]  ;;  %v8277_v45 = vcombine.low %v121_v31, %v125_v34  ;;  %v177_v25 = vld [vmem:[#allocation5 + $0x298] sm:$0xff] }
 0x12b   :  { %v8284_v46 = vcombine.high %v128_v39, %v132_v40  ;;  %v8283_v52 = vcombine.low %v128_v39, %v132_v40  ;;  %v192_v40 = vld [vmem:[#allocation5 + $0x310] sm:$0xff] }
 0x12d   :  { %2996 = vmatpush1.bf16.msra.mxu0 %v8655_v41  ;;  %3168 = vmatpush1.bf16.msra.mxu1 %v8657_v42  ;;  %v129_v41 = vld [vmem:[#allocation5 + $0x118] sm:$0xff]  ;;  %v8278_v42 = vcombine.high %v121_v31, %v125_v34  ;;  %v184_v31 = vld [vmem:[#allocation5 + $0x2d0] sm:$0xff] }
 0x12e   :  { %2997 = vmatprep.subr.bf16.mxu0 %v8664_v43  ;;  %3169 = vmatprep.subr.bf16.mxu1 %v8666_v47  ;;  %v133_v43 = vld [vmem:[#allocation5 + $0x138] sm:$0xff]  ;;  %v136_v47 = vld [vmem:[#allocation5 + $0x150] sm:$0xff] }
 0x12f   :  { %v8285_v53 = vcombine.low %v129_v41, %v133_v43  ;;  %v8292_v54 = vcombine.high %v136_v47, %v140_v48  ;;  %v8291_v60 = vcombine.low %v136_v47, %v140_v48  ;;  %v185_v34 = vld [vmem:[#allocation5 + $0x2d8] sm:$0xff]  ;;  %v200_v48 = vld [vmem:[#allocation5 + $0x350] sm:$0xff] }
 0x131   :  { %2998 = vmatpush1.bf16.msra.mxu0 %v8663_v49  ;;  %3170 = vmatpush1.bf16.msra.mxu1 %v8665_v50  ;;  %v137_v49 = vld [vmem:[#allocation5 + $0x158] sm:$0xff]  ;;  %v8286_v50 = vcombine.high %v129_v41, %v133_v43  ;;  %v196_v41 = vld [vmem:[#allocation5 + $0x330] sm:$0xff] }
 0x132   :  { %2999 = vmatprep.subr.bf16.mxu0 %v8672_v51  ;;  %3171 = vmatprep.subr.bf16.mxu1 %v8674_v55  ;;  %v141_v51 = vld [vmem:[#allocation5 + $0x178] sm:$0xff]  ;;  %v144_v55 = vld [vmem:[#allocation5 + $0x190] sm:$0xff]  ;;  %v8348_v47 = vcombine.high %v192_v40, %v196_v41 }
 0x133   :  { %v8293_v61 = vcombine.low %v137_v49, %v141_v51  ;;  %v8300_v62 = vcombine.high %v144_v55, %v148_v56  ;;  %v8299_v4 = vcombine.low %v144_v55, %v148_v56  ;;  %v208_v56 = vld [vmem:[#allocation5 + $0x390] sm:$0xff] }
 0x135   :  { %3000 = vmatpush1.bf16.msra.mxu0 %v8671_v57  ;;  %3172 = vmatpush1.bf16.msra.mxu1 %v8673_v58  ;;  %v145_v57 = vld [vmem:[#allocation5 + $0x198] sm:$0xff]  ;;  %v8294_v58 = vcombine.high %v137_v49, %v141_v51  ;;  %v204_v49 = vld [vmem:[#allocation5 + $0x370] sm:$0xff] }
 0x136   :  { %3001 = vmatprep.subr.bf16.mxu0 %v8680_v59  ;;  %3173 = vmatprep.subr.bf16.mxu1 %v8682_v63  ;;  %v149_v59 = vld [vmem:[#allocation5 + $0x1b8] sm:$0xff]  ;;  %v152_v63 = vld [vmem:[#allocation5 + $0x1d0] sm:$0xff]  ;;  %v8356_v55 = vcombine.high %v200_v48, %v204_v49 }
 0x137   :  { %v8301_v5 = vcombine.low %v145_v57, %v149_v59  ;;  %v8308_v6 = vcombine.high %v152_v63, %v156_v0 }
 0x139   :  { %3002 = vmatpush1.bf16.msra.mxu0 %v8679_v1  ;;  %3174 = vmatpush1.bf16.msra.mxu1 %v8681_v2  ;;  %v153_v1 = vld [vmem:[#allocation5 + $0x1d8] sm:$0xff]  ;;  %v8302_v2 = vcombine.high %v145_v57, %v149_v59  ;;  %v212_v57 = vld [vmem:[#allocation5 + $0x3b0] sm:$0xff] }
 0x13a   :  { %3003 = vmatprep.subr.bf16.mxu0 %v8688_v3  ;;  %3175 = vmatprep.subr.bf16.mxu1 %v8690_v7  ;;  %v157_v3 = vld [vmem:[#allocation5 + $0x1f8] sm:$0xff]  ;;  %v160_v7 = vld [vmem:[#allocation5 + $0x210] sm:$0xff] }
 0x13b   :  { %v8309_v13 = vcombine.low %v153_v1, %v157_v3  ;;  %v8316_v14 = vcombine.high %v160_v7, %v164_v8 }
 0x13d   :  { %3004 = vmatpush1.bf16.msra.mxu0 %v8687_v9  ;;  %3176 = vmatpush1.bf16.msra.mxu1 %v8689_v10  ;;  %v161_v9 = vld [vmem:[#allocation5 + $0x218] sm:$0xff]  ;;  %v8310_v10 = vcombine.high %v153_v1, %v157_v3  ;;  %v220_v1 = vld [vmem:[#allocation5 + $0x3f0] sm:$0xff] }
 0x13e   :  { %3204 = vmatprep.subr.bf16.mxu0 %v8252_v12  ;;  %3376 = vmatprep.subr.bf16.mxu1 %v8254_v16  ;;  %v8307_v12 = vcombine.low %v152_v63, %v156_v0  ;;  %v172_v16 = vld [vmem:[#allocation5 + $0x270] sm:$0xff]  ;;  %v8364_v63 = vcombine.high %v208_v56, %v212_v57 }
 0x13f   :  { %v8324_v22 = vcombine.high %v168_v15, %v172_v16  ;;  %v216_v0 = vld [vmem:[#allocation5 + $0x3d0] sm:$0xff] }
 0x140   :  { %3022 = vmatmul.mubr.bf16.vlgmr.msra.gmra.mrb[0].mxu0 %v9512_v11  ;;  %3194 = vmatmul.mubr.bf16.vlgmr.msra.gmra.mrb[0].mxu1 %v9512_v11  ;;  %v165_v11 = vld [vmem:[#allocation5 + $0x238] sm:$0xff] }
 0x141   :  { %3205 = vmatpush1.bf16.msra.mxu0 %v8251_v18  ;;  %3377 = vmatpush1.bf16.msra.mxu1 %v8253_v19  ;;  %v8318_v18 = vcombine.high %v161_v9, %v165_v11  ;;  %v173_v19 = vld [vmem:[#allocation5 + $0x278] sm:$0xff]  ;;  %v8317_v21 = vcombine.low %v161_v9, %v165_v11  ;;  %v228_v9 = vld [vmem:[#allocation5 + $0x430] sm:$0xff] }
 0x142   :  { %3206 = vmatprep.subr.bf16.mxu0 %v8260_v20  ;;  %3378 = vmatprep.subr.bf16.mxu1 %v8262_v24  ;;  %v8315_v20 = vcombine.low %v160_v7, %v164_v8  ;;  %v180_v24 = vld [vmem:[#allocation5 + $0x2b0] sm:$0xff]  ;;  %v8325_v29 = vcombine.low %v169_v17, %v173_v19  ;;  %v8372_v7 = vcombine.high %v216_v0, %v220_v1 }
 0x143   :  { %3236 = vmatprep.mubr.bf16.mxu0 %v10385_v35  ;;  %3408 = vmatprep.mubr.bf16.mxu1 %v10385_v35  ;;  %v8332_v30 = vcombine.high %v176_v23, %v180_v24  ;;  %v224_v8 = vld [vmem:[#allocation5 + $0x410] sm:$0xff] }
 0x145   :  { %3207 = vmatpush1.bf16.msra.mxu0 %v8259_v26  ;;  %3379 = vmatpush1.bf16.msra.mxu1 %v8261_v27  ;;  %v8326_v26 = vcombine.high %v169_v17, %v173_v19  ;;  %v181_v27 = vld [vmem:[#allocation5 + $0x2b8] sm:$0xff]  ;;  %v236_v17 = vld [vmem:[#allocation5 + $0x470] sm:$0xff] }
 0x146   :  { %3208 = vmatprep.subr.bf16.mxu0 %v8268_v28  ;;  %3380 = vmatprep.subr.bf16.mxu1 %v8270_v33  ;;  %v8323_v28 = vcombine.low %v168_v15, %v172_v16  ;;  %v188_v33 = vld [vmem:[#allocation5 + $0x2f0] sm:$0xff]  ;;  %v8334_v35 = vcombine.high %v177_v25, %v181_v27  ;;  %v8380_v15 = vcombine.high %v224_v8, %v228_v9 }
 0x147   :  { %v8340_v39 = vcombine.high %v184_v31, %v188_v33  ;;  %v232_v16 = vld [vmem:[#allocation5 + $0x450] sm:$0xff] }
 0x149   :  { %3209 = vmatpush1.bf16.msra.mxu0 %v8267_v36  ;;  %3381 = vmatpush1.bf16.msra.mxu1 %v8269_v37  ;;  %v189_v36 = vld [vmem:[#allocation5 + $0x2f8] sm:$0xff]  ;;  %v8331_v37 = vcombine.low %v176_v23, %v180_v24  ;;  %v8388_v23 = vcombine.high %v232_v16, %v236_v17  ;;  %v240_v24 = vld [vmem:[#allocation5 + $0x490] sm:$0xff] }
 0x14a   :  { %3210 = vmatprep.subr.bf16.mxu0 %v8276_v38  ;;  %3382 = vmatprep.subr.bf16.mxu1 %v8278_v42  ;;  %v8333_v38 = vcombine.low %v177_v25, %v181_v27  ;;  %v193_v42 = vld [vmem:[#allocation5 + $0x318] sm:$0xff]  ;;  %v8342_v43 = vcombine.high %v185_v34, %v189_v36  ;;  %v244_v25 = vld [vmem:[#allocation5 + $0x4b0] sm:$0xff] }
 0x14d   :  { %3211 = vmatpush1.bf16.msra.mxu0 %v8275_v44  ;;  %3383 = vmatpush1.bf16.msra.mxu1 %v8277_v45  ;;  %v197_v44 = vld [vmem:[#allocation5 + $0x338] sm:$0xff]  ;;  %v8339_v45 = vcombine.low %v184_v31, %v188_v33  ;;  %v8396_v33 = vcombine.high %v240_v24, %v244_v25 }
 0x14e   :  { %3212 = vmatprep.subr.bf16.mxu0 %v8284_v46  ;;  %3384 = vmatprep.subr.bf16.mxu1 %v8286_v50  ;;  %v8341_v46 = vcombine.low %v185_v34, %v189_v36  ;;  %v201_v50 = vld [vmem:[#allocation5 + $0x358] sm:$0xff]  ;;  %v8350_v51 = vcombine.high %v193_v42, %v197_v44  ;;  %v248_v34 = vld [vmem:[#allocation5 + $0x4d0] sm:$0xff] }
 0x14f   :  { %v249_v36 = vld [vmem:[#allocation5 + $0x4d8] sm:$0xff] }
 0x151   :  { %3213 = vmatpush1.bf16.msra.mxu0 %v8283_v52  ;;  %3385 = vmatpush1.bf16.msra.mxu1 %v8285_v53  ;;  %v205_v52 = vld [vmem:[#allocation5 + $0x378] sm:$0xff]  ;;  %v8347_v53 = vcombine.low %v192_v40, %v196_v41  ;;  %v8395_v40 = vcombine.low %v240_v24, %v244_v25 }
 0x152   :  { %3214 = vmatprep.subr.bf16.mxu0 %v8292_v54  ;;  %3386 = vmatprep.subr.bf16.mxu1 %v8294_v58  ;;  %v8349_v54 = vcombine.low %v193_v42, %v197_v44  ;;  %v209_v58 = vld [vmem:[#allocation5 + $0x398] sm:$0xff]  ;;  %v8358_v59 = vcombine.high %v201_v50, %v205_v52  ;;  %v260_v44 = vld [vmem:[#allocation5 + $0x530] sm:$0xff] }
 0x155   :  { %3215 = vmatpush1.bf16.msra.mxu0 %v8291_v60  ;;  %3387 = vmatpush1.bf16.msra.mxu1 %v8293_v61  ;;  %v213_v60 = vld [vmem:[#allocation5 + $0x3b8] sm:$0xff]  ;;  %v8355_v61 = vcombine.low %v200_v48, %v204_v49 }
 0x156   :  { %3216 = vmatprep.subr.bf16.mxu0 %v8300_v62  ;;  %3388 = vmatprep.subr.bf16.mxu1 %v8302_v2  ;;  %v8357_v62 = vcombine.low %v201_v50, %v205_v52  ;;  %v217_v2 = vld [vmem:[#allocation5 + $0x3d8] sm:$0xff]  ;;  %v8366_v3 = vcombine.high %v209_v58, %v213_v60  ;;  %v268_v52 = vld [vmem:[#allocation5 + $0x570] sm:$0xff] }
 0x159   :  { %3217 = vmatpush1.bf16.msra.mxu0 %v8299_v4  ;;  %3389 = vmatpush1.bf16.msra.mxu1 %v8301_v5  ;;  %v221_v4 = vld [vmem:[#allocation5 + $0x3f8] sm:$0xff]  ;;  %v8363_v5 = vcombine.low %v208_v56, %v212_v57 }
 0x15a   :  { %3218 = vmatprep.subr.bf16.mxu0 %v8308_v6  ;;  %3390 = vmatprep.subr.bf16.mxu1 %v8310_v10  ;;  %v8365_v6 = vcombine.low %v209_v58, %v213_v60  ;;  %v225_v10 = vld [vmem:[#allocation5 + $0x418] sm:$0xff]  ;;  %v8374_v11 = vcombine.high %v217_v2, %v221_v4  ;;  %v276_v60 = vld [vmem:[#allocation5 + $0x5b0] sm:$0xff] }
 0x15d   :  { %3219 = vmatpush1.bf16.msra.mxu0 %v8307_v12  ;;  %3391 = vmatpush1.bf16.msra.mxu1 %v8309_v13  ;;  %v229_v12 = vld [vmem:[#allocation5 + $0x438] sm:$0xff]  ;;  %v8371_v13 = vcombine.low %v216_v0, %v220_v1 }
 0x15e   :  { %3220 = vmatprep.subr.bf16.mxu0 %v8316_v14  ;;  %3392 = vmatprep.subr.bf16.mxu1 %v8318_v18  ;;  %v8373_v14 = vcombine.low %v217_v2, %v221_v4  ;;  %v233_v18 = vld [vmem:[#allocation5 + $0x458] sm:$0xff]  ;;  %v8382_v19 = vcombine.high %v225_v10, %v229_v12  ;;  %v284_v4 = vld [vmem:[#allocation5 + $0x5f0] sm:$0xff] }
 0x161   :  { %3221 = vmatpush1.bf16.msra.mxu0 %v8315_v20  ;;  %3393 = vmatpush1.bf16.msra.mxu1 %v8317_v21  ;;  %v237_v20 = vld [vmem:[#allocation5 + $0x478] sm:$0xff]  ;;  %v8379_v21 = vcombine.low %v224_v8, %v228_v9 }
 0x162   :  { %3222 = vmatprep.subr.bf16.mxu0 %v8324_v22  ;;  %3394 = vmatprep.subr.bf16.mxu1 %v8326_v26  ;;  %v8381_v22 = vcombine.low %v225_v10, %v229_v12  ;;  %v241_v26 = vld [vmem:[#allocation5 + $0x498] sm:$0xff]  ;;  %v8390_v27 = vcombine.high %v233_v18, %v237_v20  ;;  %v8389_v31 = vcombine.low %v233_v18, %v237_v20  ;;  %v292_v12 = vld [vmem:[#allocation5 + $0x630] sm:$0xff] }
 0x163   :  { %v300_v20 = vld [vmem:[#allocation5 + $0x670] sm:$0xff] }
 0x165   :  { %3223 = vmatpush1.bf16.msra.mxu0 %v8323_v28  ;;  %3395 = vmatpush1.bf16.msra.mxu1 %v8325_v29  ;;  %v245_v28 = vld [vmem:[#allocation5 + $0x4b8] sm:$0xff]  ;;  %v10386_v29 = vld [vmem:[#allocation2] ss:$28 sps:$4 sm:$0xff]  }
 0x166   :  { %3224 = vmatprep.subr.bf16.mxu0 %v8332_v30  ;;  %3396 = vmatprep.subr.bf16.mxu1 %v8334_v35  ;;  %v8387_v30 = vcombine.low %v232_v16, %v236_v17  ;;  %v252_v35 = vld [vmem:[#allocation5 + $0x4f0] sm:$0xff]  ;;  %v8397_v41 = vcombine.low %v241_v26, %v245_v28 }
 0x167   :  { %v8404_v42 = vcombine.high %v248_v34, %v252_v35  ;;  %v8403_v48 = vcombine.low %v248_v34, %v252_v35 }
 0x169   :  { %3225 = vmatpush1.bf16.msra.mxu0 %v8331_v37  ;;  %3397 = vmatpush1.bf16.msra.mxu1 %v8333_v38  ;;  %v8398_v37 = vcombine.high %v241_v26, %v245_v28  ;;  %v253_v38 = vld [vmem:[#allocation5 + $0x4f8] sm:$0xff]  ;;  %v304_v28 = vld [vmem:[#allocation5 + $0x690] sm:$0xff] }
 0x16a   :  { %3226 = vmatprep.subr.bf16.mxu0 %v8340_v39  ;;  %3398 = vmatprep.subr.bf16.mxu1 %v8342_v43  ;;  %v10387_v39 = vld [vmem:[#allocation2 + $0xc] ss:$28 sps:$4 sm:$0xff]   ;;  %v8405_v49 = vcombine.low %v249_v36, %v253_v38 }
 0x16b   :  { %v256_v43 = vld [vmem:[#allocation5 + $0x510] sm:$0xff] }
 0x16c   :  { %v8412_v50 = vcombine.high %v256_v43, %v260_v44  ;;  %v8411_v56 = vcombine.low %v256_v43, %v260_v44  ;;  %v320_v44 = vld [vmem:[#allocation5 + $0x710] sm:$0xff] }
 0x16d   :  { %3227 = vmatpush1.bf16.msra.mxu0 %v8339_v45  ;;  %3399 = vmatpush1.bf16.msra.mxu1 %v8341_v46  ;;  %v257_v45 = vld [vmem:[#allocation5 + $0x518] sm:$0xff]  ;;  %v8406_v46 = vcombine.high %v249_v36, %v253_v38  ;;  %v316_v38 = vld [vmem:[#allocation5 + $0x6f0] sm:$0xff] }
 0x16e   :  { %3228 = vmatprep.subr.bf16.mxu0 %v8348_v47  ;;  %3400 = vmatprep.subr.bf16.mxu1 %v8350_v51  ;;  %v261_v47 = vld [vmem:[#allocation5 + $0x538] sm:$0xff]  ;;  %v264_v51 = vld [vmem:[#allocation5 + $0x550] sm:$0xff] }
 0x16f   :  { %v8413_v57 = vcombine.low %v257_v45, %v261_v47  ;;  %v8420_v58 = vcombine.high %v264_v51, %v268_v52  ;;  %v8419_v0 = vcombine.low %v264_v51, %v268_v52  ;;  %v328_v52 = vld [vmem:[#allocation5 + $0x750] sm:$0xff] }
 0x171   :  { %3229 = vmatpush1.bf16.msra.mxu0 %v8347_v53  ;;  %3401 = vmatpush1.bf16.msra.mxu1 %v8349_v54  ;;  %v265_v53 = vld [vmem:[#allocation5 + $0x558] sm:$0xff]  ;;  %v8414_v54 = vcombine.high %v257_v45, %v261_v47  ;;  %v324_v45 = vld [vmem:[#allocation5 + $0x730] sm:$0xff] }
 0x172   :  { %3230 = vmatprep.subr.bf16.mxu0 %v8356_v55  ;;  %3402 = vmatprep.subr.bf16.mxu1 %v8358_v59  ;;  %v269_v55 = vld [vmem:[#allocation5 + $0x578] sm:$0xff]  ;;  %v272_v59 = vld [vmem:[#allocation5 + $0x590] sm:$0xff]  ;;  %v8476_v51 = vcombine.high %v320_v44, %v324_v45 }
 0x173   :  { %v8421_v1 = vcombine.low %v265_v53, %v269_v55  ;;  %v8428_v2 = vcombine.high %v272_v59, %v276_v60  ;;  %v8427_v8 = vcombine.low %v272_v59, %v276_v60  ;;  %v336_v60 = vld [vmem:[#allocation5 + $0x790] sm:$0xff] }
 0x175   :  { %3231 = vmatpush1.bf16.msra.mxu0 %v8355_v61  ;;  %3403 = vmatpush1.bf16.msra.mxu1 %v8357_v62  ;;  %v273_v61 = vld [vmem:[#allocation5 + $0x598] sm:$0xff]  ;;  %v8422_v62 = vcombine.high %v265_v53, %v269_v55  ;;  %v332_v53 = vld [vmem:[#allocation5 + $0x770] sm:$0xff] }
 0x176   :  { %3232 = vmatprep.subr.bf16.mxu0 %v8364_v63  ;;  %3404 = vmatprep.subr.bf16.mxu1 %v8366_v3  ;;  %v277_v63 = vld [vmem:[#allocation5 + $0x5b8] sm:$0xff]  ;;  %v280_v3 = vld [vmem:[#allocation5 + $0x5d0] sm:$0xff]  ;;  %v8484_v59 = vcombine.high %v328_v52, %v332_v53 }
 0x177   :  { %v8429_v9 = vcombine.low %v273_v61, %v277_v63  ;;  %v8436_v10 = vcombine.high %v280_v3, %v284_v4  ;;  %v8435_v16 = vcombine.low %v280_v3, %v284_v4  ;;  %v344_v4 = vld [vmem:[#allocation5 + $0x7d0] sm:$0xff] }
 0x179   :  { %3233 = vmatpush1.bf16.msra.mxu0 %v8363_v5  ;;  %3405 = vmatpush1.bf16.msra.mxu1 %v8365_v6  ;;  %v8430_v5 = vcombine.high %v273_v61, %v277_v63  ;;  %v281_v6 = vld [vmem:[#allocation5 + $0x5d8] sm:$0xff]  ;;  %v340_v61 = vld [vmem:[#allocation5 + $0x7b0] sm:$0xff] }
 0x17a   :  { %3234 = vmatprep.subr.bf16.mxu0 %v8372_v7  ;;  %3406 = vmatprep.subr.bf16.mxu1 %v8374_v11  ;;  %v285_v7 = vld [vmem:[#allocation5 + $0x5f8] sm:$0xff]  ;;  %v288_v11 = vld [vmem:[#allocation5 + $0x610] sm:$0xff]  ;;  %v8492_v3 = vcombine.high %v336_v60, %v340_v61 }
 0x17b   :  { %v8437_v17 = vcombine.low %v281_v6, %v285_v7  ;;  %v8444_v18 = vcombine.high %v288_v11, %v292_v12  ;;  %v8443_v24 = vcombine.low %v288_v11, %v292_v12  ;;  %v352_v12 = vld [vmem:[#allocation5 + $0x810] sm:$0xff] }
 0x17d   :  { %3235 = vmatpush1.bf16.msra.mxu0 %v8371_v13  ;;  %3407 = vmatpush1.bf16.msra.mxu1 %v8373_v14  ;;  %v289_v13 = vld [vmem:[#allocation5 + $0x618] sm:$0xff]  ;;  %v8438_v14 = vcombine.high %v281_v6, %v285_v7 }
 0x17e   :  { %3247 = vmatprep.subr.bf16.mxu0 %v8380_v15  ;;  %3419 = vmatprep.subr.bf16.mxu1 %v8382_v19  ;;  %v293_v15 = vld [vmem:[#allocation5 + $0x638] sm:$0xff]  ;;  %v296_v19 = vld [vmem:[#allocation5 + $0x650] sm:$0xff] }
 0x17f   :  { %v8445_v25 = vcombine.low %v289_v13, %v293_v15  ;;  %v8452_v26 = vcombine.high %v296_v19, %v300_v20  ;;  %v345_v6 = vld [vmem:[#allocation5 + $0x7d8] sm:$0xff] }
 0x180   :  { %3237 = vmatmul.mubr.bf16.vlgmr.msra.gmra.mrb[4].mxu0 %v10386_v29  ;;  %3409 = vmatmul.mubr.bf16.vlgmr.msra.gmra.mrb[4].mxu1 %v10386_v29  ;;  %v308_v29 = vld [vmem:[#allocation5 + $0x6b0] sm:$0xff] }
 0x181   :  { %3248 = vmatpush1.bf16.msra.mxu0 %v8379_v21  ;;  %3420 = vmatpush1.bf16.msra.mxu1 %v8381_v22  ;;  %v297_v21 = vld [vmem:[#allocation5 + $0x658] sm:$0xff]  ;;  %v8446_v22 = vcombine.high %v289_v13, %v293_v15  ;;  %v8460_v35 = vcombine.high %v304_v28, %v308_v29  ;;  %v356_v13 = vld [vmem:[#allocation5 + $0x830] sm:$0xff] }
 0x182   :  { %3249 = vmatprep.subr.bf16.mxu0 %v8388_v23  ;;  %3421 = vmatprep.subr.bf16.mxu1 %v8390_v27  ;;  %v301_v23 = vld [vmem:[#allocation5 + $0x678] sm:$0xff] }
 0x183   :  { %3279 = vmatprep.mubr.bf16.mxu0 %v10387_v39  ;;  %3451 = vmatprep.mubr.bf16.mxu1 %v10387_v39  ;;  %v8454_v27 = vcombine.high %v297_v21, %v301_v23  ;;  %v8453_v34 = vcombine.low %v297_v21, %v301_v23  ;;  %v313_v39 = vld [vmem:[#allocation5 + $0x6d8] sm:$0xff]  ;;  %v364_v21 = vld [vmem:[#allocation5 + $0x870] sm:$0xff] }
 0x185   :  { %3250 = vmatpush1.bf16.msra.mxu0 %v8387_v30  ;;  %3422 = vmatpush1.bf16.msra.mxu1 %v8389_v31  ;;  %v305_v30 = vld [vmem:[#allocation5 + $0x698] sm:$0xff] }
 0x186   :  { %3251 = vmatprep.subr.bf16.mxu0 %v8396_v33  ;;  %3423 = vmatprep.subr.bf16.mxu1 %v8398_v37  ;;  %v309_v31 = vld [vmem:[#allocation5 + $0x6b8] sm:$0xff]  ;;  %v8451_v33 = vcombine.low %v296_v19, %v300_v20  ;;  %v312_v37 = vld [vmem:[#allocation5 + $0x6d0] sm:$0xff]  ;;  %v8508_v19 = vcombine.high %v352_v12, %v356_v13 }
 0x187   :  { %v8462_v36 = vcombine.high %v305_v30, %v309_v31  ;;  %v8468_v43 = vcombine.high %v312_v37, %v316_v38  ;;  %v360_v20 = vld [vmem:[#allocation5 + $0x850] sm:$0xff] }
 0x189   :  { %3252 = vmatpush1.bf16.msra.mxu0 %v8395_v40  ;;  %3424 = vmatpush1.bf16.msra.mxu1 %v8397_v41  ;;  %v317_v40 = vld [vmem:[#allocation5 + $0x6f8] sm:$0xff]  ;;  %v8459_v41 = vcombine.low %v304_v28, %v308_v29  ;;  %v368_v28 = vld [vmem:[#allocation5 + $0x890] sm:$0xff] }
 0x18a   :  { %3253 = vmatprep.subr.bf16.mxu0 %v8404_v42  ;;  %3425 = vmatprep.subr.bf16.mxu1 %v8406_v46  ;;  %v8461_v42 = vcombine.low %v305_v30, %v309_v31  ;;  %v321_v46 = vld [vmem:[#allocation5 + $0x718] sm:$0xff]  ;;  %v8470_v47 = vcombine.high %v313_v39, %v317_v40  ;;  %v372_v29 = vld [vmem:[#allocation5 + $0x8b0] sm:$0xff] }
 0x18b   :  { %v369_v30 = vld [vmem:[#allocation5 + $0x898] sm:$0xff] }
 0x18d   :  { %3254 = vmatpush1.bf16.msra.mxu0 %v8403_v48  ;;  %3426 = vmatpush1.bf16.msra.mxu1 %v8405_v49  ;;  %v325_v48 = vld [vmem:[#allocation5 + $0x738] sm:$0xff]  ;;  %v8467_v49 = vcombine.low %v312_v37, %v316_v38  ;;  %v8524_v37 = vcombine.high %v368_v28, %v372_v29  ;;  %v376_v38 = vld [vmem:[#allocation5 + $0x8d0] sm:$0xff] }
 0x18e   :  { %3255 = vmatprep.subr.bf16.mxu0 %v8412_v50  ;;  %3427 = vmatprep.subr.bf16.mxu1 %v8414_v54  ;;  %v8469_v50 = vcombine.low %v313_v39, %v317_v40  ;;  %v329_v54 = vld [vmem:[#allocation5 + $0x758] sm:$0xff]  ;;  %v8478_v55 = vcombine.high %v321_v46, %v325_v48  ;;  %v380_v39 = vld [vmem:[#allocation5 + $0x8f0] sm:$0xff] }
 0x18f   :  { %v377_v40 = vld [vmem:[#allocation5 + $0x8d8] sm:$0xff] }
 0x191   :  { %3256 = vmatpush1.bf16.msra.mxu0 %v8411_v56  ;;  %3428 = vmatpush1.bf16.msra.mxu1 %v8413_v57  ;;  %v333_v56 = vld [vmem:[#allocation5 + $0x778] sm:$0xff]  ;;  %v8475_v57 = vcombine.low %v320_v44, %v324_v45  ;;  %v8523_v44 = vcombine.low %v368_v28, %v372_v29  ;;  %v432_v29 = vld [vmem:[#allocation5 + $0xa90] sm:$0xff] }
 0x192   :  { %3257 = vmatprep.subr.bf16.mxu0 %v8420_v58  ;;  %3429 = vmatprep.subr.bf16.mxu1 %v8422_v62  ;;  %v8477_v58 = vcombine.low %v321_v46, %v325_v48  ;;  %v337_v62 = vld [vmem:[#allocation5 + $0x798] sm:$0xff]  ;;  %v8486_v63 = vcombine.high %v329_v54, %v333_v56  ;;  %v8532_v46 = vcombine.high %v376_v38, %v380_v39  ;;  %v388_v48 = vld [vmem:[#allocation5 + $0x930] sm:$0xff] }
 0x195   :  { %3258 = vmatpush1.bf16.msra.mxu0 %v8419_v0  ;;  %3430 = vmatpush1.bf16.msra.mxu1 %v8421_v1  ;;  %v341_v0 = vld [vmem:[#allocation5 + $0x7b8] sm:$0xff]  ;;  %v8483_v1 = vcombine.low %v328_v52, %v332_v53  ;;  %v8531_v52 = vcombine.low %v376_v38, %v380_v39 }
 0x196   :  { %3259 = vmatprep.subr.bf16.mxu0 %v8428_v2  ;;  %3431 = vmatprep.subr.bf16.mxu1 %v8430_v5  ;;  %v8485_v2 = vcombine.low %v329_v54, %v333_v56  ;;  %v348_v5 = vld [vmem:[#allocation5 + $0x7f0] sm:$0xff]  ;;  %v8494_v7 = vcombine.high %v337_v62, %v341_v0 }
 0x197   :  { %v8500_v11 = vcombine.high %v344_v4, %v348_v5  ;;  %v396_v56 = vld [vmem:[#allocation5 + $0x970] sm:$0xff] }
 0x199   :  { %3260 = vmatpush1.bf16.msra.mxu0 %v8427_v8  ;;  %3432 = vmatpush1.bf16.msra.mxu1 %v8429_v9  ;;  %v349_v8 = vld [vmem:[#allocation5 + $0x7f8] sm:$0xff]  ;;  %v8491_v9 = vcombine.low %v336_v60, %v340_v61 }
 0x19a   :  { %3261 = vmatprep.subr.bf16.mxu0 %v8436_v10  ;;  %3433 = vmatprep.subr.bf16.mxu1 %v8438_v14  ;;  %v8493_v10 = vcombine.low %v337_v62, %v341_v0  ;;  %v353_v14 = vld [vmem:[#allocation5 + $0x818] sm:$0xff]  ;;  %v8502_v15 = vcombine.high %v345_v6, %v349_v8  ;;  %v404_v0 = vld [vmem:[#allocation5 + $0x9b0] sm:$0xff] }
 0x19d   :  { %3262 = vmatpush1.bf16.msra.mxu0 %v8435_v16  ;;  %3434 = vmatpush1.bf16.msra.mxu1 %v8437_v17  ;;  %v357_v16 = vld [vmem:[#allocation5 + $0x838] sm:$0xff]  ;;  %v8499_v17 = vcombine.low %v344_v4, %v348_v5 }
 0x19e   :  { %3263 = vmatprep.subr.bf16.mxu0 %v8444_v18  ;;  %3435 = vmatprep.subr.bf16.mxu1 %v8446_v22  ;;  %v8501_v18 = vcombine.low %v345_v6, %v349_v8  ;;  %v361_v22 = vld [vmem:[#allocation5 + $0x858] sm:$0xff]  ;;  %v8510_v23 = vcombine.high %v353_v14, %v357_v16  ;;  %v412_v8 = vld [vmem:[#allocation5 + $0x9f0] sm:$0xff] }
 0x1a1   :  { %3264 = vmatpush1.bf16.msra.mxu0 %v8443_v24  ;;  %3436 = vmatpush1.bf16.msra.mxu1 %v8445_v25  ;;  %v365_v24 = vld [vmem:[#allocation5 + $0x878] sm:$0xff]  ;;  %v8507_v25 = vcombine.low %v352_v12, %v356_v13 }
 0x1a2   :  { %3265 = vmatprep.subr.bf16.mxu0 %v8452_v26  ;;  %3437 = vmatprep.subr.bf16.mxu1 %v8454_v27  ;;  %v8509_v26 = vcombine.low %v353_v14, %v357_v16  ;;  %v8516_v27 = vcombine.high %v360_v20, %v364_v21  ;;  %v8518_v31 = vcombine.high %v361_v22, %v365_v24  ;;  %v420_v16 = vld [vmem:[#allocation5 + $0xa30] sm:$0xff] }
 0x1a5   :  { %3266 = vmatpush1.bf16.msra.mxu0 %v8451_v33  ;;  %3438 = vmatpush1.bf16.msra.mxu1 %v8453_v34  ;;  %v373_v33 = vld [vmem:[#allocation5 + $0x8b8] sm:$0xff]  ;;  %v10388_v34 = vld [vmem:[#allocation2 + $0x8] ss:$28 sps:$4 sm:$0xff]  }
 0x1a6   :  { %3267 = vmatprep.subr.bf16.mxu0 %v8460_v35  ;;  %3439 = vmatprep.subr.bf16.mxu1 %v8462_v36  ;;  %v8515_v35 = vcombine.low %v360_v20, %v364_v21  ;;  %v8517_v36 = vcombine.low %v361_v22, %v365_v24  ;;  %v8525_v45 = vcombine.low %v369_v30, %v373_v33  ;;  %v428_v24 = vld [vmem:[#allocation5 + $0xa70] sm:$0xff] }
 0x1a9   :  { %3268 = vmatpush1.bf16.msra.mxu0 %v8459_v41  ;;  %3440 = vmatpush1.bf16.msra.mxu1 %v8461_v42  ;;  %v8526_v41 = vcombine.high %v369_v30, %v373_v33  ;;  %v381_v42 = vld [vmem:[#allocation5 + $0x8f8] sm:$0xff]  ;;  %v436_v30 = vld [vmem:[#allocation5 + $0xab0] sm:$0xff] }
 0x1aa   :  { %3269 = vmatprep.subr.bf16.mxu0 %v8468_v43  ;;  %3441 = vmatprep.subr.bf16.mxu1 %v8470_v47  ;;  %v10389_v43 = vld [vmem:[#allocation2 + $0x14] ss:$28 sps:$4 sm:$0xff]   ;;  %v384_v47 = vld [vmem:[#allocation5 + $0x910] sm:$0xff]  ;;  %v8533_v53 = vcombine.low %v377_v40, %v381_v42  ;;  %v8588_v39 = vcombine.high %v432_v29, %v436_v30 }
 0x1ab   :  { %v8540_v54 = vcombine.high %v384_v47, %v388_v48  ;;  %v8539_v60 = vcombine.low %v384_v47, %v388_v48 }
 0x1ad   :  { %3270 = vmatpush1.bf16.msra.mxu0 %v8467_v49  ;;  %3442 = vmatpush1.bf16.msra.mxu1 %v8469_v50  ;;  %v385_v49 = vld [vmem:[#allocation5 + $0x918] sm:$0xff]  ;;  %v8534_v50 = vcombine.high %v377_v40, %v381_v42  ;;  %v444_v42 = vld [vmem:[#allocation5 + $0xaf0] sm:$0xff] }
 0x1ae   :  { %3271 = vmatprep.subr.bf16.mxu0 %v8476_v51  ;;  %3443 = vmatprep.subr.bf16.mxu1 %v8478_v55  ;;  %v389_v51 = vld [vmem:[#allocation5 + $0x938] sm:$0xff]  ;;  %v392_v55 = vld [vmem:[#allocation5 + $0x950] sm:$0xff] }
 0x1af   :  { %v8541_v61 = vcombine.low %v385_v49, %v389_v51  ;;  %v8548_v62 = vcombine.high %v392_v55, %v396_v56  ;;  %v8547_v4 = vcombine.low %v392_v55, %v396_v56 }
 0x1b1   :  { %3272 = vmatpush1.bf16.msra.mxu0 %v8475_v57  ;;  %3444 = vmatpush1.bf16.msra.mxu1 %v8477_v58  ;;  %v393_v57 = vld [vmem:[#allocation5 + $0x958] sm:$0xff]  ;;  %v8542_v58 = vcombine.high %v385_v49, %v389_v51  ;;  %v448_v49 = vld [vmem:[#allocation5 + $0xb10] sm:$0xff] }
 0x1b2   :  { %3273 = vmatprep.subr.bf16.mxu0 %v8484_v59  ;;  %3445 = vmatprep.subr.bf16.mxu1 %v8486_v63  ;;  %v397_v59 = vld [vmem:[#allocation5 + $0x978] sm:$0xff]  ;;  %v400_v63 = vld [vmem:[#allocation5 + $0x990] sm:$0xff] }
 0x1b3   :  { %v8549_v5 = vcombine.low %v393_v57, %v397_v59  ;;  %v8556_v6 = vcombine.high %v400_v63, %v404_v0  ;;  %v8555_v12 = vcombine.low %v400_v63, %v404_v0  ;;  %v449_v51 = vld [vmem:[#allocation5 + $0xb18] sm:$0xff] }
 0x1b5   :  { %3274 = vmatpush1.bf16.msra.mxu0 %v8483_v1  ;;  %3446 = vmatpush1.bf16.msra.mxu1 %v8485_v2  ;;  %v401_v1 = vld [vmem:[#allocation5 + $0x998] sm:$0xff]  ;;  %v8550_v2 = vcombine.high %v393_v57, %v397_v59  ;;  %v456_v57 = vld [vmem:[#allocation5 + $0xb50] sm:$0xff] }
 0x1b6   :  { %3275 = vmatprep.subr.bf16.mxu0 %v8492_v3  ;;  %3447 = vmatprep.subr.bf16.mxu1 %v8494_v7  ;;  %v405_v3 = vld [vmem:[#allocation5 + $0x9b8] sm:$0xff]  ;;  %v408_v7 = vld [vmem:[#allocation5 + $0x9d0] sm:$0xff] }
 0x1b7   :  { %v8557_v13 = vcombine.low %v401_v1, %v405_v3  ;;  %v8564_v14 = vcombine.high %v408_v7, %v412_v8  ;;  %v8563_v20 = vcombine.low %v408_v7, %v412_v8  ;;  %v457_v59 = vld [vmem:[#allocation5 + $0xb58] sm:$0xff] }
 0x1b9   :  { %3276 = vmatpush1.bf16.msra.mxu0 %v8491_v9  ;;  %3448 = vmatpush1.bf16.msra.mxu1 %v8493_v10  ;;  %v409_v9 = vld [vmem:[#allocation5 + $0x9d8] sm:$0xff]  ;;  %v8558_v10 = vcombine.high %v401_v1, %v405_v3  ;;  %v464_v1 = vld [vmem:[#allocation5 + $0xb90] sm:$0xff] }
 0x1ba   :  { %3277 = vmatprep.subr.bf16.mxu0 %v8500_v11  ;;  %3449 = vmatprep.subr.bf16.mxu1 %v8502_v15  ;;  %v413_v11 = vld [vmem:[#allocation5 + $0x9f8] sm:$0xff]  ;;  %v416_v15 = vld [vmem:[#allocation5 + $0xa10] sm:$0xff] }
 0x1bb   :  { %v8565_v21 = vcombine.low %v409_v9, %v413_v11  ;;  %v8572_v22 = vcombine.high %v416_v15, %v420_v16  ;;  %v8571_v28 = vcombine.low %v416_v15, %v420_v16  ;;  %v465_v3 = vld [vmem:[#allocation5 + $0xb98] sm:$0xff] }
 0x1bd   :  { %3278 = vmatpush1.bf16.msra.mxu0 %v8499_v17  ;;  %3450 = vmatpush1.bf16.msra.mxu1 %v8501_v18  ;;  %v417_v17 = vld [vmem:[#allocation5 + $0xa18] sm:$0xff]  ;;  %v8566_v18 = vcombine.high %v409_v9, %v413_v11  ;;  %v472_v9 = vld [vmem:[#allocation5 + $0xbd0] sm:$0xff] }
 0x1be   :  { %3290 = vmatprep.subr.bf16.mxu0 %v8508_v19  ;;  %3462 = vmatprep.subr.bf16.mxu1 %v8510_v23  ;;  %v421_v19 = vld [vmem:[#allocation5 + $0xa38] sm:$0xff]  ;;  %v424_v23 = vld [vmem:[#allocation5 + $0xa50] sm:$0xff] }
 0x1bf   :  { %v8580_v33 = vcombine.high %v424_v23, %v428_v24  ;;  %v473_v11 = vld [vmem:[#allocation5 + $0xbd8] sm:$0xff] }
 0x1c0   :  { %3280 = vmatmul.mubr.bf16.vlgmr.msra.gmra.mrb[4].mxu0 %v10388_v34  ;;  %3452 = vmatmul.mubr.bf16.vlgmr.msra.gmra.mrb[4].mxu1 %v10388_v34 }
 0x1c1   :  { %3291 = vmatpush1.bf16.msra.mxu0 %v8507_v25  ;;  %3463 = vmatpush1.bf16.msra.mxu1 %v8509_v26  ;;  %v425_v25 = vld [vmem:[#allocation5 + $0xa58] sm:$0xff]  ;;  %v8574_v26 = vcombine.high %v417_v17, %v421_v19 }
 0x1c2   :  { %3292 = vmatprep.subr.bf16.mxu0 %v8516_v27  ;;  %3464 = vmatprep.subr.bf16.mxu1 %v8518_v31  ;;  %v429_v27 = vld [vmem:[#allocation5 + $0xa78] sm:$0xff]  ;;  %v8573_v31 = vcombine.low %v417_v17, %v421_v19  ;;  %v480_v17 = vld [vmem:[#allocation5 + $0xc10] sm:$0xff] }
 0x1c3   :  { %3322 = vmatprep.mubr.bf16.mxu0 %v10389_v43  ;;  %3494 = vmatprep.mubr.bf16.mxu1 %v10389_v43  ;;  %v8582_v34 = vcombine.high %v425_v25, %v429_v27  ;;  %v8581_v38 = vcombine.low %v425_v25, %v429_v27  ;;  %v441_v43 = vld [vmem:[#allocation5 + $0xad8] sm:$0xff]  ;;  %v488_v25 = vld [vmem:[#allocation5 + $0xc50] sm:$0xff] }
 0x1c4   :  { %v481_v19 = vld [vmem:[#allocation5 + $0xc18] sm:$0xff] }
 0x1c5   :  { %3293 = vmatpush1.bf16.msra.mxu0 %v8515_v35  ;;  %3465 = vmatpush1.bf16.msra.mxu1 %v8517_v36  ;;  %v433_v35 = vld [vmem:[#allocation5 + $0xa98] sm:$0xff] }
 0x1c6   :  { %3294 = vmatprep.subr.bf16.mxu0 %v8524_v37  ;;  %3466 = vmatprep.subr.bf16.mxu1 %v8526_v41  ;;  %v437_v36 = vld [vmem:[#allocation5 + $0xab8] sm:$0xff]  ;;  %v8579_v37 = vcombine.low %v424_v23, %v428_v24  ;;  %v440_v41 = vld [vmem:[#allocation5 + $0xad0] sm:$0xff] }
 0x1c7   :  { %v8590_v40 = vcombine.high %v433_v35, %v437_v36  ;;  %v8596_v47 = vcombine.high %v440_v41, %v444_v42  ;;  %v489_v27 = vld [vmem:[#allocation5 + $0xc58] sm:$0xff] }
 0x1c9   :  { %3295 = vmatpush1.bf16.msra.mxu0 %v8523_v44  ;;  %3467 = vmatpush1.bf16.msra.mxu1 %v8525_v45  ;;  %v445_v44 = vld [vmem:[#allocation5 + $0xaf8] sm:$0xff]  ;;  %v8587_v45 = vcombine.low %v432_v29, %v436_v30 }
 0x1ca   :  { %3296 = vmatprep.subr.bf16.mxu0 %v8532_v46  ;;  %3468 = vmatprep.subr.bf16.mxu1 %v8534_v50  ;;  %v8589_v46 = vcombine.low %v433_v35, %v437_v36  ;;  %v8598_v48 = vcombine.high %v441_v43, %v445_v44  ;;  %v452_v50 = vld [vmem:[#allocation5 + $0xb30] sm:$0xff] }
 0x1cb   :  { %v8604_v55 = vcombine.high %v448_v49, %v452_v50  ;;  %v500_v35 = vld [vmem:[#allocation5 + $0xcb0] sm:$0xff] }
 0x1cc   :  { %v10390_v36 = vld [vmem:[#allocation2 + $0x10] ss:$28 sps:$4 sm:$0xff]  }
 0x1cd   :  { %3297 = vmatpush1.bf16.msra.mxu0 %v8531_v52  ;;  %3469 = vmatpush1.bf16.msra.mxu1 %v8533_v53  ;;  %v453_v52 = vld [vmem:[#allocation5 + $0xb38] sm:$0xff]  ;;  %v8595_v53 = vcombine.low %v440_v41, %v444_v42 }
 0x1ce   :  { %3298 = vmatprep.subr.bf16.mxu0 %v8540_v54  ;;  %3470 = vmatprep.subr.bf16.mxu1 %v8542_v58  ;;  %v8597_v54 = vcombine.low %v441_v43, %v445_v44  ;;  %v8606_v56 = vcombine.high %v449_v51, %v453_v52  ;;  %v460_v58 = vld [vmem:[#allocation5 + $0xb70] sm:$0xff] }
 0x1cf   :  { %v8612_v63 = vcombine.high %v456_v57, %v460_v58  ;;  %v504_v43 = vld [vmem:[#allocation5 + $0xcd0] sm:$0xff] }
 0x1d0   :  { %v508_v44 = vld [vmem:[#allocation5 + $0xcf0] sm:$0xff] }
 0x1d1   :  { %3299 = vmatpush1.bf16.msra.mxu0 %v8539_v60  ;;  %3471 = vmatpush1.bf16.msra.mxu1 %v8541_v61  ;;  %v461_v60 = vld [vmem:[#allocation5 + $0xb78] sm:$0xff]  ;;  %v8603_v61 = vcombine.low %v448_v49, %v452_v50  ;;  %v8660_v50 = vcombine.high %v504_v43, %v508_v44 }
 0x1d2   :  { %3300 = vmatprep.subr.bf16.mxu0 %v8548_v62  ;;  %3472 = vmatprep.subr.bf16.mxu1 %v8550_v2  ;;  %v8605_v62 = vcombine.low %v449_v51, %v453_v52  ;;  %v8614_v0 = vcombine.high %v457_v59, %v461_v60  ;;  %v468_v2 = vld [vmem:[#allocation5 + $0xbb0] sm:$0xff] }
 0x1d3   :  { %v8620_v7 = vcombine.high %v464_v1, %v468_v2  ;;  %v512_v52 = vld [vmem:[#allocation5 + $0xd10] sm:$0xff] }
 0x1d5   :  { %3301 = vmatpush1.bf16.msra.mxu0 %v8547_v4  ;;  %3473 = vmatpush1.bf16.msra.mxu1 %v8549_v5  ;;  %v469_v4 = vld [vmem:[#allocation5 + $0xbb8] sm:$0xff]  ;;  %v8611_v5 = vcombine.low %v456_v57, %v460_v58  ;;  %v8659_v57 = vcombine.low %v504_v43, %v508_v44 }
 0x1d6   :  { %3302 = vmatprep.subr.bf16.mxu0 %v8556_v6  ;;  %3474 = vmatprep.subr.bf16.mxu1 %v8558_v10  ;;  %v8613_v6 = vcombine.low %v457_v59, %v461_v60  ;;  %v8622_v8 = vcombine.high %v465_v3, %v469_v4  ;;  %v476_v10 = vld [vmem:[#allocation5 + $0xbf0] sm:$0xff] }
 0x1d7   :  { %v8628_v15 = vcombine.high %v472_v9, %v476_v10  ;;  %v520_v60 = vld [vmem:[#allocation5 + $0xd50] sm:$0xff] }
 0x1d9   :  { %3303 = vmatpush1.bf16.msra.mxu0 %v8555_v12  ;;  %3475 = vmatpush1.bf16.msra.mxu1 %v8557_v13  ;;  %v477_v12 = vld [vmem:[#allocation5 + $0xbf8] sm:$0xff]  ;;  %v8619_v13 = vcombine.low %v464_v1, %v468_v2  ;;  %v10644_v2 = vld [vmem:[#allocation7] sm:$0xff] }
 0x1da   :  { %3304 = vmatprep.subr.bf16.mxu0 %v8564_v14  ;;  %3476 = vmatprep.subr.bf16.mxu1 %v8566_v18  ;;  %v8621_v14 = vcombine.low %v465_v3, %v469_v4  ;;  %v8630_v16 = vcombine.high %v473_v11, %v477_v12  ;;  %v484_v18 = vld [vmem:[#allocation5 + $0xc30] sm:$0xff] }
 0x1db   :  { %v8636_v23 = vcombine.high %v480_v17, %v484_v18  ;;  %v8635_v29 = vcombine.low %v480_v17, %v484_v18 }
 0x1dd   :  { %3305 = vmatpush1.bf16.msra.mxu0 %v8563_v20  ;;  %3477 = vmatpush1.bf16.msra.mxu1 %v8565_v21  ;;  %v485_v20 = vld [vmem:[#allocation5 + $0xc38] sm:$0xff]  ;;  %v8627_v21 = vcombine.low %v472_v9, %v476_v10  ;;  %v528_v9 = vld [vmem:[#allocation5 + $0xd90] sm:$0xff] }
 0x1de   :  { %3306 = vmatprep.subr.bf16.mxu0 %v8572_v22  ;;  %3478 = vmatprep.subr.bf16.mxu1 %v8574_v26  ;;  %v8629_v22 = vcombine.low %v473_v11, %v477_v12  ;;  %v8638_v24 = vcombine.high %v481_v19, %v485_v20  ;;  %v492_v26 = vld [vmem:[#allocation5 + $0xc70] sm:$0xff]  ;;  %v8637_v30 = vcombine.low %v481_v19, %v485_v20  ;;  %v529_v12 = vld [vmem:[#allocation5 + $0xd98] sm:$0xff] }
 0x1df   :  { %v532_v10 = vld [vmem:[#allocation5 + $0xdb0] sm:$0xff] }
 0x1e0   :  { %v8684_v19 = vcombine.high %v528_v9, %v532_v10 }
 0x1e1   :  { %3307 = vmatpush1.bf16.msra.mxu0 %v8571_v28  ;;  %3479 = vmatpush1.bf16.msra.mxu1 %v8573_v31  ;;  %v493_v28 = vld [vmem:[#allocation5 + $0xc78] sm:$0xff]  ;;  %v8644_v31 = vcombine.high %v488_v25, %v492_v26 }
 0x1e2   :  { %3308 = vmatprep.subr.bf16.mxu0 %v8580_v33  ;;  %3480 = vmatprep.subr.bf16.mxu1 %v8582_v34  ;;  %v8646_v33 = vcombine.high %v489_v27, %v493_v28  ;;  %v496_v34 = vld [vmem:[#allocation5 + $0xc90] sm:$0xff] }
 0x1e3   :  { %v8652_v41 = vcombine.high %v496_v34, %v500_v35 }
 0x1e5   :  { %3309 = vmatpush1.bf16.msra.mxu0 %v8579_v37  ;;  %3481 = vmatpush1.bf16.msra.mxu1 %v8581_v38  ;;  %v497_v37 = vld [vmem:[#allocation5 + $0xc98] sm:$0xff] }
 0x1e6   :  { %3310 = vmatprep.subr.bf16.mxu0 %v8588_v39  ;;  %3482 = vmatprep.subr.bf16.mxu1 %v8590_v40  ;;  %v501_v38 = vld [vmem:[#allocation5 + $0xcb8] sm:$0xff]  ;;  %v8643_v39 = vcombine.low %v488_v25, %v492_v26  ;;  %v8645_v40 = vcombine.low %v489_v27, %v493_v28 }
 0x1e7   :  { %v8654_v42 = vcombine.high %v497_v37, %v501_v38  ;;  %v8653_v49 = vcombine.low %v497_v37, %v501_v38  ;;  %v537_v27 = vld [vmem:[#allocation5 + $0xdd8] sm:$0xff] }
 0x1e8   :  { %v541_v28 = vld [vmem:[#allocation5 + $0xdf8] sm:$0xff] }
 0x1e9   :  { %3311 = vmatpush1.bf16.msra.mxu0 %v8587_v45  ;;  %3483 = vmatpush1.bf16.msra.mxu1 %v8589_v46  ;;  %v505_v45 = vld [vmem:[#allocation5 + $0xcd8] sm:$0xff]  ;;  %v8694_v44 = vcombine.high %v537_v27, %v541_v28 }
 0x1ea   :  { %3312 = vmatprep.subr.bf16.mxu0 %v8596_v47  ;;  %3484 = vmatprep.subr.bf16.mxu1 %v8598_v48  ;;  %v509_v46 = vld [vmem:[#allocation5 + $0xcf8] sm:$0xff]  ;;  %v544_v47 = vlaneseq  ;;  %v8651_v48 = vcombine.low %v496_v34, %v500_v35  ;;  %v8683_v34 = vcombine.low %v528_v9, %v532_v10 }
 0x1eb   :  { %v8662_v51 = vcombine.high %v505_v45, %v509_v46  ;;  %v8661_v58 = vcombine.low %v505_v45, %v509_v46  ;;  %v9522_v9 = vld [vmem:[#allocation8 + $0x50] ss:$36 sps:$4 sm:$0xff]  }
 0x1ec   :  { %v9527_v10 = vld [vmem:[#allocation8 + $0x94] ss:$36 sps:$4 sm:$0xff]  }
 0x1ed   :  { %3313 = vmatpush1.bf16.msra.mxu0 %v8595_v53  ;;  %3485 = vmatpush1.bf16.msra.mxu1 %v8597_v54  ;;  %v516_v53 = vld [vmem:[#allocation5 + $0xd30] sm:$0xff]  ;;  %v513_v54 = vld [vmem:[#allocation5 + $0xd18] sm:$0xff] }
 0x1ee   :  { %3314 = vmatprep.subr.bf16.mxu0 %v8604_v55  ;;  %3486 = vmatprep.subr.bf16.mxu1 %v8606_v56  ;;  %v517_v55 = vld [vmem:[#allocation5 + $0xd38] sm:$0xff]  ;;  %v10641_v56 = vshrl.u32 %v544_v47, 7  ;;  %v8667_v1 = vcombine.low %v512_v52, %v516_v53 }
 0x1ef   :  { %v8670_v59 = vcombine.high %v513_v54, %v517_v55 }
 0x1f0   :  { %v554_v3 = vsub.s32 2, %v10641_v56  ;;  %v550_v4 = vsub.s32 1, %v10641_v56 }
 0x1f1   :  { %3315 = vmatpush1.bf16.msra.mxu0 %v8603_v61  ;;  %3487 = vmatpush1.bf16.msra.mxu1 %v8605_v62  ;;  %v524_v61 = vld [vmem:[#allocation5 + $0xd70] sm:$0xff]  ;;  %v546_v62 = vsub.s32 0, %v10641_v56 }
 0x1f2   :  { %3316 = vmatprep.subr.bf16.mxu0 %v8612_v63  ;;  %3488 = vmatprep.subr.bf16.mxu1 %v8614_v0  ;;  %v521_v63 = vld [vmem:[#allocation5 + $0xd58] sm:$0xff] }
 0x1f3   :  { %v525_v0 = vld [vmem:[#allocation5 + $0xd78] sm:$0xff]  ;;  %v547_v11 = vrot.slane %v10644_v2, %v546_v62 }
 0x1f4   :  { %v8677_v18 = vcombine.low %v521_v63, %v525_v0 }
 0x1f5   :  { %3317 = vmatpush1.bf16.msra.mxu0 %v8611_v5  ;;  %3489 = vmatpush1.bf16.msra.mxu1 %v8613_v6  ;;  %v8669_v5 = vcombine.low %v513_v54, %v517_v55  ;;  %v558_v6 = vsub.s32 3, %v10641_v56 }
 0x1f6   :  { %3318 = vmatprep.subr.bf16.mxu0 %v8620_v7  ;;  %3490 = vmatprep.subr.bf16.mxu1 %v8622_v8  ;;  %v8676_v7 = vcombine.high %v520_v60, %v524_v61  ;;  %v8678_v8 = vcombine.high %v521_v63, %v525_v0  ;;  %v9513_v63 = vld [vmem:[#allocation8] ss:$36 sps:$4 sm:$0xff]   ;;  %v9516_v0 = vld [vmem:[#allocation8 + $0x8] ss:$36 sps:$4 sm:$0xff]  }
 0x1f7   :  { %v559_v17 = vrot.slane %v10644_v2, %v558_v6 }
 0x1f9   :  { %3319 = vmatpush1.bf16.msra.mxu0 %v8619_v13  ;;  %3491 = vmatpush1.bf16.msra.mxu1 %v8621_v14  ;;  %v533_v13 = vld [vmem:[#allocation5 + $0xdb8] sm:$0xff]  ;;  %v555_v14 = vrot.slane %v10644_v2, %v554_v3 }
 0x1fa   :  { %3320 = vmatprep.subr.bf16.mxu0 %v8628_v15  ;;  %3492 = vmatprep.subr.bf16.mxu1 %v8630_v16  ;;  %v551_v15 = vrot.slane %v10644_v2, %v550_v4  ;;  %v8675_v16 = vcombine.low %v520_v60, %v524_v61  ;;  %v8685_v35 = vcombine.low %v529_v12, %v533_v13  ;;  %v9518_v60 = vld [vmem:[#allocation8 + $0xc] ss:$36 sps:$4 sm:$0xff]  }
 0x1fd   :  { %3321 = vmatpush1.bf16.msra.mxu0 %v8627_v21  ;;  %3493 = vmatpush1.bf16.msra.mxu1 %v8629_v22  ;;  %v8686_v21 = vcombine.high %v529_v12, %v533_v13  ;;  %v536_v22 = vld [vmem:[#allocation5 + $0xdd0] sm:$0xff]  ;;  %v9525_v12 = vld [vmem:[#allocation8 + $0x90] ss:$36 sps:$4 sm:$0xff]   ;;  %v9528_v13 = vld [vmem:[#allocation8 + $0x98] ss:$36 sps:$4 sm:$0xff]  }
 0x1fe   :  { %3333 = vmatprep.subr.bf16.mxu0 %v8636_v23  ;;  %3505 = vmatprep.subr.bf16.mxu1 %v8638_v24  ;;  %v540_v23 = vld [vmem:[#allocation5 + $0xdf0] sm:$0xff] }
 0x200   :  { %3323 = vmatmul.mubr.bf16.vlgmr.msra.gmra.mrb[4].mxu0 %v10390_v36  ;;  %3495 = vmatmul.mubr.bf16.vlgmr.msra.gmra.mrb[4].mxu1 %v10390_v36 }
 0x201   :  { %3334 = vmatpush1.bf16.msra.mxu0 %v8635_v29  ;;  %3506 = vmatpush1.bf16.msra.mxu1 %v8637_v30 }
 0x202   :  { %3335 = vmatprep.subr.bf16.mxu0 %v8644_v31  ;;  %3507 = vmatprep.subr.bf16.mxu1 %v8646_v33 }
 0x203   :  { %3365 = vmatprep.mubr.bf16.mxu0 %v10543_v32  ;;  %3537 = vmatprep.mubr.bf16.mxu1 %v10543_v32  ;;  %v8668_v32 = vcombine.high %v512_v52, %v516_v53 }
 0x205   :  { %3336 = vmatpush1.bf16.msra.mxu0 %v8643_v39  ;;  %3508 = vmatpush1.bf16.msra.mxu1 %v8645_v40  ;;  %v8692_v40 = vcombine.high %v536_v22, %v540_v23 }
 0x206   :  { %3337 = vmatprep.subr.bf16.mxu0 %v8652_v41  ;;  %3509 = vmatprep.subr.bf16.mxu1 %v8654_v42 }
 0x209   :  { %3338 = vmatpush1.bf16.msra.mxu0 %v8651_v48  ;;  %3510 = vmatpush1.bf16.msra.mxu1 %v8653_v49  ;;  %v8691_v48 = vcombine.low %v536_v22, %v540_v23  ;;  %v9545_v22 = vld [vmem:[#allocation8 + $0x16c] ss:$36 sps:$4 sm:$0xff]   ;;  %v9548_v23 = vld [vmem:[#allocation8 + $0x174] ss:$36 sps:$4 sm:$0xff]  }
 0x20a   :  { %3339 = vmatprep.subr.bf16.mxu0 %v8660_v50  ;;  %3511 = vmatprep.subr.bf16.mxu1 %v8662_v51 }
 0x20d   :  { %3340 = vmatpush1.bf16.msra.mxu0 %v8659_v57  ;;  %3512 = vmatpush1.bf16.msra.mxu1 %v8661_v58  ;;  %v8693_v57 = vcombine.low %v537_v27, %v541_v28  ;;  %v9515_v58 = vld [vmem:[#allocation8 + $0x4] ss:$36 sps:$4 sm:$0xff]   ;;  %v9554_v27 = vld [vmem:[#allocation8 + $0x1bc] ss:$36 sps:$4 sm:$0xff]   ;;  %v9549_v28 = vld [vmem:[#allocation8 + $0x1b0] ss:$36 sps:$4 sm:$0xff]  }
 0x20e   :  { %3341 = vmatprep.subr.bf16.mxu0 %v8668_v32  ;;  %3513 = vmatprep.subr.bf16.mxu1 %v8670_v59 }
 0x211   :  { %3342 = vmatpush1.bf16.msra.mxu0 %v8667_v1  ;;  %3514 = vmatpush1.bf16.msra.mxu1 %v8669_v5  ;;  %v9521_v1 = vld [vmem:[#allocation8 + $0x4c] ss:$36 sps:$4 sm:$0xff]   ;;  %v10391_v5 = vld [vmem:[#allocation2 + $0x18] ss:$28 sps:$4 sm:$0xff]  }
 0x212   :  { %3343 = vmatprep.subr.bf16.mxu0 %v8676_v7  ;;  %3515 = vmatprep.subr.bf16.mxu1 %v8678_v8  ;;  %v9524_v7 = vld [vmem:[#allocation8 + $0x54] ss:$36 sps:$4 sm:$0xff]   ;;  %v9519_v8 = vld [vmem:[#allocation8 + $0x48] ss:$36 sps:$4 sm:$0xff]  }
 0x213   :  { %v3023_v20 = vpop.f32.mrb[0].mxu0  ;;  %v3195_v25 = vpop.f32.mrb[0].mxu1 }
 0x214   :  { %v9360_v24 = vadd.f32 %v3023_v20, %v547_v11  ;;  %v3025_v26 = vpop.f32.mrb[1].mxu0  ;;  %v9364_v29 = vadd.f32 %v3195_v25, %v555_v14  ;;  %v3197_v31 = vpop.f32.mrb[1].mxu1  ;;  %v9537_v20 = vld [vmem:[#allocation8 + $0x120] ss:$36 sps:$4 sm:$0xff]   ;;  %v9546_v25 = vld [vmem:[#allocation8 + $0x170] ss:$36 sps:$4 sm:$0xff]  }
 0x215   :  { %v9361_v30 = vadd.f32 %v3025_v26, %v551_v15  ;;  %v3027_v33 = vpop.f32.mrb[2].mxu0  ;;  %3344 = vmatpush1.bf16.msra.mxu0 %v8675_v16  ;;  %v9365_v36 = vadd.f32 %v3197_v31, %v559_v17  ;;  %v3199_v38 = vpop.f32.mrb[2].mxu1  ;;  %3516 = vmatpush1.bf16.msra.mxu1 %v8677_v18  ;;  %v9531_v16 = vld [vmem:[#allocation8 + $0xd8] ss:$36 sps:$4 sm:$0xff]   ;;  %v9539_v18 = vld [vmem:[#allocation8 + $0x124] ss:$36 sps:$4 sm:$0xff]  }
 0x216   :  { %v9362_v37 = vadd.f32 %v3027_v33, %v547_v11  ;;  %v3029_v39 = vpop.f32.mrb[3].mxu0  ;;  %3345 = vmatprep.subr.bf16.mxu0 %v8684_v19  ;;  %v9366_v41 = vadd.f32 %v3199_v38, %v555_v14  ;;  %v3201_v43 = vpop.f32.mrb[3].mxu1  ;;  %3517 = vmatprep.subr.bf16.mxu1 %v8686_v21  ;;  %v3548_v45 = vmax.f32 %v9360_v24, 0.0  ;;  %v3550_v49 = vmax.f32 %v9364_v29, 0.0  ;;  %v9530_v11 = vld [vmem:[#allocation8 + $0x9c] ss:$36 sps:$4 sm:$0xff]  }
 0x217   :  { %v9363_v42 = vadd.f32 %v3029_v39, %v551_v15  ;;  %v9367_v47 = vadd.f32 %v3201_v43, %v559_v17  ;;  %v3549_v50 = vmax.f32 %v9361_v30, 0.0  ;;  %v3551_v53 = vmax.f32 %v9365_v36, 0.0  ;;  %v9533_v14 = vld [vmem:[#allocation8 + $0xdc] ss:$36 sps:$4 sm:$0xff]   ;;  %v9536_v15 = vld [vmem:[#allocation8 + $0xe4] ss:$36 sps:$4 sm:$0xff]  }
 0x218   :  { %v3556_v46 = vmax.f32 %v9362_v37, 0.0  ;;  %v3558_v51 = vmax.f32 %v9366_v41, 0.0  ;;  %v9534_v17 = vld [vmem:[#allocation8 + $0xe0] ss:$36 sps:$4 sm:$0xff]   ;;  %v9542_v19 = vld [vmem:[#allocation8 + $0x12c] ss:$36 sps:$4 sm:$0xff]  }
 0x219   :  { %v3557_v52 = vmax.f32 %v9363_v42, 0.0  ;;  %3346 = vmatpush1.bf16.msra.mxu0 %v8683_v34  ;;  %v3559_v55 = vmax.f32 %v9367_v47, 0.0  ;;  %3518 = vmatpush1.bf16.msra.mxu1 %v8685_v35  ;;  %v9540_v21 = vld [vmem:[#allocation8 + $0x128] ss:$36 sps:$4 sm:$0xff]   ;;  %v9551_v26 = vld [vmem:[#allocation8 + $0x1b4] ss:$36 sps:$4 sm:$0xff]  }
 0x21a   :  { %v10661_v54 = vpack.c.bf16 %v3556_v46, %v3548_v45  ;;  %3347 = vmatprep.subr.bf16.mxu0 %v8692_v40  ;;  %v10663_v32 = vpack.c.bf16 %v3558_v51, %v3550_v49  ;;  %3519 = vmatprep.subr.bf16.mxu1 %v8694_v44  ;;  %v9543_v24 = vld [vmem:[#allocation8 + $0x168] ss:$36 sps:$4 sm:$0xff]   ;;  %v9552_v29 = vld [vmem:[#allocation8 + $0x1b8] ss:$36 sps:$4 sm:$0xff]   ;;  %v9558_v34 = vld [vmem:[#allocation8 + $0x200] ss:$36 sps:$4 sm:$0xff]  }
 0x21b   :  { %v10665_v59 = vpack.c.bf16 %v3557_v52, %v3549_v50  ;;  %v10667_v61 = vpack.c.bf16 %v3559_v55, %v3551_v53  ;;  %v9557_v30 = vld [vmem:[#allocation8 + $0x1fc] ss:$36 sps:$4 sm:$0xff]   ;;  %v9560_v31 = vld [vmem:[#allocation8 + $0x204] ss:$36 sps:$4 sm:$0xff]   ;;  %v9566_v36 = vld [vmem:[#allocation8 + $0x24c] ss:$36 sps:$4 sm:$0xff]  }
 0x21c   :  { %v9555_v33 = vld [vmem:[#allocation8 + $0x1f8] ss:$36 sps:$4 sm:$0xff]   ;;  %v9563_v35 = vld [vmem:[#allocation8 + $0x244] ss:$36 sps:$4 sm:$0xff]   ;;  %v9569_v39 = vld [vmem:[#allocation8 + $0x28c] ss:$36 sps:$4 sm:$0xff]  }
 0x21d   :  { %3348 = vmatpush1.bf16.msra.mxu0 %v8691_v48  ;;  %3520 = vmatpush1.bf16.msra.mxu1 %v8693_v57  ;;  %v9561_v37 = vld [vmem:[#allocation8 + $0x240] ss:$36 sps:$4 sm:$0xff]   ;;  %v9564_v38 = vld [vmem:[#allocation8 + $0x248] ss:$36 sps:$4 sm:$0xff]   ;;  %v9572_v40 = vld [vmem:[#allocation8 + $0x294] ss:$36 sps:$4 sm:$0xff]  }
 0x21e   :  { %7205 = vmatprep.subr.bf16.mxu0 %v9515_v58  ;;  %7377 = vmatprep.subr.bf16.mxu1 %v9518_v60  ;;  %v9567_v41 = vld [vmem:[#allocation8 + $0x288] ss:$36 sps:$4 sm:$0xff]   ;;  %v9570_v42 = vld [vmem:[#allocation8 + $0x290] ss:$36 sps:$4 sm:$0xff]   ;;  %v9578_v44 = vld [vmem:[#allocation8 + $0x2dc] ss:$36 sps:$4 sm:$0xff]  }
 0x21f   :  { %v9575_v43 = vld [vmem:[#allocation8 + $0x2d4] ss:$36 sps:$4 sm:$0xff]   ;;  %v9581_v47 = vld [vmem:[#allocation8 + $0x31c] ss:$36 sps:$4 sm:$0xff]   ;;  %v9584_v48 = vld [vmem:[#allocation8 + $0x324] ss:$36 sps:$4 sm:$0xff]  }
 0x220   :  { %3366 = vmatmul.mubr.bf16.vlgmr.msra.gmra.mrb[4].mxu0 %v10391_v5  ;;  %3538 = vmatmul.mubr.bf16.vlgmr.msra.gmra.mrb[4].mxu1 %v10391_v5  ;;  %v9573_v45 = vld [vmem:[#allocation8 + $0x2d0] ss:$36 sps:$4 sm:$0xff]   ;;  %v9576_v46 = vld [vmem:[#allocation8 + $0x2d8] ss:$36 sps:$4 sm:$0xff]   ;;  %v9582_v50 = vld [vmem:[#allocation8 + $0x320] ss:$36 sps:$4 sm:$0xff]  }
 0x221   :  { %7206 = vmatpush1.bf16.msra.mxu0 %v9513_v63  ;;  %7237 = vmatprep.mubr.bf16.mxu0 %v10665_v59  ;;  %v9579_v49 = vld [vmem:[#allocation8 + $0x318] ss:$36 sps:$4 sm:$0xff]   ;;  %v9587_v51 = vld [vmem:[#allocation8 + $0x364] ss:$36 sps:$4 sm:$0xff]   ;;  %v9590_v52 = vld [vmem:[#allocation8 + $0x36c] ss:$36 sps:$4 sm:$0xff]  }
 0x222   :  { %7378 = vmatpush1.bf16.msra.mxu1 %v9516_v0  ;;  %7409 = vmatprep.mubr.bf16.mxu1 %v10665_v59  ;;  %v9585_v53 = vld [vmem:[#allocation8 + $0x360] ss:$36 sps:$4 sm:$0xff]   ;;  %v9588_v55 = vld [vmem:[#allocation8 + $0x368] ss:$36 sps:$4 sm:$0xff]   ;;  %v9596_v58 = vld [vmem:[#allocation8 + $0x3b4] ss:$36 sps:$4 sm:$0xff]  }
 0x223   :  { %7207 = vmatprep.subr.bf16.mxu0 %v9521_v1  ;;  %7379 = vmatprep.subr.bf16.mxu1 %v9524_v7  ;;  %v9593_v57 = vld [vmem:[#allocation8 + $0x3ac] ss:$36 sps:$4 sm:$0xff]   ;;  %v9599_v0 = vld [vmem:[#allocation8 + $0x3f4] ss:$36 sps:$4 sm:$0xff]   ;;  %v9602_v1 = vld [vmem:[#allocation8 + $0x3fc] ss:$36 sps:$4 sm:$0xff]  }
 0x224   :  { %v9591_v60 = vld [vmem:[#allocation8 + $0x3a8] ss:$36 sps:$4 sm:$0xff]   ;;  %v9594_v63 = vld [vmem:[#allocation8 + $0x3b0] ss:$36 sps:$4 sm:$0xff]   ;;  %v9600_v7 = vld [vmem:[#allocation8 + $0x3f8] ss:$36 sps:$4 sm:$0xff]  }
 0x225   :  { %7208 = vmatpush1.bf16.msra.mxu0 %v9519_v8  ;;  %v9597_v5 = vld [vmem:[#allocation8 + $0x3f0] ss:$36 sps:$4 sm:$0xff]   ;;  %v9605_v8 = vld [vmem:[#allocation8 + $0x43c] ss:$36 sps:$4 sm:$0xff]  }
 0x226   :  { %7380 = vmatpush1.bf16.msra.mxu1 %v9522_v9  ;;  %7209 = vmatprep.subr.bf16.mxu0 %v9527_v10  ;;  %v9608_v9 = vld [vmem:[#allocation8 + $0x444] ss:$36 sps:$4 sm:$0xff]   ;;  %v9603_v10 = vld [vmem:[#allocation8 + $0x438] ss:$36 sps:$4 sm:$0xff]  }
 0x227   :  { %7381 = vmatprep.subr.bf16.mxu1 %v9530_v11  ;;  %v9606_v11 = vld [vmem:[#allocation8 + $0x440] ss:$36 sps:$4 sm:$0xff]  }
 0x229   :  { %7210 = vmatpush1.bf16.msra.mxu0 %v9525_v12  ;;  %v9611_v12 = vld [vmem:[#allocation8 + $0x484] ss:$36 sps:$4 sm:$0xff]  }
 0x22a   :  { %7382 = vmatpush1.bf16.msra.mxu1 %v9528_v13  ;;  %7211 = vmatprep.subr.bf16.mxu0 %v9533_v14  ;;  %v9614_v13 = vld [vmem:[#allocation8 + $0x48c] ss:$36 sps:$4 sm:$0xff]   ;;  %v9609_v14 = vld [vmem:[#allocation8 + $0x480] ss:$36 sps:$4 sm:$0xff]  }
 0x22b   :  { %7383 = vmatprep.subr.bf16.mxu1 %v9536_v15  ;;  %v9612_v15 = vld [vmem:[#allocation8 + $0x488] ss:$36 sps:$4 sm:$0xff]  }
 0x22d   :  { %7212 = vmatpush1.bf16.msra.mxu0 %v9531_v16  ;;  %v9617_v16 = vld [vmem:[#allocation8 + $0x4cc] ss:$36 sps:$4 sm:$0xff]  }
 0x22e   :  { %7384 = vmatpush1.bf16.msra.mxu1 %v9534_v17  ;;  %7213 = vmatprep.subr.bf16.mxu0 %v9539_v18  ;;  %v9620_v17 = vld [vmem:[#allocation8 + $0x4d4] ss:$36 sps:$4 sm:$0xff]   ;;  %v9615_v18 = vld [vmem:[#allocation8 + $0x4c8] ss:$36 sps:$4 sm:$0xff]  }
 0x22f   :  { %7385 = vmatprep.subr.bf16.mxu1 %v9542_v19  ;;  %v9618_v19 = vld [vmem:[#allocation8 + $0x4d0] ss:$36 sps:$4 sm:$0xff]  }
 0x231   :  { %7214 = vmatpush1.bf16.msra.mxu0 %v9537_v20  ;;  %v9623_v20 = vld [vmem:[#allocation8 + $0x514] ss:$36 sps:$4 sm:$0xff]  }
 0x232   :  { %7386 = vmatpush1.bf16.msra.mxu1 %v9540_v21  ;;  %7215 = vmatprep.subr.bf16.mxu0 %v9545_v22  ;;  %v9626_v21 = vld [vmem:[#allocation8 + $0x51c] ss:$36 sps:$4 sm:$0xff]   ;;  %v9621_v22 = vld [vmem:[#allocation8 + $0x510] ss:$36 sps:$4 sm:$0xff]  }
 0x233   :  { %7387 = vmatprep.subr.bf16.mxu1 %v9548_v23  ;;  %v9624_v23 = vld [vmem:[#allocation8 + $0x518] ss:$36 sps:$4 sm:$0xff]  }
 0x235   :  { %7216 = vmatpush1.bf16.msra.mxu0 %v9543_v24  ;;  %v9629_v24 = vld [vmem:[#allocation8 + $0x55c] ss:$36 sps:$4 sm:$0xff]  }
 0x236   :  { %7388 = vmatpush1.bf16.msra.mxu1 %v9546_v25  ;;  %7217 = vmatprep.subr.bf16.mxu0 %v9551_v26  ;;  %v9632_v25 = vld [vmem:[#allocation8 + $0x564] ss:$36 sps:$4 sm:$0xff]   ;;  %v9627_v26 = vld [vmem:[#allocation8 + $0x558] ss:$36 sps:$4 sm:$0xff]  }
 0x237   :  { %7389 = vmatprep.subr.bf16.mxu1 %v9554_v27  ;;  %v9630_v27 = vld [vmem:[#allocation8 + $0x560] ss:$36 sps:$4 sm:$0xff]  }
 0x239   :  { %7218 = vmatpush1.bf16.msra.mxu0 %v9549_v28  ;;  %v9635_v28 = vld [vmem:[#allocation8 + $0x5a4] ss:$36 sps:$4 sm:$0xff]  }
 0x23a   :  { %7390 = vmatpush1.bf16.msra.mxu1 %v9552_v29  ;;  %7219 = vmatprep.subr.bf16.mxu0 %v9557_v30  ;;  %v9638_v29 = vld [vmem:[#allocation8 + $0x5ac] ss:$36 sps:$4 sm:$0xff]   ;;  %v9633_v30 = vld [vmem:[#allocation8 + $0x5a0] ss:$36 sps:$4 sm:$0xff]  }
 0x23b   :  { %7391 = vmatprep.subr.bf16.mxu1 %v9560_v31  ;;  %v9636_v31 = vld [vmem:[#allocation8 + $0x5a8] ss:$36 sps:$4 sm:$0xff]  }
 0x23d   :  { %7220 = vmatpush1.bf16.msra.mxu0 %v9555_v33  ;;  %v9641_v33 = vld [vmem:[#allocation8 + $0x5ec] ss:$36 sps:$4 sm:$0xff]  }
 0x23e   :  { %7392 = vmatpush1.bf16.msra.mxu1 %v9558_v34  ;;  %7221 = vmatprep.subr.bf16.mxu0 %v9563_v35  ;;  %v9644_v34 = vld [vmem:[#allocation8 + $0x5f4] ss:$36 sps:$4 sm:$0xff]   ;;  %v9639_v35 = vld [vmem:[#allocation8 + $0x5e8] ss:$36 sps:$4 sm:$0xff]  }
 0x23f   :  { %7393 = vmatprep.subr.bf16.mxu1 %v9566_v36  ;;  %v9642_v36 = vld [vmem:[#allocation8 + $0x5f0] ss:$36 sps:$4 sm:$0xff]  }
 0x241   :  { %7222 = vmatpush1.bf16.msra.mxu0 %v9561_v37  ;;  %v9647_v37 = vld [vmem:[#allocation8 + $0x634] ss:$36 sps:$4 sm:$0xff]  }
 0x242   :  { %7394 = vmatpush1.bf16.msra.mxu1 %v9564_v38  ;;  %7223 = vmatprep.subr.bf16.mxu0 %v9569_v39  ;;  %v9650_v38 = vld [vmem:[#allocation8 + $0x63c] ss:$36 sps:$4 sm:$0xff]   ;;  %v9645_v39 = vld [vmem:[#allocation8 + $0x630] ss:$36 sps:$4 sm:$0xff]  }
 0x243   :  { %7395 = vmatprep.subr.bf16.mxu1 %v9572_v40  ;;  %v9648_v40 = vld [vmem:[#allocation8 + $0x638] ss:$36 sps:$4 sm:$0xff]  }
 0x245   :  { %7224 = vmatpush1.bf16.msra.mxu0 %v9567_v41  ;;  %v9653_v41 = vld [vmem:[#allocation8 + $0x67c] ss:$36 sps:$4 sm:$0xff]  }
 0x246   :  { %7396 = vmatpush1.bf16.msra.mxu1 %v9570_v42  ;;  %7225 = vmatprep.subr.bf16.mxu0 %v9575_v43  ;;  %v9656_v42 = vld [vmem:[#allocation8 + $0x684] ss:$36 sps:$4 sm:$0xff]   ;;  %v9651_v43 = vld [vmem:[#allocation8 + $0x678] ss:$36 sps:$4 sm:$0xff]  }
 0x247   :  { %7397 = vmatprep.subr.bf16.mxu1 %v9578_v44  ;;  %v9654_v44 = vld [vmem:[#allocation8 + $0x680] ss:$36 sps:$4 sm:$0xff]  }
 0x249   :  { %7226 = vmatpush1.bf16.msra.mxu0 %v9573_v45  ;;  %v9659_v45 = vld [vmem:[#allocation8 + $0x6c4] ss:$36 sps:$4 sm:$0xff]  }
 0x24a   :  { %7398 = vmatpush1.bf16.msra.mxu1 %v9576_v46  ;;  %7227 = vmatprep.subr.bf16.mxu0 %v9581_v47  ;;  %v9662_v46 = vld [vmem:[#allocation8 + $0x6cc] ss:$36 sps:$4 sm:$0xff]   ;;  %v9657_v47 = vld [vmem:[#allocation8 + $0x6c0] ss:$36 sps:$4 sm:$0xff]  }
 0x24b   :  { %7399 = vmatprep.subr.bf16.mxu1 %v9584_v48  ;;  %v9660_v48 = vld [vmem:[#allocation8 + $0x6c8] ss:$36 sps:$4 sm:$0xff]  }
 0x24d   :  { %7228 = vmatpush1.bf16.msra.mxu0 %v9579_v49  ;;  %v9665_v49 = vld [vmem:[#allocation8 + $0x70c] ss:$36 sps:$4 sm:$0xff]  }
 0x24e   :  { %7400 = vmatpush1.bf16.msra.mxu1 %v9582_v50  ;;  %7229 = vmatprep.subr.bf16.mxu0 %v9587_v51  ;;  %v9668_v50 = vld [vmem:[#allocation8 + $0x714] ss:$36 sps:$4 sm:$0xff]   ;;  %v9663_v51 = vld [vmem:[#allocation8 + $0x708] ss:$36 sps:$4 sm:$0xff]  }
 0x24f   :  { %7401 = vmatprep.subr.bf16.mxu1 %v9590_v52  ;;  %v9666_v52 = vld [vmem:[#allocation8 + $0x710] ss:$36 sps:$4 sm:$0xff]  }
 0x251   :  { %7230 = vmatpush1.bf16.msra.mxu0 %v9585_v53  ;;  %v9671_v53 = vld [vmem:[#allocation8 + $0x754] ss:$36 sps:$4 sm:$0xff]  }
 0x252   :  { %7402 = vmatpush1.bf16.msra.mxu1 %v9588_v55  ;;  %7231 = vmatprep.subr.bf16.mxu0 %v9593_v57  ;;  %v9674_v55 = vld [vmem:[#allocation8 + $0x75c] ss:$36 sps:$4 sm:$0xff]   ;;  %v9669_v57 = vld [vmem:[#allocation8 + $0x750] ss:$36 sps:$4 sm:$0xff]  }
 0x253   :  { %7403 = vmatprep.subr.bf16.mxu1 %v9596_v58  ;;  %v9672_v58 = vld [vmem:[#allocation8 + $0x758] ss:$36 sps:$4 sm:$0xff]  }
 0x255   :  { %7232 = vmatpush1.bf16.msra.mxu0 %v9591_v60  ;;  %v9677_v60 = vld [vmem:[#allocation8 + $0x79c] ss:$36 sps:$4 sm:$0xff]  }
 0x256   :  { %7404 = vmatpush1.bf16.msra.mxu1 %v9594_v63  ;;  %7233 = vmatprep.subr.bf16.mxu0 %v9599_v0  ;;  %v9680_v63 = vld [vmem:[#allocation8 + $0x7a4] ss:$36 sps:$4 sm:$0xff]   ;;  %v9675_v0 = vld [vmem:[#allocation8 + $0x798] ss:$36 sps:$4 sm:$0xff]  }
 0x257   :  { %7405 = vmatprep.subr.bf16.mxu1 %v9602_v1  ;;  %v9678_v1 = vld [vmem:[#allocation8 + $0x7a0] ss:$36 sps:$4 sm:$0xff]  }
 0x259   :  { %7234 = vmatpush1.bf16.msra.mxu0 %v9597_v5  ;;  %v9683_v5 = vld [vmem:[#allocation8 + $0x7e4] ss:$36 sps:$4 sm:$0xff]  }
 0x25a   :  { %7406 = vmatpush1.bf16.msra.mxu1 %v9600_v7  ;;  %7235 = vmatprep.subr.bf16.mxu0 %v9605_v8  ;;  %v9686_v7 = vld [vmem:[#allocation8 + $0x7ec] ss:$36 sps:$4 sm:$0xff]   ;;  %v9681_v8 = vld [vmem:[#allocation8 + $0x7e0] ss:$36 sps:$4 sm:$0xff]  }
 0x25b   :  { %7407 = vmatprep.subr.bf16.mxu1 %v9608_v9  ;;  %v9684_v9 = vld [vmem:[#allocation8 + $0x7e8] ss:$36 sps:$4 sm:$0xff]  }
 0x25d   :  { %7236 = vmatpush1.bf16.msra.mxu0 %v9603_v10  ;;  %v9689_v10 = vld [vmem:[#allocation8 + $0x82c] ss:$36 sps:$4 sm:$0xff]  }
 0x25e   :  { %7408 = vmatpush1.bf16.msra.mxu1 %v9606_v11  ;;  %7248 = vmatprep.subr.bf16.mxu0 %v9611_v12  ;;  %v9692_v11 = vld [vmem:[#allocation8 + $0x834] ss:$36 sps:$4 sm:$0xff]   ;;  %v9687_v12 = vld [vmem:[#allocation8 + $0x828] ss:$36 sps:$4 sm:$0xff]  }
 0x25f   :  { %7420 = vmatprep.subr.bf16.mxu1 %v9614_v13  ;;  %v9690_v13 = vld [vmem:[#allocation8 + $0x830] ss:$36 sps:$4 sm:$0xff]  }
 0x260   :  { %7238 = vmatmul.mubr.bf16.vlgmr.msra.gmra.mrb[8].mxu0 %v10661_v54 }
 0x261   :  { %7410 = vmatmul.mubr.bf16.vlgmr.msra.gmra.mrb[8].mxu1 %v10661_v54  ;;  %7249 = vmatpush1.bf16.msra.mxu0 %v9609_v14  ;;  %v9695_v14 = vld [vmem:[#allocation8 + $0x874] ss:$36 sps:$4 sm:$0xff]  }
 0x262   :  { %7280 = vmatprep.mubr.bf16.mxu0 %v10667_v61  ;;  %7421 = vmatpush1.bf16.msra.mxu1 %v9612_v15  ;;  %v9698_v15 = vld [vmem:[#allocation8 + $0x87c] ss:$36 sps:$4 sm:$0xff]  }
 0x263   :  { %7452 = vmatprep.mubr.bf16.mxu1 %v10667_v61  ;;  %7250 = vmatprep.subr.bf16.mxu0 %v9617_v16  ;;  %v9693_v16 = vld [vmem:[#allocation8 + $0x870] ss:$36 sps:$4 sm:$0xff]  }
 0x264   :  { %7422 = vmatprep.subr.bf16.mxu1 %v9620_v17  ;;  %v9696_v17 = vld [vmem:[#allocation8 + $0x878] ss:$36 sps:$4 sm:$0xff]  }
 0x265   :  { %7251 = vmatpush1.bf16.msra.mxu0 %v9615_v18  ;;  %v9701_v18 = vld [vmem:[#allocation8 + $0x8bc] ss:$36 sps:$4 sm:$0xff]  }
 0x266   :  { %7423 = vmatpush1.bf16.msra.mxu1 %v9618_v19  ;;  %7252 = vmatprep.subr.bf16.mxu0 %v9623_v20  ;;  %v9704_v19 = vld [vmem:[#allocation8 + $0x8c4] ss:$36 sps:$4 sm:$0xff]   ;;  %v9699_v20 = vld [vmem:[#allocation8 + $0x8b8] ss:$36 sps:$4 sm:$0xff]  }
 0x267   :  { %7424 = vmatprep.subr.bf16.mxu1 %v9626_v21  ;;  %v9702_v21 = vld [vmem:[#allocation8 + $0x8c0] ss:$36 sps:$4 sm:$0xff]  }
 0x269   :  { %7253 = vmatpush1.bf16.msra.mxu0 %v9621_v22  ;;  %v9707_v22 = vld [vmem:[#allocation8 + $0x904] ss:$36 sps:$4 sm:$0xff]  }
 0x26a   :  { %7425 = vmatpush1.bf16.msra.mxu1 %v9624_v23  ;;  %7254 = vmatprep.subr.bf16.mxu0 %v9629_v24  ;;  %v9710_v23 = vld [vmem:[#allocation8 + $0x90c] ss:$36 sps:$4 sm:$0xff]   ;;  %v9705_v24 = vld [vmem:[#allocation8 + $0x900] ss:$36 sps:$4 sm:$0xff]  }
 0x26b   :  { %7426 = vmatprep.subr.bf16.mxu1 %v9632_v25  ;;  %v9708_v25 = vld [vmem:[#allocation8 + $0x908] ss:$36 sps:$4 sm:$0xff]  }
 0x26d   :  { %7255 = vmatpush1.bf16.msra.mxu0 %v9627_v26  ;;  %v9713_v26 = vld [vmem:[#allocation8 + $0x94c] ss:$36 sps:$4 sm:$0xff]  }
 0x26e   :  { %7427 = vmatpush1.bf16.msra.mxu1 %v9630_v27  ;;  %7256 = vmatprep.subr.bf16.mxu0 %v9635_v28  ;;  %v9716_v27 = vld [vmem:[#allocation8 + $0x954] ss:$36 sps:$4 sm:$0xff]   ;;  %v9711_v28 = vld [vmem:[#allocation8 + $0x948] ss:$36 sps:$4 sm:$0xff]  }
 0x26f   :  { %7428 = vmatprep.subr.bf16.mxu1 %v9638_v29  ;;  %v9714_v29 = vld [vmem:[#allocation8 + $0x950] ss:$36 sps:$4 sm:$0xff]  }
 0x271   :  { %7257 = vmatpush1.bf16.msra.mxu0 %v9633_v30  ;;  %v9719_v30 = vld [vmem:[#allocation8 + $0x994] ss:$36 sps:$4 sm:$0xff]  }
 0x272   :  { %7429 = vmatpush1.bf16.msra.mxu1 %v9636_v31  ;;  %7258 = vmatprep.subr.bf16.mxu0 %v9641_v33  ;;  %v9722_v31 = vld [vmem:[#allocation8 + $0x99c] ss:$36 sps:$4 sm:$0xff]   ;;  %v9717_v33 = vld [vmem:[#allocation8 + $0x990] ss:$36 sps:$4 sm:$0xff]  }
 0x273   :  { %7430 = vmatprep.subr.bf16.mxu1 %v9644_v34  ;;  %v9720_v34 = vld [vmem:[#allocation8 + $0x998] ss:$36 sps:$4 sm:$0xff]  }
 0x275   :  { %7259 = vmatpush1.bf16.msra.mxu0 %v9639_v35  ;;  %v9725_v35 = vld [vmem:[#allocation8 + $0x9dc] ss:$36 sps:$4 sm:$0xff]  }
 0x276   :  { %7431 = vmatpush1.bf16.msra.mxu1 %v9642_v36  ;;  %7260 = vmatprep.subr.bf16.mxu0 %v9647_v37  ;;  %v9728_v36 = vld [vmem:[#allocation8 + $0x9e4] ss:$36 sps:$4 sm:$0xff]   ;;  %v9723_v37 = vld [vmem:[#allocation8 + $0x9d8] ss:$36 sps:$4 sm:$0xff]  }
 0x277   :  { %7432 = vmatprep.subr.bf16.mxu1 %v9650_v38  ;;  %v9726_v38 = vld [vmem:[#allocation8 + $0x9e0] ss:$36 sps:$4 sm:$0xff]  }
 0x279   :  { %7261 = vmatpush1.bf16.msra.mxu0 %v9645_v39  ;;  %v9731_v39 = vld [vmem:[#allocation8 + $0xa24] ss:$36 sps:$4 sm:$0xff]  }
 0x27a   :  { %7433 = vmatpush1.bf16.msra.mxu1 %v9648_v40  ;;  %7262 = vmatprep.subr.bf16.mxu0 %v9653_v41  ;;  %v9734_v40 = vld [vmem:[#allocation8 + $0xa2c] ss:$36 sps:$4 sm:$0xff]   ;;  %v9729_v41 = vld [vmem:[#allocation8 + $0xa20] ss:$36 sps:$4 sm:$0xff]  }
 0x27b   :  { %7434 = vmatprep.subr.bf16.mxu1 %v9656_v42  ;;  %v9732_v42 = vld [vmem:[#allocation8 + $0xa28] ss:$36 sps:$4 sm:$0xff]  }
 0x27d   :  { %7263 = vmatpush1.bf16.msra.mxu0 %v9651_v43  ;;  %v9737_v43 = vld [vmem:[#allocation8 + $0xa6c] ss:$36 sps:$4 sm:$0xff]  }
 0x27e   :  { %7435 = vmatpush1.bf16.msra.mxu1 %v9654_v44  ;;  %7264 = vmatprep.subr.bf16.mxu0 %v9659_v45  ;;  %v9740_v44 = vld [vmem:[#allocation8 + $0xa74] ss:$36 sps:$4 sm:$0xff]   ;;  %v9735_v45 = vld [vmem:[#allocation8 + $0xa68] ss:$36 sps:$4 sm:$0xff]  }
 0x27f   :  { %7436 = vmatprep.subr.bf16.mxu1 %v9662_v46  ;;  %v9738_v46 = vld [vmem:[#allocation8 + $0xa70] ss:$36 sps:$4 sm:$0xff]  }
 0x281   :  { %7265 = vmatpush1.bf16.msra.mxu0 %v9657_v47  ;;  %v9743_v47 = vld [vmem:[#allocation8 + $0xab4] ss:$36 sps:$4 sm:$0xff]  }
 0x282   :  { %7437 = vmatpush1.bf16.msra.mxu1 %v9660_v48  ;;  %7266 = vmatprep.subr.bf16.mxu0 %v9665_v49  ;;  %v9746_v48 = vld [vmem:[#allocation8 + $0xabc] ss:$36 sps:$4 sm:$0xff]   ;;  %v9741_v49 = vld [vmem:[#allocation8 + $0xab0] ss:$36 sps:$4 sm:$0xff]  }
 0x283   :  { %7438 = vmatprep.subr.bf16.mxu1 %v9668_v50  ;;  %v9744_v50 = vld [vmem:[#allocation8 + $0xab8] ss:$36 sps:$4 sm:$0xff]  }
 0x285   :  { %7267 = vmatpush1.bf16.msra.mxu0 %v9663_v51  ;;  %v9749_v51 = vld [vmem:[#allocation8 + $0xafc] ss:$36 sps:$4 sm:$0xff]  }
 0x286   :  { %7439 = vmatpush1.bf16.msra.mxu1 %v9666_v52  ;;  %7268 = vmatprep.subr.bf16.mxu0 %v9671_v53  ;;  %v9752_v52 = vld [vmem:[#allocation8 + $0xb04] ss:$36 sps:$4 sm:$0xff]   ;;  %v9747_v53 = vld [vmem:[#allocation8 + $0xaf8] ss:$36 sps:$4 sm:$0xff]  }
 0x287   :  { %7440 = vmatprep.subr.bf16.mxu1 %v9674_v55  ;;  %v9750_v55 = vld [vmem:[#allocation8 + $0xb00] ss:$36 sps:$4 sm:$0xff]  }
 0x289   :  { %7269 = vmatpush1.bf16.msra.mxu0 %v9669_v57  ;;  %v9755_v57 = vld [vmem:[#allocation8 + $0xb44] ss:$36 sps:$4 sm:$0xff]  }
 0x28a   :  { %7441 = vmatpush1.bf16.msra.mxu1 %v9672_v58  ;;  %7270 = vmatprep.subr.bf16.mxu0 %v9677_v60  ;;  %v9758_v58 = vld [vmem:[#allocation8 + $0xb4c] ss:$36 sps:$4 sm:$0xff]   ;;  %v9753_v60 = vld [vmem:[#allocation8 + $0xb40] ss:$36 sps:$4 sm:$0xff]  }
 0x28b   :  { %7442 = vmatprep.subr.bf16.mxu1 %v9680_v63  ;;  %v9756_v63 = vld [vmem:[#allocation8 + $0xb48] ss:$36 sps:$4 sm:$0xff]  }
 0x28d   :  { %7271 = vmatpush1.bf16.msra.mxu0 %v9675_v0  ;;  %v9761_v0 = vld [vmem:[#allocation8 + $0xb8c] ss:$36 sps:$4 sm:$0xff]  }
 0x28e   :  { %7443 = vmatpush1.bf16.msra.mxu1 %v9678_v1  ;;  %7272 = vmatprep.subr.bf16.mxu0 %v9683_v5  ;;  %v9764_v1 = vld [vmem:[#allocation8 + $0xb94] ss:$36 sps:$4 sm:$0xff]   ;;  %v9759_v5 = vld [vmem:[#allocation8 + $0xb88] ss:$36 sps:$4 sm:$0xff]  }
 0x28f   :  { %7444 = vmatprep.subr.bf16.mxu1 %v9686_v7  ;;  %v9762_v7 = vld [vmem:[#allocation8 + $0xb90] ss:$36 sps:$4 sm:$0xff]  }
 0x291   :  { %7273 = vmatpush1.bf16.msra.mxu0 %v9681_v8  ;;  %v9767_v8 = vld [vmem:[#allocation8 + $0xbd4] ss:$36 sps:$4 sm:$0xff]  }
 0x292   :  { %7445 = vmatpush1.bf16.msra.mxu1 %v9684_v9  ;;  %7274 = vmatprep.subr.bf16.mxu0 %v9689_v10  ;;  %v9770_v9 = vld [vmem:[#allocation8 + $0xbdc] ss:$36 sps:$4 sm:$0xff]   ;;  %v9765_v10 = vld [vmem:[#allocation8 + $0xbd0] ss:$36 sps:$4 sm:$0xff]  }
 0x293   :  { %7446 = vmatprep.subr.bf16.mxu1 %v9692_v11  ;;  %v9768_v11 = vld [vmem:[#allocation8 + $0xbd8] ss:$36 sps:$4 sm:$0xff]  }
 0x295   :  { %7275 = vmatpush1.bf16.msra.mxu0 %v9687_v12  ;;  %v9773_v12 = vld [vmem:[#allocation8 + $0xc1c] ss:$36 sps:$4 sm:$0xff]  }
 0x296   :  { %7447 = vmatpush1.bf16.msra.mxu1 %v9690_v13  ;;  %7276 = vmatprep.subr.bf16.mxu0 %v9695_v14  ;;  %v9776_v13 = vld [vmem:[#allocation8 + $0xc24] ss:$36 sps:$4 sm:$0xff]   ;;  %v9771_v14 = vld [vmem:[#allocation8 + $0xc18] ss:$36 sps:$4 sm:$0xff]  }
 0x297   :  { %7448 = vmatprep.subr.bf16.mxu1 %v9698_v15  ;;  %v9774_v15 = vld [vmem:[#allocation8 + $0xc20] ss:$36 sps:$4 sm:$0xff]  }
 0x299   :  { %7277 = vmatpush1.bf16.msra.mxu0 %v9693_v16  ;;  %v9779_v16 = vld [vmem:[#allocation8 + $0xc64] ss:$36 sps:$4 sm:$0xff]  }
 0x29a   :  { %7449 = vmatpush1.bf16.msra.mxu1 %v9696_v17  ;;  %7278 = vmatprep.subr.bf16.mxu0 %v9701_v18  ;;  %v9782_v17 = vld [vmem:[#allocation8 + $0xc6c] ss:$36 sps:$4 sm:$0xff]   ;;  %v9777_v18 = vld [vmem:[#allocation8 + $0xc60] ss:$36 sps:$4 sm:$0xff]  }
 0x29b   :  { %7450 = vmatprep.subr.bf16.mxu1 %v9704_v19  ;;  %v9780_v19 = vld [vmem:[#allocation8 + $0xc68] ss:$36 sps:$4 sm:$0xff]  }
 0x29d   :  { %7279 = vmatpush1.bf16.msra.mxu0 %v9699_v20  ;;  %v9785_v20 = vld [vmem:[#allocation8 + $0xcac] ss:$36 sps:$4 sm:$0xff]  }
 0x29e   :  { %7451 = vmatpush1.bf16.msra.mxu1 %v9702_v21  ;;  %7291 = vmatprep.subr.bf16.mxu0 %v9707_v22  ;;  %v9788_v21 = vld [vmem:[#allocation8 + $0xcb4] ss:$36 sps:$4 sm:$0xff]   ;;  %v9783_v22 = vld [vmem:[#allocation8 + $0xca8] ss:$36 sps:$4 sm:$0xff]  }
 0x29f   :  { %7463 = vmatprep.subr.bf16.mxu1 %v9710_v23  ;;  %v9786_v23 = vld [vmem:[#allocation8 + $0xcb0] ss:$36 sps:$4 sm:$0xff]  }
 0x2a0   :  { %7281 = vmatmul.mubr.bf16.vlgmr.msra.gmra.mrb[8].mxu0 %v10663_v32 }
 0x2a1   :  { %7453 = vmatmul.mubr.bf16.vlgmr.msra.gmra.mrb[8].mxu1 %v10663_v32  ;;  %7292 = vmatpush1.bf16.msra.mxu0 %v9705_v24  ;;  %v9791_v24 = vld [vmem:[#allocation8 + $0xcf4] ss:$36 sps:$4 sm:$0xff]  }
 0x2a2   :  { %7464 = vmatpush1.bf16.msra.mxu1 %v9708_v25  ;;  %7293 = vmatprep.subr.bf16.mxu0 %v9713_v26  ;;  %v9794_v25 = vld [vmem:[#allocation8 + $0xcfc] ss:$36 sps:$4 sm:$0xff]   ;;  %v9789_v26 = vld [vmem:[#allocation8 + $0xcf0] ss:$36 sps:$4 sm:$0xff]  }
 0x2a3   :  { %7465 = vmatprep.subr.bf16.mxu1 %v9716_v27  ;;  %v9792_v27 = vld [vmem:[#allocation8 + $0xcf8] ss:$36 sps:$4 sm:$0xff]  }
 0x2a5   :  { %7294 = vmatpush1.bf16.msra.mxu0 %v9711_v28  ;;  %v9797_v28 = vld [vmem:[#allocation8 + $0xd3c] ss:$36 sps:$4 sm:$0xff]  }
 0x2a6   :  { %7466 = vmatpush1.bf16.msra.mxu1 %v9714_v29  ;;  %7295 = vmatprep.subr.bf16.mxu0 %v9719_v30  ;;  %v9800_v29 = vld [vmem:[#allocation8 + $0xd44] ss:$36 sps:$4 sm:$0xff]   ;;  %v9795_v30 = vld [vmem:[#allocation8 + $0xd38] ss:$36 sps:$4 sm:$0xff]  }
 0x2a7   :  { %7467 = vmatprep.subr.bf16.mxu1 %v9722_v31  ;;  %v9798_v31 = vld [vmem:[#allocation8 + $0xd40] ss:$36 sps:$4 sm:$0xff]  }
 0x2a9   :  { %7296 = vmatpush1.bf16.msra.mxu0 %v9717_v33  ;;  %v9803_v33 = vld [vmem:[#allocation8 + $0xd84] ss:$36 sps:$4 sm:$0xff]  }
 0x2aa   :  { %7468 = vmatpush1.bf16.msra.mxu1 %v9720_v34  ;;  %7297 = vmatprep.subr.bf16.mxu0 %v9725_v35  ;;  %v9806_v34 = vld [vmem:[#allocation8 + $0xd8c] ss:$36 sps:$4 sm:$0xff]   ;;  %v562_v35 = vsub.s32 4, %v10641_v56 }
 0x2ab   :  { %7469 = vmatprep.subr.bf16.mxu1 %v9728_v36  ;;  %v570_v36 = vsub.s32 6, %v10641_v56 }
 0x2ad   :  { %7298 = vmatpush1.bf16.msra.mxu0 %v9723_v37  ;;  %v566_v37 = vsub.s32 5, %v10641_v56 }
 0x2ae   :  { %7470 = vmatpush1.bf16.msra.mxu1 %v9726_v38  ;;  %7299 = vmatprep.subr.bf16.mxu0 %v9731_v39  ;;  %v574_v38 = vsub.s32 7, %v10641_v56  ;;  %v563_v39 = vrot.slane %v10644_v2, %v562_v35 }
 0x2af   :  { %7471 = vmatprep.subr.bf16.mxu1 %v9734_v40  ;;  %v571_v40 = vrot.slane %v10644_v2, %v570_v36 }
 0x2b1   :  { %7300 = vmatpush1.bf16.msra.mxu0 %v9729_v41  ;;  %v567_v41 = vrot.slane %v10644_v2, %v566_v37 }
 0x2b2   :  { %7472 = vmatpush1.bf16.msra.mxu1 %v9732_v42  ;;  %7301 = vmatprep.subr.bf16.mxu0 %v9737_v43  ;;  %v575_v42 = vrot.slane %v10644_v2, %v574_v38 }
 0x2b3   :  { %7473 = vmatprep.subr.bf16.mxu1 %v9740_v44 }
 0x2b5   :  { %7302 = vmatpush1.bf16.msra.mxu0 %v9735_v45 }
 0x2b6   :  { %7474 = vmatpush1.bf16.msra.mxu1 %v9738_v46  ;;  %7303 = vmatprep.subr.bf16.mxu0 %v9743_v47 }
 0x2b7   :  { %7475 = vmatprep.subr.bf16.mxu1 %v9746_v48 }
 0x2b9   :  { %7304 = vmatpush1.bf16.msra.mxu0 %v9741_v49 }
 0x2ba   :  { %7476 = vmatpush1.bf16.msra.mxu1 %v9744_v50  ;;  %7305 = vmatprep.subr.bf16.mxu0 %v9749_v51 }
 0x2bb   :  { %7477 = vmatprep.subr.bf16.mxu1 %v9752_v52 }
 0x2bd   :  { %7306 = vmatpush1.bf16.msra.mxu0 %v9747_v53 }
 0x2be   :  { %7478 = vmatpush1.bf16.msra.mxu1 %v9750_v55  ;;  %7307 = vmatprep.subr.bf16.mxu0 %v9755_v57 }
 0x2bf   :  { %7479 = vmatprep.subr.bf16.mxu1 %v9758_v58 }
 0x2c1   :  { %7308 = vmatpush1.bf16.msra.mxu0 %v9753_v60 }
 0x2c2   :  { %7480 = vmatpush1.bf16.msra.mxu1 %v9756_v63  ;;  %7309 = vmatprep.subr.bf16.mxu0 %v9761_v0 }
 0x2c3   :  { %7481 = vmatprep.subr.bf16.mxu1 %v9764_v1 }
 0x2c5   :  { %7310 = vmatpush1.bf16.msra.mxu0 %v9759_v5 }
 0x2c6   :  { %7482 = vmatpush1.bf16.msra.mxu1 %v9762_v7  ;;  %7311 = vmatprep.subr.bf16.mxu0 %v9767_v8 }
 0x2c7   :  { %7483 = vmatprep.subr.bf16.mxu1 %v9770_v9 }
 0x2c9   :  { %7312 = vmatpush1.bf16.msra.mxu0 %v9765_v10 }
 0x2ca   :  { %7484 = vmatpush1.bf16.msra.mxu1 %v9768_v11  ;;  %7313 = vmatprep.subr.bf16.mxu0 %v9773_v12 }
 0x2cb   :  { %7485 = vmatprep.subr.bf16.mxu1 %v9776_v13 }
 0x2cd   :  { %7314 = vmatpush1.bf16.msra.mxu0 %v9771_v14  ;;  %v9801_v14 = vld [vmem:[#allocation8 + $0xd80] ss:$36 sps:$4 sm:$0xff]  }
 0x2ce   :  { %7486 = vmatpush1.bf16.msra.mxu1 %v9774_v15  ;;  %7315 = vmatprep.subr.bf16.mxu0 %v9779_v16  ;;  %v9804_v15 = vld [vmem:[#allocation8 + $0xd88] ss:$36 sps:$4 sm:$0xff]  }
 0x2cf   :  { %7487 = vmatprep.subr.bf16.mxu1 %v9782_v17  ;;  %v9809_v17 = vld [vmem:[#allocation8 + $0xdcc] ss:$36 sps:$4 sm:$0xff]  }
 0x2d1   :  { %7316 = vmatpush1.bf16.msra.mxu0 %v9777_v18  ;;  %v9812_v18 = vld [vmem:[#allocation8 + $0xdd4] ss:$36 sps:$4 sm:$0xff]  }
 0x2d2   :  { %7488 = vmatpush1.bf16.msra.mxu1 %v9780_v19  ;;  %7317 = vmatprep.subr.bf16.mxu0 %v9785_v20  ;;  %v9807_v19 = vld [vmem:[#allocation8 + $0xdc8] ss:$36 sps:$4 sm:$0xff]   ;;  %v9810_v20 = vld [vmem:[#allocation8 + $0xdd0] ss:$36 sps:$4 sm:$0xff]  }
 0x2d3   :  { %7489 = vmatprep.subr.bf16.mxu1 %v9788_v21  ;;  %v9815_v21 = vld [vmem:[#allocation8 + $0xe14] ss:$36 sps:$4 sm:$0xff]  }
 0x2d5   :  { %7318 = vmatpush1.bf16.msra.mxu0 %v9783_v22  ;;  %v9818_v22 = vld [vmem:[#allocation8 + $0xe1c] ss:$36 sps:$4 sm:$0xff]  }
 0x2d6   :  { %7490 = vmatpush1.bf16.msra.mxu1 %v9786_v23  ;;  %7319 = vmatprep.subr.bf16.mxu0 %v9791_v24  ;;  %v9813_v23 = vld [vmem:[#allocation8 + $0xe10] ss:$36 sps:$4 sm:$0xff]   ;;  %v9816_v24 = vld [vmem:[#allocation8 + $0xe18] ss:$36 sps:$4 sm:$0xff]  }
 0x2d7   :  { %7491 = vmatprep.subr.bf16.mxu1 %v9794_v25  ;;  %v9821_v25 = vld [vmem:[#allocation8 + $0xe5c] ss:$36 sps:$4 sm:$0xff]  }
 0x2d9   :  { %7320 = vmatpush1.bf16.msra.mxu0 %v9789_v26  ;;  %v9824_v26 = vld [vmem:[#allocation8 + $0xe64] ss:$36 sps:$4 sm:$0xff]  }
 0x2da   :  { %7492 = vmatpush1.bf16.msra.mxu1 %v9792_v27  ;;  %7321 = vmatprep.subr.bf16.mxu0 %v9797_v28  ;;  %v9819_v27 = vld [vmem:[#allocation8 + $0xe58] ss:$36 sps:$4 sm:$0xff]   ;;  %v9822_v28 = vld [vmem:[#allocation8 + $0xe60] ss:$36 sps:$4 sm:$0xff]  }
 0x2db   :  { %7493 = vmatprep.subr.bf16.mxu1 %v9800_v29  ;;  %v9827_v29 = vld [vmem:[#allocation8 + $0xea4] ss:$36 sps:$4 sm:$0xff]  }
 0x2dd   :  { %7322 = vmatpush1.bf16.msra.mxu0 %v9795_v30  ;;  %v9830_v30 = vld [vmem:[#allocation8 + $0xeac] ss:$36 sps:$4 sm:$0xff]  }
 0x2de   :  { %7494 = vmatpush1.bf16.msra.mxu1 %v9798_v31  ;;  %7334 = vmatprep.subr.bf16.mxu0 %v9803_v33  ;;  %v9825_v31 = vld [vmem:[#allocation8 + $0xea0] ss:$36 sps:$4 sm:$0xff]   ;;  %v9828_v33 = vld [vmem:[#allocation8 + $0xea8] ss:$36 sps:$4 sm:$0xff]  }
 0x2df   :  { %7506 = vmatprep.subr.bf16.mxu1 %v9806_v34  ;;  %v9833_v34 = vld [vmem:[#allocation8 + $0xeec] ss:$36 sps:$4 sm:$0xff]  }
 0x2f3   :  { %v3367_v43 = vpop.f32.mrb[4].mxu0  ;;  %v3539_v45 = vpop.f32.mrb[4].mxu1 }
 0x2f4   :  { %v9368_v44 = vadd.f32 %v3367_v43, %v563_v39  ;;  %v3369_v46 = vpop.f32.mrb[5].mxu0  ;;  %v9372_v47 = vadd.f32 %v3539_v45, %v571_v40  ;;  %v3541_v49 = vpop.f32.mrb[5].mxu1  ;;  %v9842_v43 = vld [vmem:[#allocation8 + $0xf3c] ss:$36 sps:$4 sm:$0xff]  }
 0x2f5   :  { %v9369_v48 = vadd.f32 %v3369_v46, %v567_v41  ;;  %v3371_v50 = vpop.f32.mrb[6].mxu0  ;;  %v9373_v51 = vadd.f32 %v3541_v49, %v575_v42  ;;  %v3543_v53 = vpop.f32.mrb[6].mxu1  ;;  %v9840_v45 = vld [vmem:[#allocation8 + $0xf38] ss:$36 sps:$4 sm:$0xff]   ;;  %v9846_v49 = vld [vmem:[#allocation8 + $0xf80] ss:$36 sps:$4 sm:$0xff]  }
 0x2f6   :  { %v9370_v52 = vadd.f32 %v3371_v50, %v563_v39  ;;  %v3373_v55 = vpop.f32.mrb[7].mxu0  ;;  %v9374_v57 = vadd.f32 %v3543_v53, %v571_v40  ;;  %v3545_v60 = vpop.f32.mrb[7].mxu1  ;;  %v3552_v63 = vmax.f32 %v9368_v44, 0.0  ;;  %v3554_v5 = vmax.f32 %v9372_v47, 0.0  ;;  %v9836_v39 = vld [vmem:[#allocation8 + $0xef4] ss:$36 sps:$4 sm:$0xff]  }
 0x2f7   :  { %v9371_v58 = vadd.f32 %v3373_v55, %v567_v41  ;;  %v9375_v1 = vadd.f32 %v3545_v60, %v575_v42  ;;  %v3553_v2 = vmax.f32 %v9369_v48, 0.0  ;;  %v3555_v9 = vmax.f32 %v9373_v51, 0.0  ;;  %v9831_v40 = vld [vmem:[#allocation8 + $0xee8] ss:$36 sps:$4 sm:$0xff]   ;;  %v9834_v41 = vld [vmem:[#allocation8 + $0xef0] ss:$36 sps:$4 sm:$0xff]  }
 0x2f8   :  { %v3560_v0 = vmax.f32 %v9370_v52, 0.0  ;;  %v3562_v7 = vmax.f32 %v9374_v57, 0.0  ;;  %v9839_v42 = vld [vmem:[#allocation8 + $0xf34] ss:$36 sps:$4 sm:$0xff]   ;;  %v9845_v46 = vld [vmem:[#allocation8 + $0xf7c] ss:$36 sps:$4 sm:$0xff]  }
 0x2f9   :  { %v3561_v8 = vmax.f32 %v9371_v58, 0.0  ;;  %v3563_v11 = vmax.f32 %v9375_v1, 0.0  ;;  %v9837_v44 = vld [vmem:[#allocation8 + $0xf30] ss:$36 sps:$4 sm:$0xff]   ;;  %v9848_v47 = vld [vmem:[#allocation8 + $0xf84] ss:$36 sps:$4 sm:$0xff]  }
 0x2fa   :  { %v10693_v10 = vpack.c.bf16 %v3560_v0, %v3552_v63  ;;  %v10695_v12 = vpack.c.bf16 %v3562_v7, %v3554_v5  ;;  %v9843_v48 = vld [vmem:[#allocation8 + $0xf78] ss:$36 sps:$4 sm:$0xff]   ;;  %v9851_v50 = vld [vmem:[#allocation8 + $0xfc4] ss:$36 sps:$4 sm:$0xff]   ;;  %v9854_v51 = vld [vmem:[#allocation8 + $0xfcc] ss:$36 sps:$4 sm:$0xff]  }
 0x2fb   :  { %v10697_v13 = vpack.c.bf16 %v3561_v8, %v3553_v2  ;;  %v10699_v16 = vpack.c.bf16 %v3563_v11, %v3555_v9  ;;  %v9849_v52 = vld [vmem:[#allocation8 + $0xfc0] ss:$36 sps:$4 sm:$0xff]   ;;  %v9852_v53 = vld [vmem:[#allocation8 + $0xfc8] ss:$36 sps:$4 sm:$0xff]   ;;  %v9860_v57 = vld [vmem:[#allocation8 + $0x1014] ss:$36 sps:$4 sm:$0xff]  }
 0x2fc   :  { %v9857_v55 = vld [vmem:[#allocation8 + $0x100c] ss:$36 sps:$4 sm:$0xff]   ;;  %v9863_v63 = vld [vmem:[#allocation8 + $0x1054] ss:$36 sps:$4 sm:$0xff]   ;;  %v9866_v0 = vld [vmem:[#allocation8 + $0x105c] ss:$36 sps:$4 sm:$0xff]  }
 0x2fd   :  { %7323 = vmatprep.mubr.bf16.mxu0 %v10697_v13  ;;  %7495 = vmatprep.mubr.bf16.mxu1 %v10697_v13  ;;  %v9855_v58 = vld [vmem:[#allocation8 + $0x1008] ss:$36 sps:$4 sm:$0xff]   ;;  %v9858_v60 = vld [vmem:[#allocation8 + $0x1010] ss:$36 sps:$4 sm:$0xff]   ;;  %v9864_v5 = vld [vmem:[#allocation8 + $0x1058] ss:$36 sps:$4 sm:$0xff]  }
 0x2fe   :  { %7324 = vmatmul.mubr.bf16.vlgmr.msra.gmra.mrb[8].mxu0 %v10693_v10  ;;  %7496 = vmatmul.mubr.bf16.vlgmr.msra.gmra.mrb[8].mxu1 %v10693_v10  ;;  %v9861_v1 = vld [vmem:[#allocation8 + $0x1050] ss:$36 sps:$4 sm:$0xff]   ;;  %v9869_v2 = vld [vmem:[#allocation8 + $0x109c] ss:$36 sps:$4 sm:$0xff]   ;;  %v9872_v7 = vld [vmem:[#allocation8 + $0x10a4] ss:$36 sps:$4 sm:$0xff]  }
 0x2ff   :  { %7335 = vmatpush1.bf16.msra.mxu0 %v9801_v14  ;;  %7507 = vmatpush1.bf16.msra.mxu1 %v9804_v15  ;;  %v9867_v8 = vld [vmem:[#allocation8 + $0x1098] ss:$36 sps:$4 sm:$0xff]   ;;  %v9870_v9 = vld [vmem:[#allocation8 + $0x10a0] ss:$36 sps:$4 sm:$0xff]   ;;  %v9878_v14 = vld [vmem:[#allocation8 + $0x10ec] ss:$36 sps:$4 sm:$0xff]  }
 0x300   :  { %7366 = vmatprep.mubr.bf16.mxu0 %v10699_v16  ;;  %7538 = vmatprep.mubr.bf16.mxu1 %v10699_v16  ;;  %v9875_v11 = vld [vmem:[#allocation8 + $0x10e4] ss:$36 sps:$4 sm:$0xff]  }
 0x301   :  { %7336 = vmatprep.subr.bf16.mxu0 %v9809_v17  ;;  %7508 = vmatprep.subr.bf16.mxu1 %v9812_v18  ;;  %v9873_v15 = vld [vmem:[#allocation8 + $0x10e0] ss:$36 sps:$4 sm:$0xff]   ;;  %v9876_v17 = vld [vmem:[#allocation8 + $0x10e8] ss:$36 sps:$4 sm:$0xff]  }
 0x302   :  { %v9881_v18 = vld [vmem:[#allocation8 + $0x112c] ss:$36 sps:$4 sm:$0xff]  }
 0x303   :  { %7337 = vmatpush1.bf16.msra.mxu0 %v9807_v19  ;;  %7509 = vmatpush1.bf16.msra.mxu1 %v9810_v20  ;;  %v9884_v19 = vld [vmem:[#allocation8 + $0x1134] ss:$36 sps:$4 sm:$0xff]   ;;  %v9879_v20 = vld [vmem:[#allocation8 + $0x1128] ss:$36 sps:$4 sm:$0xff]  }
 0x304   :  { %7338 = vmatprep.subr.bf16.mxu0 %v9815_v21  ;;  %7510 = vmatprep.subr.bf16.mxu1 %v9818_v22  ;;  %v9882_v21 = vld [vmem:[#allocation8 + $0x1130] ss:$36 sps:$4 sm:$0xff]  }
 0x305   :  { %v9887_v22 = vld [vmem:[#allocation8 + $0x1174] ss:$36 sps:$4 sm:$0xff]  }
 0x307   :  { %7339 = vmatpush1.bf16.msra.mxu0 %v9813_v23  ;;  %7511 = vmatpush1.bf16.msra.mxu1 %v9816_v24  ;;  %v9890_v23 = vld [vmem:[#allocation8 + $0x117c] ss:$36 sps:$4 sm:$0xff]   ;;  %v9885_v24 = vld [vmem:[#allocation8 + $0x1170] ss:$36 sps:$4 sm:$0xff]  }
 0x308   :  { %7340 = vmatprep.subr.bf16.mxu0 %v9821_v25  ;;  %7512 = vmatprep.subr.bf16.mxu1 %v9824_v26  ;;  %v9888_v25 = vld [vmem:[#allocation8 + $0x1178] ss:$36 sps:$4 sm:$0xff]  }
 0x309   :  { %v9893_v26 = vld [vmem:[#allocation8 + $0x11bc] ss:$36 sps:$4 sm:$0xff]  }
 0x30b   :  { %7341 = vmatpush1.bf16.msra.mxu0 %v9819_v27  ;;  %7513 = vmatpush1.bf16.msra.mxu1 %v9822_v28  ;;  %v9896_v27 = vld [vmem:[#allocation8 + $0x11c4] ss:$36 sps:$4 sm:$0xff]   ;;  %v9891_v28 = vld [vmem:[#allocation8 + $0x11b8] ss:$36 sps:$4 sm:$0xff]  }
 0x30c   :  { %7342 = vmatprep.subr.bf16.mxu0 %v9827_v29  ;;  %7514 = vmatprep.subr.bf16.mxu1 %v9830_v30  ;;  %v9894_v29 = vld [vmem:[#allocation8 + $0x11c0] ss:$36 sps:$4 sm:$0xff]   ;;  %v9899_v30 = vld [vmem:[#allocation8 + $0x14] ss:$36 sps:$4 sm:$0xff]  }
 0x30f   :  { %7343 = vmatpush1.bf16.msra.mxu0 %v9825_v31  ;;  %7515 = vmatpush1.bf16.msra.mxu1 %v9828_v33  ;;  %v9902_v31 = vld [vmem:[#allocation8 + $0x1c] ss:$36 sps:$4 sm:$0xff]   ;;  %v9897_v33 = vld [vmem:[#allocation8 + $0x10] ss:$36 sps:$4 sm:$0xff]  }
 0x310   :  { %7344 = vmatprep.subr.bf16.mxu0 %v9833_v34  ;;  %7516 = vmatprep.subr.bf16.mxu1 %v9836_v39  ;;  %v9900_v34 = vld [vmem:[#allocation8 + $0x18] ss:$36 sps:$4 sm:$0xff]  }
 0x311   :  { %v9905_v39 = vld [vmem:[#allocation8 + $0x5c] ss:$36 sps:$4 sm:$0xff]  }
 0x313   :  { %7345 = vmatpush1.bf16.msra.mxu0 %v9831_v40  ;;  %7517 = vmatpush1.bf16.msra.mxu1 %v9834_v41  ;;  %v9908_v40 = vld [vmem:[#allocation8 + $0x64] ss:$36 sps:$4 sm:$0xff]   ;;  %v9903_v41 = vld [vmem:[#allocation8 + $0x58] ss:$36 sps:$4 sm:$0xff]  }
 0x314   :  { %7346 = vmatprep.subr.bf16.mxu0 %v9839_v42  ;;  %7518 = vmatprep.subr.bf16.mxu1 %v9842_v43  ;;  %v9906_v42 = vld [vmem:[#allocation8 + $0x60] ss:$36 sps:$4 sm:$0xff]  }
 0x315   :  { %v9911_v43 = vld [vmem:[#allocation8 + $0xa4] ss:$36 sps:$4 sm:$0xff]  }
 0x317   :  { %7347 = vmatpush1.bf16.msra.mxu0 %v9837_v44  ;;  %7519 = vmatpush1.bf16.msra.mxu1 %v9840_v45  ;;  %v9914_v44 = vld [vmem:[#allocation8 + $0xac] ss:$36 sps:$4 sm:$0xff]   ;;  %v9909_v45 = vld [vmem:[#allocation8 + $0xa0] ss:$36 sps:$4 sm:$0xff]  }
 0x318   :  { %7348 = vmatprep.subr.bf16.mxu0 %v9845_v46  ;;  %7520 = vmatprep.subr.bf16.mxu1 %v9848_v47  ;;  %v9912_v46 = vld [vmem:[#allocation8 + $0xa8] ss:$36 sps:$4 sm:$0xff]  }
 0x319   :  { %v9917_v47 = vld [vmem:[#allocation8 + $0xec] ss:$36 sps:$4 sm:$0xff]  }
 0x31b   :  { %7349 = vmatpush1.bf16.msra.mxu0 %v9843_v48  ;;  %7521 = vmatpush1.bf16.msra.mxu1 %v9846_v49  ;;  %v9920_v48 = vld [vmem:[#allocation8 + $0xf4] ss:$36 sps:$4 sm:$0xff]   ;;  %v9915_v49 = vld [vmem:[#allocation8 + $0xe8] ss:$36 sps:$4 sm:$0xff]  }
 0x31c   :  { %7350 = vmatprep.subr.bf16.mxu0 %v9851_v50  ;;  %7522 = vmatprep.subr.bf16.mxu1 %v9854_v51  ;;  %v9918_v50 = vld [vmem:[#allocation8 + $0xf0] ss:$36 sps:$4 sm:$0xff]  }
 0x31d   :  { %v9923_v51 = vld [vmem:[#allocation8 + $0x134] ss:$36 sps:$4 sm:$0xff]  }
 0x31f   :  { %7351 = vmatpush1.bf16.msra.mxu0 %v9849_v52  ;;  %7523 = vmatpush1.bf16.msra.mxu1 %v9852_v53  ;;  %v9926_v52 = vld [vmem:[#allocation8 + $0x13c] ss:$36 sps:$4 sm:$0xff]   ;;  %v9921_v53 = vld [vmem:[#allocation8 + $0x130] ss:$36 sps:$4 sm:$0xff]  }
 0x320   :  { %7352 = vmatprep.subr.bf16.mxu0 %v9857_v55  ;;  %7524 = vmatprep.subr.bf16.mxu1 %v9860_v57  ;;  %v9924_v55 = vld [vmem:[#allocation8 + $0x138] ss:$36 sps:$4 sm:$0xff]  }
 0x321   :  { %v9929_v57 = vld [vmem:[#allocation8 + $0x17c] ss:$36 sps:$4 sm:$0xff]  }
 0x323   :  { %7353 = vmatpush1.bf16.msra.mxu0 %v9855_v58  ;;  %7525 = vmatpush1.bf16.msra.mxu1 %v9858_v60  ;;  %v9932_v58 = vld [vmem:[#allocation8 + $0x184] ss:$36 sps:$4 sm:$0xff]   ;;  %v9927_v60 = vld [vmem:[#allocation8 + $0x178] ss:$36 sps:$4 sm:$0xff]  }
 0x324   :  { %7354 = vmatprep.subr.bf16.mxu0 %v9863_v63  ;;  %7526 = vmatprep.subr.bf16.mxu1 %v9866_v0  ;;  %v9930_v63 = vld [vmem:[#allocation8 + $0x180] ss:$36 sps:$4 sm:$0xff]  }
 0x325   :  { %v9935_v0 = vld [vmem:[#allocation8 + $0x1c4] ss:$36 sps:$4 sm:$0xff]  }
 0x327   :  { %7355 = vmatpush1.bf16.msra.mxu0 %v9861_v1  ;;  %7527 = vmatpush1.bf16.msra.mxu1 %v9864_v5  ;;  %v9938_v1 = vld [vmem:[#allocation8 + $0x1cc] ss:$36 sps:$4 sm:$0xff]   ;;  %v9933_v5 = vld [vmem:[#allocation8 + $0x1c0] ss:$36 sps:$4 sm:$0xff]  }
 0x328   :  { %7356 = vmatprep.subr.bf16.mxu0 %v9869_v2  ;;  %7528 = vmatprep.subr.bf16.mxu1 %v9872_v7  ;;  %v9936_v2 = vld [vmem:[#allocation8 + $0x1c8] ss:$36 sps:$4 sm:$0xff]  }
 0x329   :  { %v9941_v7 = vld [vmem:[#allocation8 + $0x20c] ss:$36 sps:$4 sm:$0xff]  }
 0x32b   :  { %7357 = vmatpush1.bf16.msra.mxu0 %v9867_v8  ;;  %7529 = vmatpush1.bf16.msra.mxu1 %v9870_v9  ;;  %v9944_v8 = vld [vmem:[#allocation8 + $0x214] ss:$36 sps:$4 sm:$0xff]   ;;  %v9939_v9 = vld [vmem:[#allocation8 + $0x208] ss:$36 sps:$4 sm:$0xff]  }
 0x32c   :  { %7358 = vmatprep.subr.bf16.mxu0 %v9875_v11  ;;  %7530 = vmatprep.subr.bf16.mxu1 %v9878_v14  ;;  %v9942_v11 = vld [vmem:[#allocation8 + $0x210] ss:$36 sps:$4 sm:$0xff]  }
 0x32d   :  { %v9947_v14 = vld [vmem:[#allocation8 + $0x254] ss:$36 sps:$4 sm:$0xff]  }
 0x32f   :  { %7359 = vmatpush1.bf16.msra.mxu0 %v9873_v15  ;;  %7531 = vmatpush1.bf16.msra.mxu1 %v9876_v17  ;;  %v9950_v15 = vld [vmem:[#allocation8 + $0x25c] ss:$36 sps:$4 sm:$0xff]   ;;  %v9945_v17 = vld [vmem:[#allocation8 + $0x250] ss:$36 sps:$4 sm:$0xff]  }
 0x330   :  { %7360 = vmatprep.subr.bf16.mxu0 %v9881_v18  ;;  %7532 = vmatprep.subr.bf16.mxu1 %v9884_v19  ;;  %v9948_v18 = vld [vmem:[#allocation8 + $0x258] ss:$36 sps:$4 sm:$0xff]  }
 0x331   :  { %v9953_v19 = vld [vmem:[#allocation8 + $0x29c] ss:$36 sps:$4 sm:$0xff]  }
 0x333   :  { %7361 = vmatpush1.bf16.msra.mxu0 %v9879_v20  ;;  %7533 = vmatpush1.bf16.msra.mxu1 %v9882_v21  ;;  %v9956_v20 = vld [vmem:[#allocation8 + $0x2a4] ss:$36 sps:$4 sm:$0xff]   ;;  %v9951_v21 = vld [vmem:[#allocation8 + $0x298] ss:$36 sps:$4 sm:$0xff]  }
 0x334   :  { %7362 = vmatprep.subr.bf16.mxu0 %v9887_v22  ;;  %7534 = vmatprep.subr.bf16.mxu1 %v9890_v23  ;;  %v9954_v22 = vld [vmem:[#allocation8 + $0x2a0] ss:$36 sps:$4 sm:$0xff]  }
 0x335   :  { %v9959_v23 = vld [vmem:[#allocation8 + $0x2e4] ss:$36 sps:$4 sm:$0xff]  }
 0x337   :  { %7363 = vmatpush1.bf16.msra.mxu0 %v9885_v24  ;;  %7535 = vmatpush1.bf16.msra.mxu1 %v9888_v25  ;;  %v9962_v24 = vld [vmem:[#allocation8 + $0x2ec] ss:$36 sps:$4 sm:$0xff]   ;;  %v9957_v25 = vld [vmem:[#allocation8 + $0x2e0] ss:$36 sps:$4 sm:$0xff]  }
 0x338   :  { %7364 = vmatprep.subr.bf16.mxu0 %v9893_v26  ;;  %7536 = vmatprep.subr.bf16.mxu1 %v9896_v27  ;;  %v9960_v26 = vld [vmem:[#allocation8 + $0x2e8] ss:$36 sps:$4 sm:$0xff]  }
 0x339   :  { %v9965_v27 = vld [vmem:[#allocation8 + $0x32c] ss:$36 sps:$4 sm:$0xff]  }
 0x33b   :  { %7365 = vmatpush1.bf16.msra.mxu0 %v9891_v28  ;;  %7537 = vmatpush1.bf16.msra.mxu1 %v9894_v29  ;;  %v9968_v28 = vld [vmem:[#allocation8 + $0x334] ss:$36 sps:$4 sm:$0xff]   ;;  %v9963_v29 = vld [vmem:[#allocation8 + $0x328] ss:$36 sps:$4 sm:$0xff]  }
 0x33c   :  { %7549 = vmatprep.subr.bf16.mxu0 %v9899_v30  ;;  %7721 = vmatprep.subr.bf16.mxu1 %v9902_v31  ;;  %v9966_v30 = vld [vmem:[#allocation8 + $0x330] ss:$36 sps:$4 sm:$0xff]  }
 0x33d   :  { %v9971_v31 = vld [vmem:[#allocation8 + $0x374] ss:$36 sps:$4 sm:$0xff]  }
 0x33e   :  { %7367 = vmatmul.mubr.bf16.vlgmr.msra.gmra.mrb[8].mxu0 %v10695_v12  ;;  %7539 = vmatmul.mubr.bf16.vlgmr.msra.gmra.mrb[8].mxu1 %v10695_v12 }
 0x33f   :  { %7550 = vmatpush1.bf16.msra.mxu0 %v9897_v33  ;;  %7581 = vmatprep.mubr.bf16.mxu0 %v10665_v59  ;;  %v9974_v33 = vld [vmem:[#allocation8 + $0x37c] ss:$36 sps:$4 sm:$0xff]  }
 0x340   :  { %7722 = vmatpush1.bf16.msra.mxu1 %v9900_v34  ;;  %7753 = vmatprep.mubr.bf16.mxu1 %v10665_v59  ;;  %v9969_v34 = vld [vmem:[#allocation8 + $0x370] ss:$36 sps:$4 sm:$0xff]  }
 0x341   :  { %7551 = vmatprep.subr.bf16.mxu0 %v9905_v39  ;;  %7723 = vmatprep.subr.bf16.mxu1 %v9908_v40  ;;  %v9972_v39 = vld [vmem:[#allocation8 + $0x378] ss:$36 sps:$4 sm:$0xff]  }
 0x342   :  { %v9977_v40 = vld [vmem:[#allocation8 + $0x3bc] ss:$36 sps:$4 sm:$0xff]  }
 0x343   :  { %7552 = vmatpush1.bf16.msra.mxu0 %v9903_v41  ;;  %v9980_v41 = vld [vmem:[#allocation8 + $0x3c4] ss:$36 sps:$4 sm:$0xff]  }
 0x344   :  { %7724 = vmatpush1.bf16.msra.mxu1 %v9906_v42  ;;  %7553 = vmatprep.subr.bf16.mxu0 %v9911_v43  ;;  %v9975_v42 = vld [vmem:[#allocation8 + $0x3b8] ss:$36 sps:$4 sm:$0xff]   ;;  %v9978_v43 = vld [vmem:[#allocation8 + $0x3c0] ss:$36 sps:$4 sm:$0xff]  }
 0x345   :  { %7725 = vmatprep.subr.bf16.mxu1 %v9914_v44  ;;  %v9983_v44 = vld [vmem:[#allocation8 + $0x404] ss:$36 sps:$4 sm:$0xff]  }
 0x347   :  { %7554 = vmatpush1.bf16.msra.mxu0 %v9909_v45  ;;  %v9986_v45 = vld [vmem:[#allocation8 + $0x40c] ss:$36 sps:$4 sm:$0xff]  }
 0x348   :  { %7726 = vmatpush1.bf16.msra.mxu1 %v9912_v46  ;;  %7555 = vmatprep.subr.bf16.mxu0 %v9917_v47  ;;  %v9981_v46 = vld [vmem:[#allocation8 + $0x400] ss:$36 sps:$4 sm:$0xff]   ;;  %v9984_v47 = vld [vmem:[#allocation8 + $0x408] ss:$36 sps:$4 sm:$0xff]  }
 0x349   :  { %7727 = vmatprep.subr.bf16.mxu1 %v9920_v48  ;;  %v9989_v48 = vld [vmem:[#allocation8 + $0x44c] ss:$36 sps:$4 sm:$0xff]  }
 0x34b   :  { %7556 = vmatpush1.bf16.msra.mxu0 %v9915_v49  ;;  %v9992_v49 = vld [vmem:[#allocation8 + $0x454] ss:$36 sps:$4 sm:$0xff]  }
 0x34c   :  { %7728 = vmatpush1.bf16.msra.mxu1 %v9918_v50  ;;  %7557 = vmatprep.subr.bf16.mxu0 %v9923_v51  ;;  %v9987_v50 = vld [vmem:[#allocation8 + $0x448] ss:$36 sps:$4 sm:$0xff]   ;;  %v9990_v51 = vld [vmem:[#allocation8 + $0x450] ss:$36 sps:$4 sm:$0xff]  }
 0x34d   :  { %7729 = vmatprep.subr.bf16.mxu1 %v9926_v52  ;;  %v9995_v52 = vld [vmem:[#allocation8 + $0x494] ss:$36 sps:$4 sm:$0xff]  }
 0x34f   :  { %7558 = vmatpush1.bf16.msra.mxu0 %v9921_v53  ;;  %v9998_v53 = vld [vmem:[#allocation8 + $0x49c] ss:$36 sps:$4 sm:$0xff]  }
 0x350   :  { %7730 = vmatpush1.bf16.msra.mxu1 %v9924_v55  ;;  %7559 = vmatprep.subr.bf16.mxu0 %v9929_v57  ;;  %v9993_v55 = vld [vmem:[#allocation8 + $0x490] ss:$36 sps:$4 sm:$0xff]   ;;  %v9996_v57 = vld [vmem:[#allocation8 + $0x498] ss:$36 sps:$4 sm:$0xff]  }
 0x351   :  { %7731 = vmatprep.subr.bf16.mxu1 %v9932_v58  ;;  %v10001_v58 = vld [vmem:[#allocation8 + $0x4dc] ss:$36 sps:$4 sm:$0xff]  }
 0x353   :  { %7560 = vmatpush1.bf16.msra.mxu0 %v9927_v60  ;;  %v10004_v60 = vld [vmem:[#allocation8 + $0x4e4] ss:$36 sps:$4 sm:$0xff]  }
 0x354   :  { %7732 = vmatpush1.bf16.msra.mxu1 %v9930_v63  ;;  %7561 = vmatprep.subr.bf16.mxu0 %v9935_v0  ;;  %v9999_v63 = vld [vmem:[#allocation8 + $0x4d8] ss:$36 sps:$4 sm:$0xff]   ;;  %v10002_v0 = vld [vmem:[#allocation8 + $0x4e0] ss:$36 sps:$4 sm:$0xff]  }
 0x355   :  { %7733 = vmatprep.subr.bf16.mxu1 %v9938_v1  ;;  %v10007_v1 = vld [vmem:[#allocation8 + $0x524] ss:$36 sps:$4 sm:$0xff]  }
 0x357   :  { %7562 = vmatpush1.bf16.msra.mxu0 %v9933_v5  ;;  %v10010_v5 = vld [vmem:[#allocation8 + $0x52c] ss:$36 sps:$4 sm:$0xff]  }
 0x358   :  { %7734 = vmatpush1.bf16.msra.mxu1 %v9936_v2  ;;  %7563 = vmatprep.subr.bf16.mxu0 %v9941_v7  ;;  %v10005_v2 = vld [vmem:[#allocation8 + $0x520] ss:$36 sps:$4 sm:$0xff]   ;;  %v10008_v7 = vld [vmem:[#allocation8 + $0x528] ss:$36 sps:$4 sm:$0xff]  }
 0x359   :  { %7735 = vmatprep.subr.bf16.mxu1 %v9944_v8  ;;  %v10013_v8 = vld [vmem:[#allocation8 + $0x56c] ss:$36 sps:$4 sm:$0xff]  }
 0x35b   :  { %7564 = vmatpush1.bf16.msra.mxu0 %v9939_v9  ;;  %v10016_v9 = vld [vmem:[#allocation8 + $0x574] ss:$36 sps:$4 sm:$0xff]  }
 0x35c   :  { %7736 = vmatpush1.bf16.msra.mxu1 %v9942_v11  ;;  %7565 = vmatprep.subr.bf16.mxu0 %v9947_v14  ;;  %v10011_v11 = vld [vmem:[#allocation8 + $0x568] ss:$36 sps:$4 sm:$0xff]   ;;  %v10014_v14 = vld [vmem:[#allocation8 + $0x570] ss:$36 sps:$4 sm:$0xff]  }
 0x35d   :  { %7737 = vmatprep.subr.bf16.mxu1 %v9950_v15  ;;  %v10019_v15 = vld [vmem:[#allocation8 + $0x5b4] ss:$36 sps:$4 sm:$0xff]  }
 0x35f   :  { %7566 = vmatpush1.bf16.msra.mxu0 %v9945_v17  ;;  %v10022_v17 = vld [vmem:[#allocation8 + $0x5bc] ss:$36 sps:$4 sm:$0xff]  }
 0x360   :  { %7738 = vmatpush1.bf16.msra.mxu1 %v9948_v18  ;;  %7567 = vmatprep.subr.bf16.mxu0 %v9953_v19  ;;  %v10017_v18 = vld [vmem:[#allocation8 + $0x5b0] ss:$36 sps:$4 sm:$0xff]   ;;  %v10020_v19 = vld [vmem:[#allocation8 + $0x5b8] ss:$36 sps:$4 sm:$0xff]  }
 0x361   :  { %7739 = vmatprep.subr.bf16.mxu1 %v9956_v20  ;;  %v10025_v20 = vld [vmem:[#allocation8 + $0x5fc] ss:$36 sps:$4 sm:$0xff]  }
 0x363   :  { %7568 = vmatpush1.bf16.msra.mxu0 %v9951_v21  ;;  %v10028_v21 = vld [vmem:[#allocation8 + $0x604] ss:$36 sps:$4 sm:$0xff]  }
 0x364   :  { %7740 = vmatpush1.bf16.msra.mxu1 %v9954_v22  ;;  %7569 = vmatprep.subr.bf16.mxu0 %v9959_v23  ;;  %v10023_v22 = vld [vmem:[#allocation8 + $0x5f8] ss:$36 sps:$4 sm:$0xff]   ;;  %v10026_v23 = vld [vmem:[#allocation8 + $0x600] ss:$36 sps:$4 sm:$0xff]  }
 0x365   :  { %7741 = vmatprep.subr.bf16.mxu1 %v9962_v24  ;;  %v10031_v24 = vld [vmem:[#allocation8 + $0x644] ss:$36 sps:$4 sm:$0xff]  }
 0x367   :  { %7570 = vmatpush1.bf16.msra.mxu0 %v9957_v25  ;;  %v10034_v25 = vld [vmem:[#allocation8 + $0x64c] ss:$36 sps:$4 sm:$0xff]  }
 0x368   :  { %7742 = vmatpush1.bf16.msra.mxu1 %v9960_v26  ;;  %7571 = vmatprep.subr.bf16.mxu0 %v9965_v27  ;;  %v10029_v26 = vld [vmem:[#allocation8 + $0x640] ss:$36 sps:$4 sm:$0xff]   ;;  %v10032_v27 = vld [vmem:[#allocation8 + $0x648] ss:$36 sps:$4 sm:$0xff]  }
 0x369   :  { %7743 = vmatprep.subr.bf16.mxu1 %v9968_v28  ;;  %v10037_v28 = vld [vmem:[#allocation8 + $0x68c] ss:$36 sps:$4 sm:$0xff]  }
 0x36b   :  { %7572 = vmatpush1.bf16.msra.mxu0 %v9963_v29  ;;  %v10040_v29 = vld [vmem:[#allocation8 + $0x694] ss:$36 sps:$4 sm:$0xff]  }
 0x36c   :  { %7744 = vmatpush1.bf16.msra.mxu1 %v9966_v30  ;;  %7573 = vmatprep.subr.bf16.mxu0 %v9971_v31  ;;  %v10035_v30 = vld [vmem:[#allocation8 + $0x688] ss:$36 sps:$4 sm:$0xff]   ;;  %v10038_v31 = vld [vmem:[#allocation8 + $0x690] ss:$36 sps:$4 sm:$0xff]  }
 0x36d   :  { %7745 = vmatprep.subr.bf16.mxu1 %v9974_v33  ;;  %v10043_v33 = vld [vmem:[#allocation8 + $0x6d4] ss:$36 sps:$4 sm:$0xff]  }
 0x36f   :  { %7574 = vmatpush1.bf16.msra.mxu0 %v9969_v34  ;;  %v10046_v34 = vld [vmem:[#allocation8 + $0x6dc] ss:$36 sps:$4 sm:$0xff]  }
 0x370   :  { %7746 = vmatpush1.bf16.msra.mxu1 %v9972_v39  ;;  %7575 = vmatprep.subr.bf16.mxu0 %v9977_v40  ;;  %v10041_v39 = vld [vmem:[#allocation8 + $0x6d0] ss:$36 sps:$4 sm:$0xff]   ;;  %v10044_v40 = vld [vmem:[#allocation8 + $0x6d8] ss:$36 sps:$4 sm:$0xff]  }
 0x371   :  { %7747 = vmatprep.subr.bf16.mxu1 %v9980_v41  ;;  %v10049_v41 = vld [vmem:[#allocation8 + $0x71c] ss:$36 sps:$4 sm:$0xff]  }
 0x373   :  { %7576 = vmatpush1.bf16.msra.mxu0 %v9975_v42  ;;  %v10052_v42 = vld [vmem:[#allocation8 + $0x724] ss:$36 sps:$4 sm:$0xff]  }
 0x374   :  { %7748 = vmatpush1.bf16.msra.mxu1 %v9978_v43  ;;  %7577 = vmatprep.subr.bf16.mxu0 %v9983_v44  ;;  %v10047_v43 = vld [vmem:[#allocation8 + $0x718] ss:$36 sps:$4 sm:$0xff]   ;;  %v10050_v44 = vld [vmem:[#allocation8 + $0x720] ss:$36 sps:$4 sm:$0xff]  }
 0x375   :  { %7749 = vmatprep.subr.bf16.mxu1 %v9986_v45  ;;  %v10055_v45 = vld [vmem:[#allocation8 + $0x764] ss:$36 sps:$4 sm:$0xff]  }
 0x377   :  { %7578 = vmatpush1.bf16.msra.mxu0 %v9981_v46  ;;  %v10058_v46 = vld [vmem:[#allocation8 + $0x76c] ss:$36 sps:$4 sm:$0xff]  }
 0x378   :  { %7750 = vmatpush1.bf16.msra.mxu1 %v9984_v47  ;;  %7579 = vmatprep.subr.bf16.mxu0 %v9989_v48  ;;  %v10053_v47 = vld [vmem:[#allocation8 + $0x760] ss:$36 sps:$4 sm:$0xff]   ;;  %v10056_v48 = vld [vmem:[#allocation8 + $0x768] ss:$36 sps:$4 sm:$0xff]  }
 0x379   :  { %7751 = vmatprep.subr.bf16.mxu1 %v9992_v49  ;;  %v10061_v49 = vld [vmem:[#allocation8 + $0x7ac] ss:$36 sps:$4 sm:$0xff]  }
 0x37b   :  { %7580 = vmatpush1.bf16.msra.mxu0 %v9987_v50  ;;  %v10064_v50 = vld [vmem:[#allocation8 + $0x7b4] ss:$36 sps:$4 sm:$0xff]  }
 0x37c   :  { %7752 = vmatpush1.bf16.msra.mxu1 %v9990_v51  ;;  %7592 = vmatprep.subr.bf16.mxu0 %v9995_v52  ;;  %v10059_v51 = vld [vmem:[#allocation8 + $0x7a8] ss:$36 sps:$4 sm:$0xff]   ;;  %v10062_v52 = vld [vmem:[#allocation8 + $0x7b0] ss:$36 sps:$4 sm:$0xff]  }
 0x37d   :  { %7764 = vmatprep.subr.bf16.mxu1 %v9998_v53  ;;  %v10067_v53 = vld [vmem:[#allocation8 + $0x7f4] ss:$36 sps:$4 sm:$0xff]  }
 0x37e   :  { %7582 = vmatmul.mubr.bf16.vlgmr.msra.gmra.mrb[12].mxu0 %v10661_v54 }
 0x37f   :  { %7754 = vmatmul.mubr.bf16.vlgmr.msra.gmra.mrb[12].mxu1 %v10661_v54  ;;  %7593 = vmatpush1.bf16.msra.mxu0 %v9993_v55  ;;  %v10070_v55 = vld [vmem:[#allocation8 + $0x7fc] ss:$36 sps:$4 sm:$0xff]  }
 0x380   :  { %7624 = vmatprep.mubr.bf16.mxu0 %v10667_v61  ;;  %7765 = vmatpush1.bf16.msra.mxu1 %v9996_v57  ;;  %v10065_v57 = vld [vmem:[#allocation8 + $0x7f0] ss:$36 sps:$4 sm:$0xff]  }
 0x381   :  { %7796 = vmatprep.mubr.bf16.mxu1 %v10667_v61  ;;  %7594 = vmatprep.subr.bf16.mxu0 %v10001_v58  ;;  %v10068_v58 = vld [vmem:[#allocation8 + $0x7f8] ss:$36 sps:$4 sm:$0xff]  }
 0x382   :  { %7766 = vmatprep.subr.bf16.mxu1 %v10004_v60  ;;  %v10073_v60 = vld [vmem:[#allocation8 + $0x83c] ss:$36 sps:$4 sm:$0xff]  }
 0x383   :  { %7595 = vmatpush1.bf16.msra.mxu0 %v9999_v63  ;;  %v10076_v63 = vld [vmem:[#allocation8 + $0x844] ss:$36 sps:$4 sm:$0xff]  }
 0x384   :  { %7767 = vmatpush1.bf16.msra.mxu1 %v10002_v0  ;;  %7596 = vmatprep.subr.bf16.mxu0 %v10007_v1  ;;  %v10071_v0 = vld [vmem:[#allocation8 + $0x838] ss:$36 sps:$4 sm:$0xff]   ;;  %v10074_v1 = vld [vmem:[#allocation8 + $0x840] ss:$36 sps:$4 sm:$0xff]  }
 0x385   :  { %7768 = vmatprep.subr.bf16.mxu1 %v10010_v5  ;;  %v10079_v5 = vld [vmem:[#allocation8 + $0x884] ss:$36 sps:$4 sm:$0xff]  }
 0x387   :  { %7597 = vmatpush1.bf16.msra.mxu0 %v10005_v2  ;;  %v10082_v2 = vld [vmem:[#allocation8 + $0x88c] ss:$36 sps:$4 sm:$0xff]  }
 0x388   :  { %7769 = vmatpush1.bf16.msra.mxu1 %v10008_v7  ;;  %7598 = vmatprep.subr.bf16.mxu0 %v10013_v8  ;;  %v10077_v7 = vld [vmem:[#allocation8 + $0x880] ss:$36 sps:$4 sm:$0xff]   ;;  %v10080_v8 = vld [vmem:[#allocation8 + $0x888] ss:$36 sps:$4 sm:$0xff]  }
 0x389   :  { %7770 = vmatprep.subr.bf16.mxu1 %v10016_v9  ;;  %v10085_v9 = vld [vmem:[#allocation8 + $0x8cc] ss:$36 sps:$4 sm:$0xff]  }
 0x38b   :  { %7599 = vmatpush1.bf16.msra.mxu0 %v10011_v11  ;;  %v10088_v11 = vld [vmem:[#allocation8 + $0x8d4] ss:$36 sps:$4 sm:$0xff]  }
 0x38c   :  { %7771 = vmatpush1.bf16.msra.mxu1 %v10014_v14  ;;  %7600 = vmatprep.subr.bf16.mxu0 %v10019_v15  ;;  %v10083_v14 = vld [vmem:[#allocation8 + $0x8c8] ss:$36 sps:$4 sm:$0xff]   ;;  %v10086_v15 = vld [vmem:[#allocation8 + $0x8d0] ss:$36 sps:$4 sm:$0xff]  }
 0x38d   :  { %7772 = vmatprep.subr.bf16.mxu1 %v10022_v17  ;;  %v10091_v17 = vld [vmem:[#allocation8 + $0x914] ss:$36 sps:$4 sm:$0xff]  }
 0x38f   :  { %7601 = vmatpush1.bf16.msra.mxu0 %v10017_v18  ;;  %v10094_v18 = vld [vmem:[#allocation8 + $0x91c] ss:$36 sps:$4 sm:$0xff]  }
 0x390   :  { %7773 = vmatpush1.bf16.msra.mxu1 %v10020_v19  ;;  %7602 = vmatprep.subr.bf16.mxu0 %v10025_v20  ;;  %v10089_v19 = vld [vmem:[#allocation8 + $0x910] ss:$36 sps:$4 sm:$0xff]   ;;  %v10092_v20 = vld [vmem:[#allocation8 + $0x918] ss:$36 sps:$4 sm:$0xff]  }
 0x391   :  { %7774 = vmatprep.subr.bf16.mxu1 %v10028_v21  ;;  %v10097_v21 = vld [vmem:[#allocation8 + $0x95c] ss:$36 sps:$4 sm:$0xff]  }
 0x393   :  { %7603 = vmatpush1.bf16.msra.mxu0 %v10023_v22  ;;  %v10100_v22 = vld [vmem:[#allocation8 + $0x964] ss:$36 sps:$4 sm:$0xff]  }
 0x394   :  { %7775 = vmatpush1.bf16.msra.mxu1 %v10026_v23  ;;  %7604 = vmatprep.subr.bf16.mxu0 %v10031_v24  ;;  %v10095_v23 = vld [vmem:[#allocation8 + $0x958] ss:$36 sps:$4 sm:$0xff]   ;;  %v10098_v24 = vld [vmem:[#allocation8 + $0x960] ss:$36 sps:$4 sm:$0xff]  }
 0x395   :  { %7776 = vmatprep.subr.bf16.mxu1 %v10034_v25  ;;  %v10103_v25 = vld [vmem:[#allocation8 + $0x9a4] ss:$36 sps:$4 sm:$0xff]  }
 0x397   :  { %7605 = vmatpush1.bf16.msra.mxu0 %v10029_v26  ;;  %v10106_v26 = vld [vmem:[#allocation8 + $0x9ac] ss:$36 sps:$4 sm:$0xff]  }
 0x398   :  { %7777 = vmatpush1.bf16.msra.mxu1 %v10032_v27  ;;  %7606 = vmatprep.subr.bf16.mxu0 %v10037_v28  ;;  %v10101_v27 = vld [vmem:[#allocation8 + $0x9a0] ss:$36 sps:$4 sm:$0xff]   ;;  %v10104_v28 = vld [vmem:[#allocation8 + $0x9a8] ss:$36 sps:$4 sm:$0xff]  }
 0x399   :  { %7778 = vmatprep.subr.bf16.mxu1 %v10040_v29  ;;  %v10109_v29 = vld [vmem:[#allocation8 + $0x9ec] ss:$36 sps:$4 sm:$0xff]  }
 0x39b   :  { %7607 = vmatpush1.bf16.msra.mxu0 %v10035_v30  ;;  %v10112_v30 = vld [vmem:[#allocation8 + $0x9f4] ss:$36 sps:$4 sm:$0xff]  }
 0x39c   :  { %7779 = vmatpush1.bf16.msra.mxu1 %v10038_v31  ;;  %7608 = vmatprep.subr.bf16.mxu0 %v10043_v33  ;;  %v10107_v31 = vld [vmem:[#allocation8 + $0x9e8] ss:$36 sps:$4 sm:$0xff]   ;;  %v10110_v33 = vld [vmem:[#allocation8 + $0x9f0] ss:$36 sps:$4 sm:$0xff]  }
 0x39d   :  { %7780 = vmatprep.subr.bf16.mxu1 %v10046_v34  ;;  %v10115_v34 = vld [vmem:[#allocation8 + $0xa34] ss:$36 sps:$4 sm:$0xff]  }
 0x39f   :  { %7609 = vmatpush1.bf16.msra.mxu0 %v10041_v39  ;;  %v10118_v39 = vld [vmem:[#allocation8 + $0xa3c] ss:$36 sps:$4 sm:$0xff]  }
 0x3a0   :  { %7781 = vmatpush1.bf16.msra.mxu1 %v10044_v40  ;;  %7610 = vmatprep.subr.bf16.mxu0 %v10049_v41  ;;  %v10113_v40 = vld [vmem:[#allocation8 + $0xa30] ss:$36 sps:$4 sm:$0xff]   ;;  %v10116_v41 = vld [vmem:[#allocation8 + $0xa38] ss:$36 sps:$4 sm:$0xff]  }
 0x3a1   :  { %7782 = vmatprep.subr.bf16.mxu1 %v10052_v42  ;;  %v10121_v42 = vld [vmem:[#allocation8 + $0xa7c] ss:$36 sps:$4 sm:$0xff]  }
 0x3a3   :  { %7611 = vmatpush1.bf16.msra.mxu0 %v10047_v43  ;;  %v10124_v43 = vld [vmem:[#allocation8 + $0xa84] ss:$36 sps:$4 sm:$0xff]  }
 0x3a4   :  { %7783 = vmatpush1.bf16.msra.mxu1 %v10050_v44  ;;  %7612 = vmatprep.subr.bf16.mxu0 %v10055_v45  ;;  %v10119_v44 = vld [vmem:[#allocation8 + $0xa78] ss:$36 sps:$4 sm:$0xff]   ;;  %v10122_v45 = vld [vmem:[#allocation8 + $0xa80] ss:$36 sps:$4 sm:$0xff]  }
 0x3a5   :  { %7784 = vmatprep.subr.bf16.mxu1 %v10058_v46  ;;  %v10127_v46 = vld [vmem:[#allocation8 + $0xac4] ss:$36 sps:$4 sm:$0xff]  }
 0x3a7   :  { %7613 = vmatpush1.bf16.msra.mxu0 %v10053_v47  ;;  %v10130_v47 = vld [vmem:[#allocation8 + $0xacc] ss:$36 sps:$4 sm:$0xff]  }
 0x3a8   :  { %7785 = vmatpush1.bf16.msra.mxu1 %v10056_v48  ;;  %7614 = vmatprep.subr.bf16.mxu0 %v10061_v49  ;;  %v10125_v48 = vld [vmem:[#allocation8 + $0xac0] ss:$36 sps:$4 sm:$0xff]   ;;  %v10128_v49 = vld [vmem:[#allocation8 + $0xac8] ss:$36 sps:$4 sm:$0xff]  }
 0x3a9   :  { %7786 = vmatprep.subr.bf16.mxu1 %v10064_v50  ;;  %v10133_v50 = vld [vmem:[#allocation8 + $0xb0c] ss:$36 sps:$4 sm:$0xff]  }
 0x3ab   :  { %7615 = vmatpush1.bf16.msra.mxu0 %v10059_v51  ;;  %v10136_v51 = vld [vmem:[#allocation8 + $0xb14] ss:$36 sps:$4 sm:$0xff]  }
 0x3ac   :  { %7787 = vmatpush1.bf16.msra.mxu1 %v10062_v52  ;;  %7616 = vmatprep.subr.bf16.mxu0 %v10067_v53  ;;  %v10131_v52 = vld [vmem:[#allocation8 + $0xb08] ss:$36 sps:$4 sm:$0xff]   ;;  %v10134_v53 = vld [vmem:[#allocation8 + $0xb10] ss:$36 sps:$4 sm:$0xff]  }
 0x3ad   :  { %7788 = vmatprep.subr.bf16.mxu1 %v10070_v55  ;;  %v10139_v55 = vld [vmem:[#allocation8 + $0xb54] ss:$36 sps:$4 sm:$0xff]  }
 0x3af   :  { %7617 = vmatpush1.bf16.msra.mxu0 %v10065_v57  ;;  %v10142_v57 = vld [vmem:[#allocation8 + $0xb5c] ss:$36 sps:$4 sm:$0xff]  }
 0x3b0   :  { %7789 = vmatpush1.bf16.msra.mxu1 %v10068_v58  ;;  %7618 = vmatprep.subr.bf16.mxu0 %v10073_v60  ;;  %v10137_v58 = vld [vmem:[#allocation8 + $0xb50] ss:$36 sps:$4 sm:$0xff]   ;;  %v10140_v60 = vld [vmem:[#allocation8 + $0xb58] ss:$36 sps:$4 sm:$0xff]  }
 0x3b1   :  { %7790 = vmatprep.subr.bf16.mxu1 %v10076_v63  ;;  %v10145_v63 = vld [vmem:[#allocation8 + $0xb9c] ss:$36 sps:$4 sm:$0xff]  }
 0x3b3   :  { %7619 = vmatpush1.bf16.msra.mxu0 %v10071_v0  ;;  %v10148_v0 = vld [vmem:[#allocation8 + $0xba4] ss:$36 sps:$4 sm:$0xff]  }
 0x3b4   :  { %7791 = vmatpush1.bf16.msra.mxu1 %v10074_v1  ;;  %7620 = vmatprep.subr.bf16.mxu0 %v10079_v5  ;;  %v10143_v1 = vld [vmem:[#allocation8 + $0xb98] ss:$36 sps:$4 sm:$0xff]   ;;  %v10146_v5 = vld [vmem:[#allocation8 + $0xba0] ss:$36 sps:$4 sm:$0xff]  }
 0x3b5   :  { %7792 = vmatprep.subr.bf16.mxu1 %v10082_v2  ;;  %v10151_v2 = vld [vmem:[#allocation8 + $0xbe4] ss:$36 sps:$4 sm:$0xff]  }
 0x3b7   :  { %7621 = vmatpush1.bf16.msra.mxu0 %v10077_v7  ;;  %v10154_v7 = vld [vmem:[#allocation8 + $0xbec] ss:$36 sps:$4 sm:$0xff]  }
 0x3b8   :  { %7793 = vmatpush1.bf16.msra.mxu1 %v10080_v8  ;;  %7622 = vmatprep.subr.bf16.mxu0 %v10085_v9  ;;  %v10149_v8 = vld [vmem:[#allocation8 + $0xbe0] ss:$36 sps:$4 sm:$0xff]   ;;  %v10152_v9 = vld [vmem:[#allocation8 + $0xbe8] ss:$36 sps:$4 sm:$0xff]  }
 0x3b9   :  { %7794 = vmatprep.subr.bf16.mxu1 %v10088_v11  ;;  %v10157_v11 = vld [vmem:[#allocation8 + $0xc2c] ss:$36 sps:$4 sm:$0xff]  }
 0x3bb   :  { %7623 = vmatpush1.bf16.msra.mxu0 %v10083_v14  ;;  %v10160_v14 = vld [vmem:[#allocation8 + $0xc34] ss:$36 sps:$4 sm:$0xff]  }
 0x3bc   :  { %7795 = vmatpush1.bf16.msra.mxu1 %v10086_v15  ;;  %7635 = vmatprep.subr.bf16.mxu0 %v10091_v17  ;;  %v10155_v15 = vld [vmem:[#allocation8 + $0xc28] ss:$36 sps:$4 sm:$0xff]   ;;  %v10158_v17 = vld [vmem:[#allocation8 + $0xc30] ss:$36 sps:$4 sm:$0xff]  }
 0x3bd   :  { %7807 = vmatprep.subr.bf16.mxu1 %v10094_v18  ;;  %v10163_v18 = vld [vmem:[#allocation8 + $0xc74] ss:$36 sps:$4 sm:$0xff]  }
 0x3be   :  { %7625 = vmatmul.mubr.bf16.vlgmr.msra.gmra.mrb[12].mxu0 %v10663_v32 }
 0x3bf   :  { %7797 = vmatmul.mubr.bf16.vlgmr.msra.gmra.mrb[12].mxu1 %v10663_v32  ;;  %7636 = vmatpush1.bf16.msra.mxu0 %v10089_v19  ;;  %v10166_v19 = vld [vmem:[#allocation8 + $0xc7c] ss:$36 sps:$4 sm:$0xff]  }
 0x3c0   :  { %7667 = vmatprep.mubr.bf16.mxu0 %v10697_v13  ;;  %7808 = vmatpush1.bf16.msra.mxu1 %v10092_v20  ;;  %v10161_v20 = vld [vmem:[#allocation8 + $0xc70] ss:$36 sps:$4 sm:$0xff]  }
 0x3c1   :  { %7839 = vmatprep.mubr.bf16.mxu1 %v10697_v13  ;;  %7637 = vmatprep.subr.bf16.mxu0 %v10097_v21  ;;  %v10164_v21 = vld [vmem:[#allocation8 + $0xc78] ss:$36 sps:$4 sm:$0xff]  }
 0x3c2   :  { %7809 = vmatprep.subr.bf16.mxu1 %v10100_v22  ;;  %v10169_v22 = vld [vmem:[#allocation8 + $0xcbc] ss:$36 sps:$4 sm:$0xff]  }
 0x3c3   :  { %7638 = vmatpush1.bf16.msra.mxu0 %v10095_v23  ;;  %v10172_v23 = vld [vmem:[#allocation8 + $0xcc4] ss:$36 sps:$4 sm:$0xff]  }
 0x3c4   :  { %7810 = vmatpush1.bf16.msra.mxu1 %v10098_v24  ;;  %7639 = vmatprep.subr.bf16.mxu0 %v10103_v25  ;;  %v10167_v24 = vld [vmem:[#allocation8 + $0xcb8] ss:$36 sps:$4 sm:$0xff]   ;;  %v10170_v25 = vld [vmem:[#allocation8 + $0xcc0] ss:$36 sps:$4 sm:$0xff]  }
 0x3c5   :  { %7811 = vmatprep.subr.bf16.mxu1 %v10106_v26  ;;  %v10175_v26 = vld [vmem:[#allocation8 + $0xd04] ss:$36 sps:$4 sm:$0xff]  }
 0x3c7   :  { %7640 = vmatpush1.bf16.msra.mxu0 %v10101_v27  ;;  %v10178_v27 = vld [vmem:[#allocation8 + $0xd0c] ss:$36 sps:$4 sm:$0xff]  }
 0x3c8   :  { %7812 = vmatpush1.bf16.msra.mxu1 %v10104_v28  ;;  %7641 = vmatprep.subr.bf16.mxu0 %v10109_v29  ;;  %v10173_v28 = vld [vmem:[#allocation8 + $0xd00] ss:$36 sps:$4 sm:$0xff]   ;;  %v10176_v29 = vld [vmem:[#allocation8 + $0xd08] ss:$36 sps:$4 sm:$0xff]  }
 0x3c9   :  { %7813 = vmatprep.subr.bf16.mxu1 %v10112_v30  ;;  %v10181_v30 = vld [vmem:[#allocation8 + $0xd4c] ss:$36 sps:$4 sm:$0xff]  }
 0x3cb   :  { %7642 = vmatpush1.bf16.msra.mxu0 %v10107_v31  ;;  %v10184_v31 = vld [vmem:[#allocation8 + $0xd54] ss:$36 sps:$4 sm:$0xff]  }
 0x3cc   :  { %7814 = vmatpush1.bf16.msra.mxu1 %v10110_v33  ;;  %7643 = vmatprep.subr.bf16.mxu0 %v10115_v34  ;;  %v10179_v33 = vld [vmem:[#allocation8 + $0xd48] ss:$36 sps:$4 sm:$0xff]   ;;  %v10182_v34 = vld [vmem:[#allocation8 + $0xd50] ss:$36 sps:$4 sm:$0xff]  }
 0x3cd   :  { %7815 = vmatprep.subr.bf16.mxu1 %v10118_v39  ;;  %v10187_v39 = vld [vmem:[#allocation8 + $0xd94] ss:$36 sps:$4 sm:$0xff]  }
 0x3cf   :  { %7644 = vmatpush1.bf16.msra.mxu0 %v10113_v40  ;;  %v10190_v40 = vld [vmem:[#allocation8 + $0xd9c] ss:$36 sps:$4 sm:$0xff]  }
 0x3d0   :  { %7816 = vmatpush1.bf16.msra.mxu1 %v10116_v41  ;;  %7645 = vmatprep.subr.bf16.mxu0 %v10121_v42  ;;  %v10185_v41 = vld [vmem:[#allocation8 + $0xd90] ss:$36 sps:$4 sm:$0xff]   ;;  %v10188_v42 = vld [vmem:[#allocation8 + $0xd98] ss:$36 sps:$4 sm:$0xff]  }
 0x3d1   :  { %7817 = vmatprep.subr.bf16.mxu1 %v10124_v43  ;;  %v10193_v43 = vld [vmem:[#allocation8 + $0xddc] ss:$36 sps:$4 sm:$0xff]  }
 0x3d3   :  { %7646 = vmatpush1.bf16.msra.mxu0 %v10119_v44  ;;  %v10196_v44 = vld [vmem:[#allocation8 + $0xde4] ss:$36 sps:$4 sm:$0xff]  }
 0x3d4   :  { %7818 = vmatpush1.bf16.msra.mxu1 %v10122_v45  ;;  %7647 = vmatprep.subr.bf16.mxu0 %v10127_v46  ;;  %v10191_v45 = vld [vmem:[#allocation8 + $0xdd8] ss:$36 sps:$4 sm:$0xff]   ;;  %v10194_v46 = vld [vmem:[#allocation8 + $0xde0] ss:$36 sps:$4 sm:$0xff]  }
 0x3d5   :  { %7819 = vmatprep.subr.bf16.mxu1 %v10130_v47  ;;  %v10199_v47 = vld [vmem:[#allocation8 + $0xe24] ss:$36 sps:$4 sm:$0xff]  }
 0x3d7   :  { %7648 = vmatpush1.bf16.msra.mxu0 %v10125_v48  ;;  %v10202_v48 = vld [vmem:[#allocation8 + $0xe2c] ss:$36 sps:$4 sm:$0xff]  }
 0x3d8   :  { %7820 = vmatpush1.bf16.msra.mxu1 %v10128_v49  ;;  %7649 = vmatprep.subr.bf16.mxu0 %v10133_v50  ;;  %v10197_v49 = vld [vmem:[#allocation8 + $0xe20] ss:$36 sps:$4 sm:$0xff]   ;;  %v10200_v50 = vld [vmem:[#allocation8 + $0xe28] ss:$36 sps:$4 sm:$0xff]  }
 0x3d9   :  { %7821 = vmatprep.subr.bf16.mxu1 %v10136_v51  ;;  %v10205_v51 = vld [vmem:[#allocation8 + $0xe6c] ss:$36 sps:$4 sm:$0xff]  }
 0x3db   :  { %7650 = vmatpush1.bf16.msra.mxu0 %v10131_v52  ;;  %v10208_v52 = vld [vmem:[#allocation8 + $0xe74] ss:$36 sps:$4 sm:$0xff]  }
 0x3dc   :  { %7822 = vmatpush1.bf16.msra.mxu1 %v10134_v53  ;;  %7651 = vmatprep.subr.bf16.mxu0 %v10139_v55  ;;  %v10203_v53 = vld [vmem:[#allocation8 + $0xe68] ss:$36 sps:$4 sm:$0xff]   ;;  %v10206_v55 = vld [vmem:[#allocation8 + $0xe70] ss:$36 sps:$4 sm:$0xff]  }
 0x3dd   :  { %7823 = vmatprep.subr.bf16.mxu1 %v10142_v57  ;;  %v10211_v57 = vld [vmem:[#allocation8 + $0xeb4] ss:$36 sps:$4 sm:$0xff]  }
 0x3df   :  { %7652 = vmatpush1.bf16.msra.mxu0 %v10137_v58  ;;  %v10214_v58 = vld [vmem:[#allocation8 + $0xebc] ss:$36 sps:$4 sm:$0xff]  }
 0x3e0   :  { %7824 = vmatpush1.bf16.msra.mxu1 %v10140_v60  ;;  %7653 = vmatprep.subr.bf16.mxu0 %v10145_v63  ;;  %v10209_v60 = vld [vmem:[#allocation8 + $0xeb0] ss:$36 sps:$4 sm:$0xff]   ;;  %v10723_v63 = vld [vmem:[#allocation10] sm:$0xff] }
 0x3e1   :  { %7825 = vmatprep.subr.bf16.mxu1 %v10148_v0  ;;  %v10212_v0 = vld [vmem:[#allocation8 + $0xeb8] ss:$36 sps:$4 sm:$0xff]  }
 0x3e3   :  { %7654 = vmatpush1.bf16.msra.mxu0 %v10143_v1  ;;  %v10217_v1 = vld [vmem:[#allocation8 + $0xefc] ss:$36 sps:$4 sm:$0xff]  }
 0x3e4   :  { %7826 = vmatpush1.bf16.msra.mxu1 %v10146_v5  ;;  %7655 = vmatprep.subr.bf16.mxu0 %v10151_v2  ;;  %v10220_v5 = vld [vmem:[#allocation8 + $0xf04] ss:$36 sps:$4 sm:$0xff]   ;;  %v4219_v2 = vrot.slane %v10723_v63, %v546_v62 }
 0x3e5   :  { %7827 = vmatprep.subr.bf16.mxu1 %v10154_v7  ;;  %v4223_v7 = vrot.slane %v10723_v63, %v550_v4  ;;  %v4231_v4 = vrot.slane %v10723_v63, %v558_v6  ;;  %v10232_v6 = vld [vmem:[#allocation8 + $0xf94] ss:$36 sps:$4 sm:$0xff]  }
 0x3e7   :  { %7656 = vmatpush1.bf16.msra.mxu0 %v10149_v8  ;;  %v10215_v8 = vld [vmem:[#allocation8 + $0xef8] ss:$36 sps:$4 sm:$0xff]  }
 0x3e8   :  { %7828 = vmatpush1.bf16.msra.mxu1 %v10152_v9  ;;  %7657 = vmatprep.subr.bf16.mxu0 %v10157_v11  ;;  %v10218_v9 = vld [vmem:[#allocation8 + $0xf00] ss:$36 sps:$4 sm:$0xff]  }
 0x3e9   :  { %7829 = vmatprep.subr.bf16.mxu1 %v10160_v14  ;;  %v10223_v11 = vld [vmem:[#allocation8 + $0xf44] ss:$36 sps:$4 sm:$0xff]  }
 0x3eb   :  { %7658 = vmatpush1.bf16.msra.mxu0 %v10155_v15  ;;  %v4227_v15 = vrot.slane %v10723_v63, %v554_v3 }
 0x3ec   :  { %7830 = vmatpush1.bf16.msra.mxu1 %v10158_v17  ;;  %7659 = vmatprep.subr.bf16.mxu0 %v10163_v18  ;;  %v10226_v18 = vld [vmem:[#allocation8 + $0xf4c] ss:$36 sps:$4 sm:$0xff]  }
 0x3ed   :  { %7831 = vmatprep.subr.bf16.mxu1 %v10166_v19 }
 0x3ef   :  { %7660 = vmatpush1.bf16.msra.mxu0 %v10161_v20 }
 0x3f0   :  { %7832 = vmatpush1.bf16.msra.mxu1 %v10164_v21  ;;  %7661 = vmatprep.subr.bf16.mxu0 %v10169_v22 }
 0x3f1   :  { %7833 = vmatprep.subr.bf16.mxu1 %v10172_v23 }
 0x3f3   :  { %7662 = vmatpush1.bf16.msra.mxu0 %v10167_v24  ;;  %v10221_v24 = vld [vmem:[#allocation8 + $0xf40] ss:$36 sps:$4 sm:$0xff]  }
 0x3f4   :  { %7834 = vmatpush1.bf16.msra.mxu1 %v10170_v25  ;;  %7663 = vmatprep.subr.bf16.mxu0 %v10175_v26 }
 0x3f5   :  { %7835 = vmatprep.subr.bf16.mxu1 %v10178_v27  ;;  %v10224_v27 = vld [vmem:[#allocation8 + $0xf48] ss:$36 sps:$4 sm:$0xff]  }
 0x3f7   :  { %7664 = vmatpush1.bf16.msra.mxu0 %v10173_v28  ;;  %v10229_v28 = vld [vmem:[#allocation8 + $0xf8c] ss:$36 sps:$4 sm:$0xff]  }
 0x3f8   :  { %7836 = vmatpush1.bf16.msra.mxu1 %v10176_v29  ;;  %7665 = vmatprep.subr.bf16.mxu0 %v10181_v30 }
 0x3f9   :  { %7837 = vmatprep.subr.bf16.mxu1 %v10184_v31 }
 0x3fb   :  { %7666 = vmatpush1.bf16.msra.mxu0 %v10179_v33 }
 0x3fc   :  { %7838 = vmatpush1.bf16.msra.mxu1 %v10182_v34  ;;  %7678 = vmatprep.subr.bf16.mxu0 %v10187_v39 }
 0x3fd   :  { %7850 = vmatprep.subr.bf16.mxu1 %v10190_v40 }
 0x3fe   :  { %7668 = vmatmul.mubr.bf16.vlgmr.msra.gmra.mrb[12].mxu0 %v10693_v10 }
 0x3ff   :  { %7840 = vmatmul.mubr.bf16.vlgmr.msra.gmra.mrb[12].mxu1 %v10693_v10  ;;  %7679 = vmatpush1.bf16.msra.mxu0 %v10185_v41  ;;  %v10227_v41 = vld [vmem:[#allocation8 + $0xf88] ss:$36 sps:$4 sm:$0xff]  }
 0x400   :  { %7710 = vmatprep.mubr.bf16.mxu0 %v10699_v16  ;;  %7851 = vmatpush1.bf16.msra.mxu1 %v10188_v42  ;;  %v10230_v42 = vld [vmem:[#allocation8 + $0xf90] ss:$36 sps:$4 sm:$0xff]  }
 0x401   :  { %7882 = vmatprep.mubr.bf16.mxu1 %v10699_v16  ;;  %7680 = vmatprep.subr.bf16.mxu0 %v10193_v43  ;;  %v10235_v43 = vld [vmem:[#allocation8 + $0xfd4] ss:$36 sps:$4 sm:$0xff]  }
 0x402   :  { %7852 = vmatprep.subr.bf16.mxu1 %v10196_v44 }
 0x403   :  { %7681 = vmatpush1.bf16.msra.mxu0 %v10191_v45 }
 0x404   :  { %7853 = vmatpush1.bf16.msra.mxu1 %v10194_v46  ;;  %7682 = vmatprep.subr.bf16.mxu0 %v10199_v47  ;;  %v10238_v47 = vld [vmem:[#allocation8 + $0xfdc] ss:$36 sps:$4 sm:$0xff]  }
 0x405   :  { %7854 = vmatprep.subr.bf16.mxu1 %v10202_v48 }
 0x407   :  { %7683 = vmatpush1.bf16.msra.mxu0 %v10197_v49  ;;  %v10233_v49 = vld [vmem:[#allocation8 + $0xfd0] ss:$36 sps:$4 sm:$0xff]  }
 0x408   :  { %7855 = vmatpush1.bf16.msra.mxu1 %v10200_v50  ;;  %7684 = vmatprep.subr.bf16.mxu0 %v10205_v51  ;;  %v10236_v50 = vld [vmem:[#allocation8 + $0xfd8] ss:$36 sps:$4 sm:$0xff]  }
 0x409   :  { %7856 = vmatprep.subr.bf16.mxu1 %v10208_v52  ;;  %v10241_v51 = vld [vmem:[#allocation8 + $0x101c] ss:$36 sps:$4 sm:$0xff]   ;;  %v10244_v52 = vld [vmem:[#allocation8 + $0x1024] ss:$36 sps:$4 sm:$0xff]  }
 0x40b   :  { %7685 = vmatpush1.bf16.msra.mxu0 %v10203_v53  ;;  %v10239_v53 = vld [vmem:[#allocation8 + $0x1018] ss:$36 sps:$4 sm:$0xff]  }
 0x40c   :  { %7857 = vmatpush1.bf16.msra.mxu1 %v10206_v55  ;;  %7686 = vmatprep.subr.bf16.mxu0 %v10211_v57  ;;  %v10242_v55 = vld [vmem:[#allocation8 + $0x1020] ss:$36 sps:$4 sm:$0xff]  }
 0x40d   :  { %7858 = vmatprep.subr.bf16.mxu1 %v10214_v58  ;;  %v10247_v57 = vld [vmem:[#allocation8 + $0x1064] ss:$36 sps:$4 sm:$0xff]   ;;  %v10250_v58 = vld [vmem:[#allocation8 + $0x106c] ss:$36 sps:$4 sm:$0xff]  }
 0x40f   :  { %7687 = vmatpush1.bf16.msra.mxu0 %v10209_v60  ;;  %v10245_v60 = vld [vmem:[#allocation8 + $0x1060] ss:$36 sps:$4 sm:$0xff]  }
 0x410   :  { %7859 = vmatpush1.bf16.msra.mxu1 %v10212_v0  ;;  %7688 = vmatprep.subr.bf16.mxu0 %v10217_v1  ;;  %v10248_v0 = vld [vmem:[#allocation8 + $0x1068] ss:$36 sps:$4 sm:$0xff]  }
 0x411   :  { %v7368_v14 = vpop.f32.mrb[8].mxu0  ;;  %v7540_v17 = vpop.f32.mrb[8].mxu1  ;;  %7860 = vmatprep.subr.bf16.mxu1 %v10220_v5  ;;  %v10253_v1 = vld [vmem:[#allocation8 + $0x10ac] ss:$36 sps:$4 sm:$0xff]   ;;  %v10256_v5 = vld [vmem:[#allocation8 + $0x10b4] ss:$36 sps:$4 sm:$0xff]  }
 0x412   :  { %v10734_v19 = vadd.f32 %v7368_v14, %v4219_v2  ;;  %v7370_v62 = vpop.f32.mrb[9].mxu0  ;;  %v7542_v20 = vpop.f32.mrb[9].mxu1  ;;  %v10743_v29 = vadd.f32 %v7540_v17, %v4227_v15  ;;  %v10260_v14 = vld [vmem:[#allocation8 + $0x10f8] ss:$36 sps:$4 sm:$0xff]   ;;  %v10268_v17 = vld [vmem:[#allocation8 + $0x1144] ss:$36 sps:$4 sm:$0xff]  }
 0x413   :  { %v10736_v21 = vadd.f32 %v7370_v62, %v4223_v7  ;;  %v7372_v22 = vpop.f32.mrb[10].mxu0  ;;  %v7544_v23 = vpop.f32.mrb[10].mxu1  ;;  %7689 = vmatpush1.bf16.msra.mxu0 %v10215_v8  ;;  %v10749_v33 = vadd.f32 %v7542_v20, %v4231_v4  ;;  %v10259_v8 = vld [vmem:[#allocation8 + $0x10f4] ss:$36 sps:$4 sm:$0xff]   ;;  %v10266_v62 = vld [vmem:[#allocation8 + $0x1140] ss:$36 sps:$4 sm:$0xff]  }
 0x414   :  { %v10741_v25 = vadd.f32 %v7372_v22, %v4219_v2  ;;  %7861 = vmatpush1.bf16.msra.mxu1 %v10218_v9  ;;  %v7374_v3 = vpop.f32.mrb[11].mxu0  ;;  %v7546_v26 = vpop.f32.mrb[11].mxu1  ;;  %7690 = vmatprep.subr.bf16.mxu0 %v10223_v11  ;;  %v10754_v39 = vadd.f32 %v7544_v23, %v4227_v15  ;;  %v10251_v2 = vld [vmem:[#allocation8 + $0x10a8] ss:$36 sps:$4 sm:$0xff]   ;;  %v10262_v9 = vld [vmem:[#allocation8 + $0x10fc] ss:$36 sps:$4 sm:$0xff]  }
 0x415   :  { %v8057_v30 = vmax.f32 %v10734_v19, %v10736_v21  ;;  %v10747_v31 = vadd.f32 %v7374_v3, %v4223_v7  ;;  %7862 = vmatprep.subr.bf16.mxu1 %v10226_v18  ;;  %v10760_v45 = vadd.f32 %v7546_v26, %v4231_v4  ;;  %v10254_v7 = vld [vmem:[#allocation8 + $0x10b0] ss:$36 sps:$4 sm:$0xff]   ;;  %v10265_v15 = vld [vmem:[#allocation8 + $0x113c] ss:$36 sps:$4 sm:$0xff]   ;;  %v10271_v20 = vld [vmem:[#allocation8 + $0x1184] ss:$36 sps:$4 sm:$0xff]  }
 0x416   :  { %v10257_v11 = vld [vmem:[#allocation8 + $0x10f0] ss:$36 sps:$4 sm:$0xff]   ;;  %v10263_v18 = vld [vmem:[#allocation8 + $0x1138] ss:$36 sps:$4 sm:$0xff]   ;;  %v10269_v22 = vld [vmem:[#allocation8 + $0x1180] ss:$36 sps:$4 sm:$0xff]  }
 0x417   :  { %v10752_v34 = vmax.f32 %v8057_v30, %v10743_v29  ;;  %v8058_v40 = vmax.f32 %v10741_v25, %v10747_v31  ;;  %7691 = vmatpush1.bf16.msra.mxu0 %v10221_v24  ;;  %v10274_v4 = vld [vmem:[#allocation8 + $0x118c] ss:$36 sps:$4 sm:$0xff]   ;;  %v10280_v3 = vld [vmem:[#allocation8 + $0x11d4] ss:$36 sps:$4 sm:$0xff]   ;;  %v10282_v30 = vld [vmem:[#allocation8 + $0x6e0] ss:$36 sps:$4 sm:$0xff]  }
 0x418   :  { %7863 = vmatpush1.bf16.msra.mxu1 %v10224_v27  ;;  %7692 = vmatprep.subr.bf16.mxu0 %v10229_v28  ;;  %v10272_v23 = vld [vmem:[#allocation8 + $0x1188] ss:$36 sps:$4 sm:$0xff]   ;;  %v10278_v27 = vld [vmem:[#allocation8 + $0x11d0] ss:$36 sps:$4 sm:$0xff]   ;;  %v10281_v28 = vld [vmem:[#allocation8 + $0x260] ss:$36 sps:$4 sm:$0xff]  }
 0x419   :  { %v8061_v44 = vmax.f32 %v10752_v34, %v10749_v33  ;;  %v10763_v46 = vmax.f32 %v8058_v40, %v10754_v39  ;;  %7864 = vmatprep.subr.bf16.mxu1 %v10232_v6  ;;  %v10277_v24 = vld [vmem:[#allocation8 + $0x11cc] ss:$36 sps:$4 sm:$0xff]   ;;  %v10283_v6 = vld [vmem:[#allocation8 + $0x20] ss:$36 sps:$4 sm:$0xff]  }
 0x41a   :  { %v10275_v26 = vld [vmem:[#allocation8 + $0x11c8] ss:$36 sps:$4 sm:$0xff]   ;;  %v10284_v40 = vld [vmem:[#allocation8 + $0x4a0] ss:$36 sps:$4 sm:$0xff]  }
 0x41b   :  { %v8062_v48 = vmax.f32 %v10763_v46, %v10760_v45  ;;  %7693 = vmatpush1.bf16.msra.mxu0 %v10227_v41  ;;  %v10285_v41 = vld [vmem:[#allocation8 + $0x2a8] ss:$36 sps:$4 sm:$0xff]  }
 0x41c   :  { %7865 = vmatpush1.bf16.msra.mxu1 %v10230_v42  ;;  %7694 = vmatprep.subr.bf16.mxu0 %v10235_v43  ;;  %v10286_v42 = vld [vmem:[#allocation8 + $0x728] ss:$36 sps:$4 sm:$0xff]  }
 0x41d   :  { %7866 = vmatprep.subr.bf16.mxu1 %v10238_v47  ;;  %v10287_v43 = vld [vmem:[#allocation8 + $0x68] ss:$36 sps:$4 sm:$0xff]  }
 0x41e   :  { %v10288_v47 = vld [vmem:[#allocation8 + $0x4e8] ss:$36 sps:$4 sm:$0xff]  }
 0x41f   :  { %7695 = vmatpush1.bf16.msra.mxu0 %v10233_v49  ;;  %v10289_v49 = vld [vmem:[#allocation8 + $0x2f0] ss:$36 sps:$4 sm:$0xff]   ;;  %v8695_v46 = vld [vmem:[#allocation10 + $0x8] ss:$0 sm:$0xff] }
 0x420   :  { %7867 = vmatpush1.bf16.msra.mxu1 %v10236_v50  ;;  %7696 = vmatprep.subr.bf16.mxu0 %v10241_v51  ;;  %v10290_v50 = vld [vmem:[#allocation8 + $0x770] ss:$36 sps:$4 sm:$0xff]  }
 0x421   :  { %7868 = vmatprep.subr.bf16.mxu1 %v10244_v52  ;;  %v10291_v51 = vld [vmem:[#allocation8 + $0xb0] ss:$36 sps:$4 sm:$0xff]  }
 0x422   :  { %v10292_v52 = vld [vmem:[#allocation8 + $0x530] ss:$36 sps:$4 sm:$0xff]  }
 0x423   :  { %7697 = vmatpush1.bf16.msra.mxu0 %v10239_v53  ;;  %v10293_v53 = vld [vmem:[#allocation8 + $0x338] ss:$36 sps:$4 sm:$0xff]  }
 0x424   :  { %7869 = vmatpush1.bf16.msra.mxu1 %v10242_v55  ;;  %7698 = vmatprep.subr.bf16.mxu0 %v10247_v57  ;;  %v10294_v55 = vld [vmem:[#allocation8 + $0x7b8] ss:$36 sps:$4 sm:$0xff]  }
 0x425   :  { %7870 = vmatprep.subr.bf16.mxu1 %v10250_v58  ;;  %v10295_v57 = vld [vmem:[#allocation8 + $0xf8] ss:$36 sps:$4 sm:$0xff]   ;;  %v10297_v58 = vld [vmem:[#allocation8 + $0x380] ss:$36 sps:$4 sm:$0xff]  }
 0x427   :  { %7699 = vmatpush1.bf16.msra.mxu0 %v10245_v60  ;;  %v10298_v60 = vld [vmem:[#allocation8 + $0x800] ss:$36 sps:$4 sm:$0xff]  }
 0x428   :  { %7871 = vmatpush1.bf16.msra.mxu1 %v10248_v0  ;;  %7700 = vmatprep.subr.bf16.mxu0 %v10253_v1  ;;  %v10300_v0 = vld [vmem:[#allocation8 + $0x5c0] ss:$36 sps:$4 sm:$0xff]   ;;  %v10301_v1 = vld [vmem:[#allocation8 + $0x3c8] ss:$36 sps:$4 sm:$0xff]  }
 0x429   :  { %7872 = vmatprep.subr.bf16.mxu1 %v10256_v5  ;;  %v10302_v5 = vld [vmem:[#allocation8 + $0x848] ss:$36 sps:$4 sm:$0xff]  }
 0x42b   :  { %7701 = vmatpush1.bf16.msra.mxu0 %v10251_v2  ;;  %v10303_v2 = vld [vmem:[#allocation8 + $0x188] ss:$36 sps:$4 sm:$0xff]  }
 0x42c   :  { %7873 = vmatpush1.bf16.msra.mxu1 %v10254_v7  ;;  %7702 = vmatprep.subr.bf16.mxu0 %v10259_v8  ;;  %v10304_v7 = vld [vmem:[#allocation8 + $0x608] ss:$36 sps:$4 sm:$0xff]   ;;  %v10305_v8 = vld [vmem:[#allocation8 + $0x410] ss:$36 sps:$4 sm:$0xff]  }
 0x42d   :  { %7874 = vmatprep.subr.bf16.mxu1 %v10262_v9  ;;  %v10306_v9 = vld [vmem:[#allocation8 + $0x890] ss:$36 sps:$4 sm:$0xff]  }
 0x42f   :  { %7703 = vmatpush1.bf16.msra.mxu0 %v10257_v11  ;;  %v10307_v11 = vld [vmem:[#allocation8 + $0x1d0] ss:$36 sps:$4 sm:$0xff]  }
 0x430   :  { %7875 = vmatpush1.bf16.msra.mxu1 %v10260_v14  ;;  %7704 = vmatprep.subr.bf16.mxu0 %v10265_v15  ;;  %v10308_v14 = vld [vmem:[#allocation8 + $0x650] ss:$36 sps:$4 sm:$0xff]   ;;  %v10309_v15 = vld [vmem:[#allocation8 + $0x458] ss:$36 sps:$4 sm:$0xff]  }
 0x431   :  { %7876 = vmatprep.subr.bf16.mxu1 %v10268_v17  ;;  %v10310_v17 = vld [vmem:[#allocation8 + $0x8d8] ss:$36 sps:$4 sm:$0xff]  }
 0x433   :  { %7705 = vmatpush1.bf16.msra.mxu0 %v10263_v18  ;;  %v10311_v18 = vld [vmem:[#allocation8 + $0x218] ss:$36 sps:$4 sm:$0xff]  }
 0x434   :  { %7877 = vmatpush1.bf16.msra.mxu1 %v10266_v62  ;;  %7706 = vmatprep.subr.bf16.mxu0 %v10271_v20  ;;  %v10312_v62 = vld [vmem:[#allocation8 + $0x698] ss:$36 sps:$4 sm:$0xff]   ;;  %v10313_v20 = vld [vmem:[#allocation8 + $0xb60] ss:$36 sps:$4 sm:$0xff]  }
 0x435   :  { %7878 = vmatprep.subr.bf16.mxu1 %v10274_v4  ;;  %v10314_v4 = vld [vmem:[#allocation8 + $0xfe0] ss:$36 sps:$4 sm:$0xff]  }
 0x437   :  { %7707 = vmatpush1.bf16.msra.mxu0 %v10269_v22  ;;  %v10315_v22 = vld [vmem:[#allocation8 + $0x920] ss:$36 sps:$4 sm:$0xff]  }
 0x438   :  { %7879 = vmatpush1.bf16.msra.mxu1 %v10272_v23  ;;  %7708 = vmatprep.subr.bf16.mxu0 %v10277_v24  ;;  %v10316_v23 = vld [vmem:[#allocation8 + $0xda0] ss:$36 sps:$4 sm:$0xff]   ;;  %v10317_v24 = vld [vmem:[#allocation8 + $0xba8] ss:$36 sps:$4 sm:$0xff]  }
 0x439   :  { %7880 = vmatprep.subr.bf16.mxu1 %v10280_v3  ;;  %v10318_v3 = vld [vmem:[#allocation8 + $0x1028] ss:$36 sps:$4 sm:$0xff]  }
 0x43b   :  { %7709 = vmatpush1.bf16.msra.mxu0 %v10275_v26  ;;  %v10319_v26 = vld [vmem:[#allocation8 + $0x968] ss:$36 sps:$4 sm:$0xff]  }
 0x43c   :  { %7881 = vmatpush1.bf16.msra.mxu1 %v10278_v27  ;;  %9272 = vmatprep.subr.bf16.mxu0 %v10281_v28  ;;  %v10320_v27 = vld [vmem:[#allocation8 + $0xde8] ss:$36 sps:$4 sm:$0xff]   ;;  %v10321_v28 = vld [vmem:[#allocation8 + $0xbf0] ss:$36 sps:$4 sm:$0xff]  }
 0x43d   :  { %9294 = vmatprep.subr.bf16.mxu1 %v10282_v30  ;;  %v10322_v30 = vld [vmem:[#allocation8 + $0x1070] ss:$36 sps:$4 sm:$0xff]  }
 0x43e   :  { %7711 = vmatmul.mubr.bf16.vlgmr.msra.gmra.mrb[12].mxu0 %v10695_v12 }
 0x43f   :  { %7883 = vmatmul.mubr.bf16.vlgmr.msra.gmra.mrb[12].mxu1 %v10695_v12  ;;  %9273 = vmatpush3.bf16.msra.mxu0 %v10283_v6  ;;  %v10323_v6 = vld [vmem:[#allocation8 + $0x9b0] ss:$36 sps:$4 sm:$0xff]  }
 0x440   :  { %7925 = vmatprep.mubr.bf16.mxu0 %v10665_v59  ;;  %9295 = vmatpush3.bf16.msra.mxu1 %v10284_v40  ;;  %v10296_v59 = vld [vmem:[#allocation8 + $0x578] ss:$36 sps:$4 sm:$0xff]  }
 0x441   :  { %7966 = vmatprep.mubr.bf16.mxu1 %v10667_v61  ;;  %9274 = vmatprep.subr.bf16.mxu0 %v10285_v41  ;;  %v10299_v61 = vld [vmem:[#allocation8 + $0x140] ss:$36 sps:$4 sm:$0xff]   ;;  %v10325_v40 = vld [vmem:[#allocation8 + $0xc38] ss:$36 sps:$4 sm:$0xff]  }
 0x442   :  { %9296 = vmatprep.subr.bf16.mxu1 %v10286_v42  ;;  %v10327_v41 = vld [vmem:[#allocation8 + $0x9f8] ss:$36 sps:$4 sm:$0xff]   ;;  %v10329_v42 = vld [vmem:[#allocation8 + $0xc80] ss:$36 sps:$4 sm:$0xff]  }
 0x443   :  { %9275 = vmatpush3.bf16.msra.mxu0 %v10287_v43  ;;  %v10330_v43 = vld [vmem:[#allocation8 + $0x1100] ss:$36 sps:$4 sm:$0xff]  }
 0x444   :  { %9297 = vmatpush3.bf16.msra.mxu1 %v10288_v47  ;;  %9276 = vmatprep.subr.bf16.mxu0 %v10289_v49  ;;  %v10332_v47 = vld [vmem:[#allocation8 + $0xec0] ss:$36 sps:$4 sm:$0xff]   ;;  %v10333_v49 = vld [vmem:[#allocation8 + $0xcc8] ss:$36 sps:$4 sm:$0xff]  }
 0x445   :  { %9298 = vmatprep.subr.bf16.mxu1 %v10290_v50  ;;  %v10334_v50 = vld [vmem:[#allocation8 + $0x1148] ss:$36 sps:$4 sm:$0xff]  }
 0x447   :  { %9277 = vmatpush3.bf16.msra.mxu0 %v10291_v51  ;;  %v10335_v51 = vld [vmem:[#allocation8 + $0xa88] ss:$36 sps:$4 sm:$0xff]  }
 0x448   :  { %9299 = vmatpush3.bf16.msra.mxu1 %v10292_v52  ;;  %9278 = vmatprep.subr.bf16.mxu0 %v10293_v53  ;;  %v10336_v52 = vld [vmem:[#allocation8 + $0xf08] ss:$36 sps:$4 sm:$0xff]   ;;  %v10337_v53 = vld [vmem:[#allocation8 + $0xd10] ss:$36 sps:$4 sm:$0xff]  }
 0x449   :  { %9300 = vmatprep.subr.bf16.mxu1 %v10294_v55  ;;  %v10338_v55 = vld [vmem:[#allocation8 + $0x1190] ss:$36 sps:$4 sm:$0xff]  }
 0x44b   :  { %9279 = vmatpush3.bf16.msra.mxu0 %v10295_v57  ;;  %v10339_v57 = vld [vmem:[#allocation8 + $0xad0] ss:$36 sps:$4 sm:$0xff]  }
 0x44c   :  { %9301 = vmatpush3.bf16.msra.mxu1 %v10296_v59  ;;  %9280 = vmatprep.subr.bf16.mxu0 %v10297_v58  ;;  %v10340_v59 = vld [vmem:[#allocation8 + $0xf50] ss:$36 sps:$4 sm:$0xff]   ;;  %v10341_v58 = vld [vmem:[#allocation8 + $0xd58] ss:$36 sps:$4 sm:$0xff]  }
 0x44d   :  { %9302 = vmatprep.subr.bf16.mxu1 %v10298_v60  ;;  %v10342_v60 = vld [vmem:[#allocation8 + $0x11d8] ss:$36 sps:$4 sm:$0xff]  }
 0x44f   :  { %9281 = vmatpush3.bf16.msra.mxu0 %v10299_v61  ;;  %v10343_v61 = vld [vmem:[#allocation8 + $0xb18] ss:$36 sps:$4 sm:$0xff]  }
 0x450   :  { %9303 = vmatpush3.bf16.msra.mxu1 %v10300_v0  ;;  %9282 = vmatprep.subr.bf16.mxu0 %v10301_v1  ;;  %v10344_v0 = vld [vmem:[#allocation8 + $0xf98] ss:$36 sps:$4 sm:$0xff]   ;;  %v4235_v1 = vrot.slane %v10723_v63, %v562_v35 }
 0x451   :  { %9304 = vmatprep.subr.bf16.mxu1 %v10302_v5  ;;  %v4239_v5 = vrot.slane %v10723_v63, %v566_v37  ;;  %v4247_v37 = vrot.slane %v10723_v63, %v574_v38 }
 0x453   :  { %9283 = vmatpush3.bf16.msra.mxu0 %v10303_v2 }
 0x454   :  { %9305 = vmatpush3.bf16.msra.mxu1 %v10304_v7  ;;  %9284 = vmatprep.subr.bf16.mxu0 %v10305_v8  ;;  %v4243_v8 = vrot.slane %v10723_v63, %v570_v36 }
 0x455   :  { %9306 = vmatprep.subr.bf16.mxu1 %v10306_v9 }
 0x457   :  { %9285 = vmatpush3.bf16.msra.mxu0 %v10307_v11 }
 0x458   :  { %9307 = vmatpush3.bf16.msra.mxu1 %v10308_v14  ;;  %9286 = vmatprep.subr.bf16.mxu0 %v10309_v15 }
 0x459   :  { %9308 = vmatprep.subr.bf16.mxu1 %v10310_v17 }
 0x45b   :  { %9287 = vmatpush3.bf16.msra.mxu0 %v10311_v18 }
 0x45c   :  { %9309 = vmatpush3.bf16.msra.mxu1 %v10312_v62  ;;  %9316 = vmatprep.subr.bf16.mxu0 %v10313_v20 }
 0x45d   :  { %9338 = vmatprep.subr.bf16.mxu1 %v10314_v4 }
 0x45e   :  { %7926 = vmatmul.mubr.bf16.vlgmr.msra.gmra.mrb[16].mxu0 %v10661_v54  ;;  %v10324_v54 = vld [vmem:[#allocation8 + $0xe30] ss:$36 sps:$4 sm:$0xff]  }
 0x45f   :  { %7967 = vmatmul.mubr.bf16.vlgmr.msra.gmra.mrb[16].mxu1 %v10663_v32  ;;  %9317 = vmatpush3.bf16.msra.mxu0 %v10315_v22  ;;  %v10326_v32 = vld [vmem:[#allocation8 + $0x10b8] ss:$36 sps:$4 sm:$0xff]  }
 0x460   :  { %8007 = vmatprep.mubr.bf16.mxu0 %v10697_v13  ;;  %9339 = vmatpush3.bf16.msra.mxu1 %v10316_v23  ;;  %v10328_v13 = vld [vmem:[#allocation8 + $0xe78] ss:$36 sps:$4 sm:$0xff]  }
 0x461   :  { %8048 = vmatprep.mubr.bf16.mxu1 %v10699_v16  ;;  %9318 = vmatprep.subr.bf16.mxu0 %v10317_v24  ;;  %v10331_v16 = vld [vmem:[#allocation8 + $0xa40] ss:$36 sps:$4 sm:$0xff]  }
 0x462   :  { %9340 = vmatprep.subr.bf16.mxu1 %v10318_v3 }
 0x463   :  { %9319 = vmatpush3.bf16.msra.mxu0 %v10319_v26 }
 0x464   :  { %9341 = vmatpush3.bf16.msra.mxu1 %v10320_v27  ;;  %9320 = vmatprep.subr.bf16.mxu0 %v10321_v28 }
 0x465   :  { %9342 = vmatprep.subr.bf16.mxu1 %v10322_v30 }
 0x467   :  { %9321 = vmatpush3.bf16.msra.mxu0 %v10323_v6 }
 0x468   :  { %9343 = vmatpush3.bf16.msra.mxu1 %v10324_v54  ;;  %9322 = vmatprep.subr.bf16.mxu0 %v10325_v40 }
 0x469   :  { %9344 = vmatprep.subr.bf16.mxu1 %v10326_v32 }
 0x46b   :  { %9323 = vmatpush3.bf16.msra.mxu0 %v10327_v41 }
 0x46c   :  { %9345 = vmatpush3.bf16.msra.mxu1 %v10328_v13  ;;  %9324 = vmatprep.subr.bf16.mxu0 %v10329_v42 }
 0x46d   :  { %9346 = vmatprep.subr.bf16.mxu1 %v10330_v43 }
 0x46f   :  { %9325 = vmatpush3.bf16.msra.mxu0 %v10331_v16 }
 0x470   :  { %9347 = vmatpush3.bf16.msra.mxu1 %v10332_v47  ;;  %9326 = vmatprep.subr.bf16.mxu0 %v10333_v49 }
 0x471   :  { %9348 = vmatprep.subr.bf16.mxu1 %v10334_v50 }
 0x473   :  { %9327 = vmatpush3.bf16.msra.mxu0 %v10335_v51 }
 0x474   :  { %9349 = vmatpush3.bf16.msra.mxu1 %v10336_v52  ;;  %9328 = vmatprep.subr.bf16.mxu0 %v10337_v53 }
 0x475   :  { %9350 = vmatprep.subr.bf16.mxu1 %v10338_v55 }
 0x477   :  { %9329 = vmatpush3.bf16.msra.mxu0 %v10339_v57 }
 0x478   :  { %9351 = vmatpush3.bf16.msra.mxu1 %v10340_v59  ;;  %9330 = vmatprep.subr.bf16.mxu0 %v10341_v58 }
 0x479   :  { %9352 = vmatprep.subr.bf16.mxu1 %v10342_v60 }
 0x47b   :  { %9331 = vmatpush3.bf16.msra.mxu0 %v10343_v61 }
 0x47c   :  { %9353 = vmatpush3.bf16.msra.mxu1 %v10344_v0 }
 0x47e   :  { %8008 = vmatmul.mubr.bf16.vlgmr.msra.gmra.mrb[20].mxu0 %v10693_v10 }
 0x47f   :  { %8049 = vmatmul.mubr.bf16.vlgmr.msra.gmra.mrb[20].mxu1 %v10695_v12 }
 0x511   :  { %v7712_v2 = vpop.f32.mrb[12].mxu0 }
 0x512   :  { %v10783_v7 = vadd.f32 %v7712_v2, %v4235_v1  ;;  %v7884_v9 = vpop.f32.mrb[12].mxu1  ;;  %v7714_v11 = vpop.f32.mrb[13].mxu0 }
 0x513   :  { %v10788_v10 = vadd.f32 %v7714_v11, %v4239_v5  ;;  %v7886_v12 = vpop.f32.mrb[13].mxu1  ;;  %v7716_v14 = vpop.f32.mrb[14].mxu0  ;;  %v10801_v20 = vadd.f32 %v7884_v9, %v4243_v8 }
 0x514   :  { %v8063_v35 = vmax.f32 %v8061_v44, %v10783_v7  ;;  %v10797_v15 = vadd.f32 %v7716_v14, %v4235_v1  ;;  %v7888_v17 = vpop.f32.mrb[14].mxu1  ;;  %v7718_v18 = vpop.f32.mrb[15].mxu0  ;;  %v10808_v44 = vadd.f32 %v7886_v12, %v4247_v37 }
 0x515   :  { %v10799_v36 = vadd.f32 %v7718_v18, %v4239_v5  ;;  %v7890_v62 = vpop.f32.mrb[15].mxu1  ;;  %v10811_v38 = vadd.f32 %v7888_v17, %v4243_v8 }
 0x516   :  { %v8065_v4 = vmax.f32 %v8063_v35, %v10788_v10  ;;  %v8064_v34 = vmax.f32 %v8062_v48, %v10797_v15  ;;  %v10815_v23 = vadd.f32 %v7890_v62, %v4247_v37 }
 0x518   :  { %v8067_v56 = vmax.f32 %v8065_v4, %v10801_v20  ;;  %v8066_v63 = vmax.f32 %v8064_v34, %v10799_v36 }
 0x51a   :  { %v8069_v22 = vmax.f32 %v8067_v56, %v10808_v44  ;;  %v8068_v24 = vmax.f32 %v8066_v63, %v10811_v38 }
 0x51c   :  { %v8070_v3 = vmax.f32 %v8068_v24, %v10815_v23 }
 0x531   :  { %v9288_v26 = vpop.f32.mrb[16].mxu0 }
 0x532   :  { %v9310_v27 = vpop.f32.mrb[16].mxu1  ;;  %v9289_v48 = vpop.f32.mrb[17].mxu0 }
 0x533   :  { %v9290_v28 = vadd.f32 %v9289_v48, %v9288_v26  ;;  %v9311_v30 = vpop.f32.mrb[17].mxu1  ;;  %v9291_v6 = vpop.f32.mrb[18].mxu0 }
 0x534   :  { %v9312_v54 = vadd.f32 %v9311_v30, %v9310_v27  ;;  %v9313_v40 = vpop.f32.mrb[18].mxu1  ;;  %v9292_v32 = vpop.f32.mrb[19].mxu0 }
 0x535   :  { %v7928_v41 = vadd.f32 %v9290_v28, %v8695_v46  ;;  %v9293_v13 = vadd.f32 %v9292_v32, %v9291_v6  ;;  %v9314_v42 = vpop.f32.mrb[19].mxu1 }
 0x536   :  { %v9315_v43 = vadd.f32 %v9314_v42, %v9313_v40 }
 0x537   :  { %v7969_v16 = vadd.f32 %v9312_v54, %v7928_v41  ;;  %v7931_v47 = vadd.f32 %v9293_v13, %v8695_v46 }
 0x539   :  { %v7972_v49 = vadd.f32 %v9315_v43, %v7931_v47 }
 0x551   :  { %v9332_v50 = vpop.f32.mrb[20].mxu0 }
 0x552   :  { %v9354_v51 = vpop.f32.mrb[20].mxu1  ;;  %v9333_v52 = vpop.f32.mrb[21].mxu0 }
 0x553   :  { %v9334_v53 = vadd.f32 %v9333_v52, %v9332_v50  ;;  %v9355_v55 = vpop.f32.mrb[21].mxu1  ;;  %v9335_v57 = vpop.f32.mrb[22].mxu0 }
 0x554   :  { %v9356_v59 = vadd.f32 %v9355_v55, %v9354_v51  ;;  %v9357_v58 = vpop.f32.mrb[22].mxu1  ;;  %v9336_v60 = vpop.f32.mrb[23].mxu0 }
 0x555   :  { %v8010_v61 = vadd.f32 %v9334_v53, %v7969_v16  ;;  %v9337_v0 = vadd.f32 %v9336_v60, %v9335_v57  ;;  %v9358_v1 = vpop.f32.mrb[23].mxu1 }
 0x556   :  { %v9359_v5 = vadd.f32 %v9358_v1, %v9357_v58 }
 0x557   :  { %v8051_v2 = vadd.f32 %v9356_v59, %v8010_v61  ;;  %v8013_v8 = vadd.f32 %v9337_v0, %v7972_v49 }
 0x559   :  { %v8071_v9 = vmax.f32 %v8069_v22, %v8051_v2  ;;  %v10819_v11 = vadd.f32 %v9359_v5, %v8013_v8 }
 0x55b   :  { %v8073_v12 = vsub.f32 %v10734_v19, %v8071_v9  ;;  %v8083_v14 = vsub.f32 %v10736_v21, %v8071_v9  ;;  %v8093_v35 = vsub.f32 %v10743_v29, %v8071_v9  ;;  %v8103_v37 = vsub.f32 %v10749_v33, %v8071_v9 }
 0x55c   :  { %v8113_v17 = vsub.f32 %v10783_v7, %v8071_v9  ;;  %v8123_v18 = vsub.f32 %v10788_v10, %v8071_v9  ;;  %v8133_v62 = vsub.f32 %v10801_v20, %v8071_v9  ;;  %v8143_v4 = vsub.f32 %v10808_v44, %v8071_v9 }
 0x55d   :  { %v8075_v34 = vmul.f32 1.442695, %v8073_v12  ;;  %v8085_v56 = vmul.f32 1.442695, %v8083_v14  ;;  %v8153_v63 = vsub.f32 %v8051_v2, %v8071_v9  ;;  %v8095_v22 = vmul.f32 1.442695, %v8093_v35 }
 0x55e   :  { %v8072_v19 = vmax.f32 %v8070_v3, %v10819_v11  ;;  %v8105_v21 = vmul.f32 1.442695, %v8103_v37  ;;  %v8115_v24 = vmul.f32 1.442695, %v8113_v17  ;;  %v8125_v26 = vmul.f32 1.442695, %v8123_v18 }
 0x55f   :  { %10345 = vpow2.f32 %v8075_v34  ;;  %v8145_v48 = vmul.f32 1.442695, %v8143_v4  ;;  %v8155_v30 = vmul.f32 1.442695, %v8153_v63 }
 0x560   :  { %10347 = vpow2.f32 %v8085_v56  ;;  %v8074_v29 = vsub.f32 %v10741_v25, %v8072_v19  ;;  %v8084_v33 = vsub.f32 %v10747_v31, %v8072_v19  ;;  %v8094_v7 = vsub.f32 %v10754_v39, %v8072_v19 }
 0x561   :  { %v8104_v10 = vsub.f32 %v10760_v45, %v8072_v19  ;;  %v8114_v20 = vsub.f32 %v10797_v15, %v8072_v19  ;;  %v8124_v44 = vsub.f32 %v10799_v36, %v8072_v19  ;;  %10349 = vpow2.f32 %v8095_v22 }
 0x562   :  { %10351 = vpow2.f32 %v8105_v21  ;;  %v8077_v3 = vmul.f32 1.442695, %v8074_v29  ;;  %v8134_v27 = vsub.f32 %v10811_v38, %v8072_v19  ;;  %v8144_v46 = vsub.f32 %v10815_v23, %v8072_v19 }
 0x563   :  { %v8154_v25 = vsub.f32 %v10819_v11, %v8072_v19  ;;  %v8087_v31 = vmul.f32 1.442695, %v8084_v33  ;;  %10353 = vpow2.f32 %v8115_v24  ;;  %v8135_v39 = vmul.f32 1.442695, %v8133_v62 }
 0x564   :  { %10355 = vpow2.f32 %v8125_v26  ;;  %v8097_v45 = vmul.f32 1.442695, %v8094_v7  ;;  %v8107_v36 = vmul.f32 1.442695, %v8104_v10  ;;  %v8117_v38 = vmul.f32 1.442695, %v8114_v20 }
 0x565   :  { %10357 = vpow2.f32 %v8077_v3  ;;  %v8127_v32 = vmul.f32 1.442695, %v8124_v44  ;;  %v8137_v13 = vmul.f32 1.442695, %v8134_v27  ;;  %v8147_v47 = vmul.f32 1.442695, %v8144_v46 }
 0x566   :  { %10359 = vpow2.f32 %v8087_v31  ;;  %v8157_v52 = vmul.f32 1.442695, %v8154_v25 }
 0x567   :  { %10361 = vpow2.f32 %v8135_v39 }
 0x568   :  { %10363 = vpow2.f32 %v8097_v45 }
 0x569   :  { %v10346_v15 = vpop.eup %10345  ;;  %10365 = vpow2.f32 %v8145_v48 }
 0x56a   :  { %v10348_v28 = vpop.eup %10347  ;;  %10367 = vpow2.f32 %v8107_v36 }
 0x56b   :  { %v8089_v6 = vadd.f32 %v10348_v28, %v10346_v15  ;;  %v10350_v54 = vpop.eup %10349  ;;  %10369 = vpow2.f32 %v8155_v30 }
 0x56c   :  { %v10352_v23 = vpop.eup %10351  ;;  %10371 = vpow2.f32 %v8117_v38 }
 0x56d   :  { %v8099_v40 = vadd.f32 %v10350_v54, %v8089_v6  ;;  %v10354_v42 = vpop.eup %10353  ;;  %10373 = vpow2.f32 %v8127_v32 }
 0x56e   :  { %v10356_v43 = vpop.eup %10355  ;;  %10375 = vpow2.f32 %v8137_v13 }
 0x56f   :  { %v8109_v41 = vadd.f32 %v10352_v23, %v8099_v40  ;;  %v10358_v49 = vpop.eup %10357  ;;  %10377 = vpow2.f32 %v8147_v47 }
 0x570   :  { %v10360_v50 = vpop.eup %10359  ;;  %10379 = vpow2.f32 %v8157_v52 }
 0x571   :  { %v8119_v16 = vadd.f32 %v10354_v42, %v8109_v41  ;;  %v10362_v53 = vpop.eup %10361  ;;  %v8090_v55 = vadd.f32 %v10360_v50, %v10358_v49 }
 0x572   :  { %v10364_v57 = vpop.eup %10363 }
 0x573   :  { %v8129_v51 = vadd.f32 %v10356_v43, %v8119_v16  ;;  %v10366_v58 = vpop.eup %10365  ;;  %v8100_v60 = vadd.f32 %v10364_v57, %v8090_v55 }
 0x574   :  { %v10368_v61 = vpop.eup %10367 }
 0x575   :  { %v8139_v59 = vadd.f32 %v10362_v53, %v8129_v51  ;;  %v10370_v1 = vpop.eup %10369  ;;  %v8110_v5 = vadd.f32 %v10368_v61, %v8100_v60 }
 0x576   :  { %v10372_v2 = vpop.eup %10371 }
 0x577   :  { %v8149_v0 = vadd.f32 %v10366_v58, %v8139_v59  ;;  %v8120_v9 = vadd.f32 %v10372_v2, %v8110_v5  ;;  %v10374_v11 = vpop.eup %10373 }
 0x578   :  { %v10376_v14 = vpop.eup %10375 }
 0x579   :  { %v8159_v8 = vadd.f32 %v10370_v1, %v8149_v0  ;;  %v8130_v12 = vadd.f32 %v10374_v11, %v8120_v9  ;;  %v10378_v37 = vpop.eup %10377 }
 0x57a   :  { %v10380_v18 = vpop.eup %10379 }
 0x57b   :  { %10381 = vrcp.f32 %v8159_v8  ;;  %v8140_v35 = vadd.f32 %v10376_v14, %v8130_v12 }
 0x57d   :  { %v8150_v17 = vadd.f32 %v10378_v37, %v8140_v35 }
 0x57f   :  { %v8160_v62 = vadd.f32 %v10380_v18, %v8150_v17 }
 0x581   :  { %10383 = vrcp.f32 %v8160_v62 }
 0x585   :  { %v10382_v4 = vpop.eup %10381 }
 0x586   :  { %v8169_v34 = vmul.f32 %v10382_v4, %v10346_v15  ;;  %v8175_v56 = vmul.f32 %v10382_v4, %v10348_v28  ;;  %v8181_v63 = vmul.f32 %v10382_v4, %v10350_v54  ;;  %v8187_v22 = vmul.f32 %v10382_v4, %v10352_v23 }
 0x587   :  { %v8193_v19 = vmul.f32 %v10382_v4, %v10354_v42  ;;  %v8199_v21 = vmul.f32 %v10382_v4, %v10356_v43  ;;  %v8205_v29 = vmul.f32 %v10382_v4, %v10362_v53  ;;  %v8211_v33 = vmul.f32 %v10382_v4, %v10366_v58 }
 0x588   :  { %8171 = vst [vmem:[#allocation11] sm:$0xff] %v8169_v34  ;;  %8177 = vst [vmem:[#allocation11 + $0x8] sm:$0xff] %v8175_v56  ;;  %v8217_v7 = vmul.f32 %v10382_v4, %v10370_v1 }
 0x589   :  { %8183 = vst [vmem:[#allocation11 + $0x10] sm:$0xff] %v8181_v63  ;;  %8189 = vst [vmem:[#allocation11 + $0x18] sm:$0xff] %v8187_v22 }
 0x58a   :  { %8195 = vst [vmem:[#allocation11 + $0x20] sm:$0xff] %v8193_v19  ;;  %8201 = vst [vmem:[#allocation11 + $0x28] sm:$0xff] %v8199_v21 }
 0x58b   :  { %8207 = vst [vmem:[#allocation11 + $0x30] sm:$0xff] %v8205_v29  ;;  %8213 = vst [vmem:[#allocation11 + $0x38] sm:$0xff] %v8211_v33  ;;  %v10384_v10 = vpop.eup %10383 }
 0x58c   :  { %8219 = vst [vmem:[#allocation11 + $0x40] sm:$0xff] %v8217_v7  ;;  %v8170_v20 = vmul.f32 %v10384_v10, %v10358_v49  ;;  %v8176_v44 = vmul.f32 %v10384_v10, %v10360_v50  ;;  %v8182_v24 = vmul.f32 %v10384_v10, %v10364_v57  ;;  %v8188_v26 = vmul.f32 %v10384_v10, %v10368_v61 }
 0x58d   :  { %v8194_v3 = vmul.f32 %v10384_v10, %v10372_v2  ;;  %v8200_v27 = vmul.f32 %v10384_v10, %v10374_v11  ;;  %v8206_v46 = vmul.f32 %v10384_v10, %v10376_v14  ;;  %v8212_v25 = vmul.f32 %v10384_v10, %v10378_v37 }
 0x58e   :  { %8172 = vst [vmem:[#allocation11 + $0x48] sm:$0xff] %v8170_v20  ;;  %8178 = vst [vmem:[#allocation11 + $0x50] sm:$0xff] %v8176_v44  ;;  %v8218_v31 = vmul.f32 %v10384_v10, %v10380_v18 }
 0x58f   :  { %8184 = vst [vmem:[#allocation11 + $0x58] sm:$0xff] %v8182_v24  ;;  %8190 = vst [vmem:[#allocation11 + $0x60] sm:$0xff] %v8188_v26 }
 0x590   :  { %8196 = vst [vmem:[#allocation11 + $0x68] sm:$0xff] %v8194_v3  ;;  %8202 = vst [vmem:[#allocation11 + $0x70] sm:$0xff] %v8200_v27 }
 0x591   :  { %8208 = vst [vmem:[#allocation11 + $0x78] sm:$0xff] %v8206_v46  ;;  %8214 = vst [vmem:[#allocation11 + $0x80] sm:$0xff] %v8212_v25 }
 0x592   :  { %8220 = vst [vmem:[#allocation11 + $0x88] sm:$0xff] %v8218_v31 }
 0x593   :  { %10513 = shalt.err (!%p10510_p2)
}
 0x594   :  { %s10514_s8 = scalar_lea.hbm %s10856_s5, 2304 }
 0x595   :  { %p10515_p3 = scmp.ne.s32.totalorder %s10856_s5, %s10514_s8  ;;  %p10518_p4 = scmp.lt.u32.totalorder %s10514_s8, %s10856_s5 }
 0x597   :  { %p10520_p5 = pnand %p10518_p4, %p10515_p3 }
 0x599   :  { %10523 = shalt.err (!%p10520_p5)
}
 0x59a   :  { %s10545_s13 = smov 1152   ;;  %s10546_s14 = smov 72  }
 0x59b   :  { %8232 = dma.vmem_to_hbm [thread:$0]  %s8227_s3, 2304, %s10856_s5, [#allocation4], %s10545_s13, %s10545_s13, %s10546_s14  }
 0x59c   :  { %10530 = dma.done.wait [#allocation4], 2304  }
 0x59d   :  { %10531 = vsyncadd [#allocation4], 4294964992 }
 0x59e   :  { %8236 = vsyncpa [#allocation3], 1 }
 0x59f   :  { %8237 = vsyncpa [#allocation6], 1 }
 0x5a0   :  { %8238 = vsyncpa [#allocation9], 1 }
 0x5a1   :  { %8239 = vsyncpa [#allocation4], 1 }

</bundles_post_ra>
